<compile_context>
chip_gen: v6e
topology: v6e:2x2x1
jax: 0.10.0
libtpu: 0.0.40
codegen_flags: <defaults>
</compile_context>

<pallas_src>
import functools

import jax
import jax.numpy as jnp
from jax import lax
from jax.experimental import pallas as pl
from jax.experimental.pallas import tpu as pltpu


def _spatial_attention_kernel(x_ref, w_ref, o_ref, sum_ref, max_ref,
                              mpad_ref, xpad_ref, *,
                              C_TILE, TAIL, H, W, K, PAD):
    cb = pl.program_id(1)
    last = pl.num_programs(1) - 1

    # ---- init (once per image) --------------------------------------------
    @pl.when(cb == 0)
    def _init():
        sum_ref[...] = jnp.zeros(sum_ref.shape, sum_ref.dtype)
        max_ref[...] = jnp.full(max_ref.shape, -jnp.inf, max_ref.dtype)

    # ---- per-step channel-block reduction (hot path, lane-dense) ----------
    def _accumulate(nch):
        xb = x_ref[0, 0:nch, :].astype(jnp.float32)            # (nch, H*W) f32
        sum_ref[...] = sum_ref[...] + jnp.sum(xb, axis=0, keepdims=True)
        max_ref[...] = jnp.maximum(max_ref[...],
                                   jnp.max(xb, axis=0, keepdims=True))

    if TAIL == C_TILE:
        _accumulate(C_TILE)
    else:
        # C % C_TILE != 0: the static-size tail slice is handled only on the
        # last step, keeping all masking work off the steady-state path.
        @pl.when(cb < last)
        def _full_block():
            _accumulate(C_TILE)

        @pl.when(cb == last)
        def _tail_block():
            _accumulate(TAIL)

    # ---- finalize: 7x7x2->1 conv + sigmoid (once per image) ---------------
    @pl.when(cb == last)
    def _finalize():
        # Build the small zero-padded 2-D maps from the flat accumulators.
        # The halo is the conv's zero padding (matches the reference for both
        # the mean and the max map).  1/C is already folded into w_ref[:K*K],
        # so the channel-sum buffer is used directly as the "mean" map input.
        mpad_ref[...] = jnp.zeros(mpad_ref.shape, mpad_ref.dtype)
        xpad_ref[...] = jnp.zeros(xpad_ref.shape, xpad_ref.dtype)
        for h in range(H):
            sl = slice(h * W, (h + 1) * W)
            mpad_ref[PAD + h, PAD:PAD + W] = sum_ref[0, sl]
            xpad_ref[PAD + h, PAD:PAD + W] = max_ref[0, sl]

        # 2*K row-band reads; the K kw shifts are static lane slices of the
        # in-register band.  Two accumulators (one per conv input channel)
        # keep the add chains short so the VALU slots fill.
        acc_m = jnp.zeros((H, W), jnp.float32)
        acc_x = jnp.zeros((H, W), jnp.float32)
        for kh in range(K):
            band_m = mpad_ref[kh:kh + H, :]                    # (H, W + 2*PAD)
            band_x = xpad_ref[kh:kh + H, :]
            for kw in range(K):
                acc_m = acc_m + w_ref[kh * K + kw] * band_m[:, kw:kw + W]
                acc_x = acc_x + w_ref[K * K + kh * K + kw] * band_x[:, kw:kw + W]

        conv = acc_m + acc_x
        o_ref[0, 0] = (1.0 / (1.0 + jnp.exp(-conv))).astype(o_ref.dtype)


@functools.partial(jax.jit, static_argnames=("kernel_size",))
def spatial_attention_forward(x_nchw, conv_weight, *, kernel_size=7):
    """x_nchw: (N, C, H, W), any float dtype; conv_weight: (1, 2, K, K) OIHW, no bias."""
    N, C, H, W = x_nchw.shape
    K = kernel_size
    PAD = K // 2  # == 3 for the module's kernel_size=7 / padding=3
    HW = H * W

    # Stream x in its native dtype, lane-dense: collapsing (H, W) -> H*W is a
    # free minor-dim reshape of a contiguous NCHW array.
    x_flat = x_nchw.reshape(N, C, HW)

    # Fold the 1/C mean normalization into the avg-channel conv weights so the
    # kernel never rescales the sum accumulator.
    w = conv_weight.astype(jnp.float32).reshape(2, K * K)   # row 0: avg-ch, row 1: max-ch
    w = w * jnp.array([[1.0 / C], [1.0]], dtype=jnp.float32)
    w_flat = w.reshape(-1)                                   # (2*K*K,), order (ic, kh, kw)

    # Channel tile: ~12 MiB per streamed block (in the native dtype).  With
    # double buffering that is ~24 MiB of VMEM plus small scratch -- fits every
    # generation (incl. v7x's 64 MiB physical VMEM) while amortizing the
    # ~0.35 us per-grid-step pipeline overhead.  The second-to-last block dim
    # must be a multiple of 8 or equal to C.
    block_budget = 12 * 1024 * 1024
    itemsize = jnp.dtype(x_nchw.dtype).itemsize
    c_fit = max(1, block_budget // (HW * itemsize))
    if c_fit >= C:
        c_tile = C
    else:
        c_tile = min(C, max(8, (c_fit // 8) * 8))
    num_cb = pl.cdiv(C, c_tile)
    tail = C - (num_cb - 1) * c_tile

    kernel = functools.partial(
        _spatial_attention_kernel,
        C_TILE=c_tile, TAIL=tail, H=H, W=W, K=K, PAD=PAD)

    # NOTE(perf): further wins left on the table: batch-tiling several tiny
    # images per grid step, and a second "parallel" grid axis (row bands) so
    # v7x's two TensorCores stay busy when N == 1.
    return pl.pallas_call(
        kernel,
        out_shape=jax.ShapeDtypeStruct((N, 1, H, W), x_nchw.dtype),
        grid=(N, num_cb),
        in_specs=[
            pl.BlockSpec((1, c_tile, HW), lambda n, cb: (n, cb, 0)),
            pl.BlockSpec(memory_space=pltpu.MemorySpace.SMEM),   # weights resident in SMEM
        ],
        out_specs=pl.BlockSpec((1, 1, H, W), lambda n, cb: (n, 0, 0, 0)),
        scratch_shapes=[
            pltpu.VMEM((1, HW), jnp.float32),                    # channel-sum (flat, lane-dense)
            pltpu.VMEM((1, HW), jnp.float32),                    # channel-max (flat, lane-dense)
            pltpu.VMEM((H + 2 * PAD, W + 2 * PAD), jnp.float32),  # zero-padded mean map
            pltpu.VMEM((H + 2 * PAD, W + 2 * PAD), jnp.float32),  # zero-padded max map
        ],
        compiler_params=pltpu.CompilerParams(
            dimension_semantics=("parallel", "arbitrary"),
            vmem_limit_bytes=40 * 1024 * 1024),
    )(x_flat, w_flat)


def _reference_forward(x, conv_weight, *, kernel_size=7):
    """Pure-JAX reference mirroring the PyTorch module (computed in f32)."""
    pad = kernel_size // 2
    xf = x.astype(jnp.float32)
    avg = jnp.mean(xf, axis=1, keepdims=True)
    mx = jnp.max(xf, axis=1, keepdims=True)
    cat = jnp.concatenate([avg, mx], axis=1)
    conv = lax.conv_general_dilated(
        cat, conv_weight.astype(jnp.float32),
        window_strides=(1, 1), padding=((pad, pad), (pad, pad)),
        dimension_numbers=("NCHW", "OIHW", "NCHW"))
    return jax.nn.sigmoid(conv)


if __name__ == "__main__":
    N, C, H, W = 2, 4, 16, 16
    K = 7  # module default: kernel_size=7, padding=3

    key = jax.random.PRNGKey(0)
    kx, kw = jax.random.split(key, 2)
    x = jax.random.normal(kx, (N, C, H, W), dtype=jnp.float32)
    conv_weight = 0.1 * jax.random.normal(kw, (1, 2, K, K), dtype=jnp.float32)

    # f32 path: tight tolerance vs the pure-JAX reference.
    out = jax.block_until_ready(
        spatial_attention_forward(x, conv_weight, kernel_size=K))
    ref = _reference_forward(x, conv_weight, kernel_size=K)
    assert out.shape == (N, 1, H, W), out.shape
    assert jnp.allclose(out, ref, atol=1e-5, rtol=1e-5), \
        float(jnp.max(jnp.abs(out - ref)))

    # bf16 path: x streams through the kernel in bf16 (half the HBM bytes);
    # accumulation and the conv stay f32, only the final store is bf16.
    x_bf16 = x.astype(jnp.bfloat16)
    out_bf = jax.block_until_ready(
        spatial_attention_forward(x_bf16, conv_weight, kernel_size=K))
    ref_bf = _reference_forward(x_bf16, conv_weight, kernel_size=K)
    assert out_bf.dtype == jnp.bfloat16 and out_bf.shape == (N, 1, H, W)
    assert jnp.allclose(out_bf.astype(jnp.float32), ref_bf, atol=2e-2), \
        float(jnp.max(jnp.abs(out_bf.astype(jnp.float32) - ref_bf)))

    print("KERNEL_OK")
</pallas_src>

<mosaic_0001>
module attributes {stable_mosaic.version = 11 : i64} {
  func.func @_spatial_attention_kernel(%arg0: i32, %arg1: i32, %arg2: memref<1x4x256xf32, #tpu.memory_space<vmem>>, %arg3: memref<98xf32, #tpu.memory_space<smem>>, %arg4: memref<1x1x16x16xf32, #tpu.memory_space<vmem>>, %arg5: memref<1x256xf32, #tpu.memory_space<vmem>>, %arg6: memref<1x256xf32, #tpu.memory_space<vmem>>, %arg7: memref<22x22xf32, #tpu.memory_space<vmem>>, %arg8: memref<22x22xf32, #tpu.memory_space<vmem>>) attributes {dimension_semantics = [#tpu.dimension_semantics<parallel>, #tpu.dimension_semantics<arbitrary>], iteration_bounds = array<i64: 2, 1>, scalar_prefetch = 0 : i64, scratch_operands = 4 : i64, tpu.core_type = #tpu.core_type<tc>, window_params = [{transform_indices = @transform_0, window_bounds = array<i64: 1, 4, 256>}, {transform_indices = @transform_1, window_bounds = array<i64: 98>}, {transform_indices = @transform_2, window_bounds = array<i64: 1, 1, 16, 16>}]} {
    %c0_i32 = arith.constant 0 : i32
    %0 = arith.cmpi eq, %arg1, %c0_i32 : i32
    %1 = arith.extui %0 : i1 to i32
    %c0_i32_0 = arith.constant 0 : i32
    %2 = arith.cmpi ne, %1, %c0_i32_0 : i32
    scf.if %2 {
      %cst_14 = arith.constant 0.000000e+00 : f32
      %18 = vector.broadcast %cst_14 : f32 to vector<1x256xf32>
      %c0_15 = arith.constant 0 : index
      %c0_16 = arith.constant 0 : index
      %19 = vector.load %arg5[%c0_15, %c0_16] : memref<1x256xf32, #tpu.memory_space<vmem>>, vector<1x256xf32>
      tpu.vector_store %arg5[%c0_15, %c0_16], %18 {strides = array<i32>} : memref<1x256xf32, #tpu.memory_space<vmem>>, vector<1x256xf32>,
      %cst_17 = arith.constant 0xFF800000 : f32
      %20 = vector.broadcast %cst_17 : f32 to vector<1x256xf32>
      %c0_18 = arith.constant 0 : index
      %c0_19 = arith.constant 0 : index
      %21 = vector.load %arg6[%c0_18, %c0_19] : memref<1x256xf32, #tpu.memory_space<vmem>>, vector<1x256xf32>
      tpu.vector_store %arg6[%c0_18, %c0_19], %20 {strides = array<i32>} : memref<1x256xf32, #tpu.memory_space<vmem>>, vector<1x256xf32>,
    } else {
    }
    %c0 = arith.constant 0 : index
    %c0_1 = arith.constant 0 : index
    %c0_2 = arith.constant 0 : index
    %3 = vector.load %arg2[%c0, %c0_1, %c0_2] : memref<1x4x256xf32, #tpu.memory_space<vmem>>, vector<1x4x256xf32>
    %4 = vector.shape_cast %3 : vector<1x4x256xf32> to vector<4x256xf32>
    %c0_3 = arith.constant 0 : index
    %c0_4 = arith.constant 0 : index
    %5 = vector.load %arg5[%c0_3, %c0_4] : memref<1x256xf32, #tpu.memory_space<vmem>>, vector<1x256xf32>
    %cst = arith.constant dense<0.000000e+00> : vector<256xf32>
    %6 = vector.multi_reduction <add>, %4, %cst [0] : vector<4x256xf32> to vector<256xf32>
    %7 = vector.shape_cast %6 : vector<256xf32> to vector<1x256xf32>
    %8 = arith.addf %5, %7 : vector<1x256xf32>
    %c0_5 = arith.constant 0 : index
    %c0_6 = arith.constant 0 : index
    %9 = vector.load %arg5[%c0_5, %c0_6] : memref<1x256xf32, #tpu.memory_space<vmem>>, vector<1x256xf32>
    tpu.vector_store %arg5[%c0_5, %c0_6], %8 {strides = array<i32>} : memref<1x256xf32, #tpu.memory_space<vmem>>, vector<1x256xf32>,
    %c0_7 = arith.constant 0 : index
    %c0_8 = arith.constant 0 : index
    %10 = vector.load %arg6[%c0_7, %c0_8] : memref<1x256xf32, #tpu.memory_space<vmem>>, vector<1x256xf32>
    %cst_9 = arith.constant dense<0xFF800000> : vector<256xf32>
    %11 = vector.multi_reduction <maximumf>, %4, %cst_9 [0] : vector<4x256xf32> to vector<256xf32>
    %12 = vector.shape_cast %11 : vector<256xf32> to vector<1x256xf32>
    %13 = arith.maximumf %10, %12 : vector<1x256xf32>
    %c0_10 = arith.constant 0 : index
    %c0_11 = arith.constant 0 : index
    %14 = vector.load %arg6[%c0_10, %c0_11] : memref<1x256xf32, #tpu.memory_space<vmem>>, vector<1x256xf32>
    tpu.vector_store %arg6[%c0_10, %c0_11], %13 {strides = array<i32>} : memref<1x256xf32, #tpu.memory_space<vmem>>, vector<1x256xf32>,
    %c0_i32_12 = arith.constant 0 : i32
    %15 = arith.cmpi eq, %arg1, %c0_i32_12 : i32
    %16 = arith.extui %15 : i1 to i32
    %c0_i32_13 = arith.constant 0 : i32
    %17 = arith.cmpi ne, %16, %c0_i32_13 : i32
    scf.if %17 {
      %cst_14 = arith.constant 0.000000e+00 : f32
      %18 = vector.broadcast %cst_14 : f32 to vector<22x22xf32>
      %c0_15 = arith.constant 0 : index
      %c0_16 = arith.constant 0 : index
      %19 = vector.load %arg7[%c0_15, %c0_16] : memref<22x22xf32, #tpu.memory_space<vmem>>, vector<22x22xf32>
      tpu.vector_store %arg7[%c0_15, %c0_16], %18 {strides = array<i32>} : memref<22x22xf32, #tpu.memory_space<vmem>>, vector<22x22xf32>,
      %cst_17 = arith.constant 0.000000e+00 : f32
      %20 = vector.broadcast %cst_17 : f32 to vector<22x22xf32>
      %c0_18 = arith.constant 0 : index
      %c0_19 = arith.constant 0 : index
      %21 = vector.load %arg8[%c0_18, %c0_19] : memref<22x22xf32, #tpu.memory_space<vmem>>, vector<22x22xf32>
      tpu.vector_store %arg8[%c0_18, %c0_19], %20 {strides = array<i32>} : memref<22x22xf32, #tpu.memory_space<vmem>>, vector<22x22xf32>,
      %c0_20 = arith.constant 0 : index
      %c0_21 = arith.constant 0 : index
      %22 = vector.load %arg5[%c0_20, %c0_21] : memref<1x256xf32, #tpu.memory_space<vmem>>, vector<1x16xf32>
      %23 = vector.shape_cast %22 : vector<1x16xf32> to vector<16xf32>
      %c3 = arith.constant 3 : index
      %c3_22 = arith.constant 3 : index
      %24 = vector.load %arg7[%c3, %c3_22] : memref<22x22xf32, #tpu.memory_space<vmem>>, vector<1x16xf32>
      %25 = vector.shape_cast %24 : vector<1x16xf32> to vector<16xf32>
      %26 = vector.shape_cast %23 : vector<16xf32> to vector<1x16xf32>
      tpu.vector_store %arg7[%c3, %c3_22], %26 {strides = array<i32>} : memref<22x22xf32, #tpu.memory_space<vmem>>, vector<1x16xf32>,
      %c0_23 = arith.constant 0 : index
      %c0_24 = arith.constant 0 : index
      %27 = vector.load %arg6[%c0_23, %c0_24] : memref<1x256xf32, #tpu.memory_space<vmem>>, vector<1x16xf32>
      %28 = vector.shape_cast %27 : vector<1x16xf32> to vector<16xf32>
      %c3_25 = arith.constant 3 : index
      %c3_26 = arith.constant 3 : index
      %29 = vector.load %arg8[%c3_25, %c3_26] : memref<22x22xf32, #tpu.memory_space<vmem>>, vector<1x16xf32>
      %30 = vector.shape_cast %29 : vector<1x16xf32> to vector<16xf32>
      %31 = vector.shape_cast %28 : vector<16xf32> to vector<1x16xf32>
      tpu.vector_store %arg8[%c3_25, %c3_26], %31 {strides = array<i32>} : memref<22x22xf32, #tpu.memory_space<vmem>>, vector<1x16xf32>,
      %c0_27 = arith.constant 0 : index
      %c16 = arith.constant 16 : index
      %32 = vector.load %arg5[%c0_27, %c16] : memref<1x256xf32, #tpu.memory_space<vmem>>, vector<1x16xf32>
      %33 = vector.shape_cast %32 : vector<1x16xf32> to vector<16xf32>
      %c4 = arith.constant 4 : index
      %c3_28 = arith.constant 3 : index
      %34 = vector.load %arg7[%c4, %c3_28] : memref<22x22xf32, #tpu.memory_space<vmem>>, vector<1x16xf32>
      %35 = vector.shape_cast %34 : vector<1x16xf32> to vector<16xf32>
      %36 = vector.shape_cast %33 : vector<16xf32> to vector<1x16xf32>
      tpu.vector_store %arg7[%c4, %c3_28], %36 {strides = array<i32>} : memref<22x22xf32, #tpu.memory_space<vmem>>, vector<1x16xf32>,
      %c0_29 = arith.constant 0 : index
      %c16_30 = arith.constant 16 : index
      %37 = vector.load %arg6[%c0_29, %c16_30] : memref<1x256xf32, #tpu.memory_space<vmem>>, vector<1x16xf32>
      %38 = vector.shape_cast %37 : vector<1x16xf32> to vector<16xf32>
      %c4_31 = arith.constant 4 : index
      %c3_32 = arith.constant 3 : index
      %39 = vector.load %arg8[%c4_31, %c3_32] : memref<22x22xf32, #tpu.memory_space<vmem>>, vector<1x16xf32>
      %40 = vector.shape_cast %39 : vector<1x16xf32> to vector<16xf32>
      %41 = vector.shape_cast %38 : vector<16xf32> to vector<1x16xf32>
      tpu.vector_store %arg8[%c4_31, %c3_32], %41 {strides = array<i32>} : memref<22x22xf32, #tpu.memory_space<vmem>>, vector<1x16xf32>,
      %c0_33 = arith.constant 0 : index
      %c32 = arith.constant 32 : index
      %42 = vector.load %arg5[%c0_33, %c32] : memref<1x256xf32, #tpu.memory_space<vmem>>, vector<1x16xf32>
      %43 = vector.shape_cast %42 : vector<1x16xf32> to vector<16xf32>
      %c5 = arith.constant 5 : index
      %c3_34 = arith.constant 3 : index
      %44 = vector.load %arg7[%c5, %c3_34] : memref<22x22xf32, #tpu.memory_space<vmem>>, vector<1x16xf32>
      %45 = vector.shape_cast %44 : vector<1x16xf32> to vector<16xf32>
      %46 = vector.shape_cast %43 : vector<16xf32> to vector<1x16xf32>
      tpu.vector_store %arg7[%c5, %c3_34], %46 {strides = array<i32>} : memref<22x22xf32, #tpu.memory_space<vmem>>, vector<1x16xf32>,
      %c0_35 = arith.constant 0 : index
      %c32_36 = arith.constant 32 : index
      %47 = vector.load %arg6[%c0_35, %c32_36] : memref<1x256xf32, #tpu.memory_space<vmem>>, vector<1x16xf32>
      %48 = vector.shape_cast %47 : vector<1x16xf32> to vector<16xf32>
      %c5_37 = arith.constant 5 : index
      %c3_38 = arith.constant 3 : index
      %49 = vector.load %arg8[%c5_37, %c3_38] : memref<22x22xf32, #tpu.memory_space<vmem>>, vector<1x16xf32>
      %50 = vector.shape_cast %49 : vector<1x16xf32> to vector<16xf32>
      %51 = vector.shape_cast %48 : vector<16xf32> to vector<1x16xf32>
      tpu.vector_store %arg8[%c5_37, %c3_38], %51 {strides = array<i32>} : memref<22x22xf32, #tpu.memory_space<vmem>>, vector<1x16xf32>,
      %c0_39 = arith.constant 0 : index
      %c48 = arith.constant 48 : index
      %52 = vector.load %arg5[%c0_39, %c48] : memref<1x256xf32, #tpu.memory_space<vmem>>, vector<1x16xf32>
      %53 = vector.shape_cast %52 : vector<1x16xf32> to vector<16xf32>
      %c6 = arith.constant 6 : index
      %c3_40 = arith.constant 3 : index
      %54 = vector.load %arg7[%c6, %c3_40] : memref<22x22xf32, #tpu.memory_space<vmem>>, vector<1x16xf32>
      %55 = vector.shape_cast %54 : vector<1x16xf32> to vector<16xf32>
      %56 = vector.shape_cast %53 : vector<16xf32> to vector<1x16xf32>
      tpu.vector_store %arg7[%c6, %c3_40], %56 {strides = array<i32>} : memref<22x22xf32, #tpu.memory_space<vmem>>, vector<1x16xf32>,
      %c0_41 = arith.constant 0 : index
      %c48_42 = arith.constant 48 : index
      %57 = vector.load %arg6[%c0_41, %c48_42] : memref<1x256xf32, #tpu.memory_space<vmem>>, vector<1x16xf32>
      %58 = vector.shape_cast %57 : vector<1x16xf32> to vector<16xf32>
      %c6_43 = arith.constant 6 : index
      %c3_44 = arith.constant 3 : index
      %59 = vector.load %arg8[%c6_43, %c3_44] : memref<22x22xf32, #tpu.memory_space<vmem>>, vector<1x16xf32>
      %60 = vector.shape_cast %59 : vector<1x16xf32> to vector<16xf32>
      %61 = vector.shape_cast %58 : vector<16xf32> to vector<1x16xf32>
      tpu.vector_store %arg8[%c6_43, %c3_44], %61 {strides = array<i32>} : memref<22x22xf32, #tpu.memory_space<vmem>>, vector<1x16xf32>,
      %c0_45 = arith.constant 0 : index
      %c64 = arith.constant 64 : index
      %62 = vector.load %arg5[%c0_45, %c64] : memref<1x256xf32, #tpu.memory_space<vmem>>, vector<1x16xf32>
      %63 = vector.shape_cast %62 : vector<1x16xf32> to vector<16xf32>
      %c7 = arith.constant 7 : index
      %c3_46 = arith.constant 3 : index
      %64 = vector.load %arg7[%c7, %c3_46] : memref<22x22xf32, #tpu.memory_space<vmem>>, vector<1x16xf32>
      %65 = vector.shape_cast %64 : vector<1x16xf32> to vector<16xf32>
      %66 = vector.shape_cast %63 : vector<16xf32> to vector<1x16xf32>
      tpu.vector_store %arg7[%c7, %c3_46], %66 {strides = array<i32>} : memref<22x22xf32, #tpu.memory_space<vmem>>, vector<1x16xf32>,
      %c0_47 = arith.constant 0 : index
      %c64_48 = arith.constant 64 : index
      %67 = vector.load %arg6[%c0_47, %c64_48] : memref<1x256xf32, #tpu.memory_space<vmem>>, vector<1x16xf32>
      %68 = vector.shape_cast %67 : vector<1x16xf32> to vector<16xf32>
      %c7_49 = arith.constant 7 : index
      %c3_50 = arith.constant 3 : index
      %69 = vector.load %arg8[%c7_49, %c3_50] : memref<22x22xf32, #tpu.memory_space<vmem>>, vector<1x16xf32>
      %70 = vector.shape_cast %69 : vector<1x16xf32> to vector<16xf32>
      %71 = vector.shape_cast %68 : vector<16xf32> to vector<1x16xf32>
      tpu.vector_store %arg8[%c7_49, %c3_50], %71 {strides = array<i32>} : memref<22x22xf32, #tpu.memory_space<vmem>>, vector<1x16xf32>,
      %c0_51 = arith.constant 0 : index
      %c80 = arith.constant 80 : index
      %72 = vector.load %arg5[%c0_51, %c80] : memref<1x256xf32, #tpu.memory_space<vmem>>, vector<1x16xf32>
      %73 = vector.shape_cast %72 : vector<1x16xf32> to vector<16xf32>
      %c8 = arith.constant 8 : index
      %c3_52 = arith.constant 3 : index
      %74 = vector.load %arg7[%c8, %c3_52] : memref<22x22xf32, #tpu.memory_space<vmem>>, vector<1x16xf32>
      %75 = vector.shape_cast %74 : vector<1x16xf32> to vector<16xf32>
      %76 = vector.shape_cast %73 : vector<16xf32> to vector<1x16xf32>
      tpu.vector_store %arg7[%c8, %c3_52], %76 {strides = array<i32>} : memref<22x22xf32, #tpu.memory_space<vmem>>, vector<1x16xf32>,
      %c0_53 = arith.constant 0 : index
      %c80_54 = arith.constant 80 : index
      %77 = vector.load %arg6[%c0_53, %c80_54] : memref<1x256xf32, #tpu.memory_space<vmem>>, vector<1x16xf32>
      %78 = vector.shape_cast %77 : vector<1x16xf32> to vector<16xf32>
      %c8_55 = arith.constant 8 : index
      %c3_56 = arith.constant 3 : index
      %79 = vector.load %arg8[%c8_55, %c3_56] : memref<22x22xf32, #tpu.memory_space<vmem>>, vector<1x16xf32>
      %80 = vector.shape_cast %79 : vector<1x16xf32> to vector<16xf32>
      %81 = vector.shape_cast %78 : vector<16xf32> to vector<1x16xf32>
      tpu.vector_store %arg8[%c8_55, %c3_56], %81 {strides = array<i32>} : memref<22x22xf32, #tpu.memory_space<vmem>>, vector<1x16xf32>,
      %c0_57 = arith.constant 0 : index
      %c96 = arith.constant 96 : index
      %82 = vector.load %arg5[%c0_57, %c96] : memref<1x256xf32, #tpu.memory_space<vmem>>, vector<1x16xf32>
      %83 = vector.shape_cast %82 : vector<1x16xf32> to vector<16xf32>
      %c9 = arith.constant 9 : index
      %c3_58 = arith.constant 3 : index
      %84 = vector.load %arg7[%c9, %c3_58] : memref<22x22xf32, #tpu.memory_space<vmem>>, vector<1x16xf32>
      %85 = vector.shape_cast %84 : vector<1x16xf32> to vector<16xf32>
      %86 = vector.shape_cast %83 : vector<16xf32> to vector<1x16xf32>
      tpu.vector_store %arg7[%c9, %c3_58], %86 {strides = array<i32>} : memref<22x22xf32, #tpu.memory_space<vmem>>, vector<1x16xf32>,
      %c0_59 = arith.constant 0 : index
      %c96_60 = arith.constant 96 : index
      %87 = vector.load %arg6[%c0_59, %c96_60] : memref<1x256xf32, #tpu.memory_space<vmem>>, vector<1x16xf32>
      %88 = vector.shape_cast %87 : vector<1x16xf32> to vector<16xf32>
      %c9_61 = arith.constant 9 : index
      %c3_62 = arith.constant 3 : index
      %89 = vector.load %arg8[%c9_61, %c3_62] : memref<22x22xf32, #tpu.memory_space<vmem>>, vector<1x16xf32>
      %90 = vector.shape_cast %89 : vector<1x16xf32> to vector<16xf32>
      %91 = vector.shape_cast %88 : vector<16xf32> to vector<1x16xf32>
      tpu.vector_store %arg8[%c9_61, %c3_62], %91 {strides = array<i32>} : memref<22x22xf32, #tpu.memory_space<vmem>>, vector<1x16xf32>,
      %c0_63 = arith.constant 0 : index
      %c112 = arith.constant 112 : index
      %92 = vector.load %arg5[%c0_63, %c112] : memref<1x256xf32, #tpu.memory_space<vmem>>, vector<1x16xf32>
      %93 = vector.shape_cast %92 : vector<1x16xf32> to vector<16xf32>
      %c10 = arith.constant 10 : index
      %c3_64 = arith.constant 3 : index
      %94 = vector.load %arg7[%c10, %c3_64] : memref<22x22xf32, #tpu.memory_space<vmem>>, vector<1x16xf32>
      %95 = vector.shape_cast %94 : vector<1x16xf32> to vector<16xf32>
      %96 = vector.shape_cast %93 : vector<16xf32> to vector<1x16xf32>
      tpu.vector_store %arg7[%c10, %c3_64], %96 {strides = array<i32>} : memref<22x22xf32, #tpu.memory_space<vmem>>, vector<1x16xf32>,
      %c0_65 = arith.constant 0 : index
      %c112_66 = arith.constant 112 : index
      %97 = vector.load %arg6[%c0_65, %c112_66] : memref<1x256xf32, #tpu.memory_space<vmem>>, vector<1x16xf32>
      %98 = vector.shape_cast %97 : vector<1x16xf32> to vector<16xf32>
      %c10_67 = arith.constant 10 : index
      %c3_68 = arith.constant 3 : index
      %99 = vector.load %arg8[%c10_67, %c3_68] : memref<22x22xf32, #tpu.memory_space<vmem>>, vector<1x16xf32>
      %100 = vector.shape_cast %99 : vector<1x16xf32> to vector<16xf32>
      %101 = vector.shape_cast %98 : vector<16xf32> to vector<1x16xf32>
      tpu.vector_store %arg8[%c10_67, %c3_68], %101 {strides = array<i32>} : memref<22x22xf32, #tpu.memory_space<vmem>>, vector<1x16xf32>,
      %c0_69 = arith.constant 0 : index
      %c128 = arith.constant 128 : index
      %102 = vector.load %arg5[%c0_69, %c128] : memref<1x256xf32, #tpu.memory_space<vmem>>, vector<1x16xf32>
      %103 = vector.shape_cast %102 : vector<1x16xf32> to vector<16xf32>
      %c11 = arith.constant 11 : index
      %c3_70 = arith.constant 3 : index
      %104 = vector.load %arg7[%c11, %c3_70] : memref<22x22xf32, #tpu.memory_space<vmem>>, vector<1x16xf32>
      %105 = vector.shape_cast %104 : vector<1x16xf32> to vector<16xf32>
      %106 = vector.shape_cast %103 : vector<16xf32> to vector<1x16xf32>
      tpu.vector_store %arg7[%c11, %c3_70], %106 {strides = array<i32>} : memref<22x22xf32, #tpu.memory_space<vmem>>, vector<1x16xf32>,
      %c0_71 = arith.constant 0 : index
      %c128_72 = arith.constant 128 : index
      %107 = vector.load %arg6[%c0_71, %c128_72] : memref<1x256xf32, #tpu.memory_space<vmem>>, vector<1x16xf32>
      %108 = vector.shape_cast %107 : vector<1x16xf32> to vector<16xf32>
      %c11_73 = arith.constant 11 : index
      %c3_74 = arith.constant 3 : index
      %109 = vector.load %arg8[%c11_73, %c3_74] : memref<22x22xf32, #tpu.memory_space<vmem>>, vector<1x16xf32>
      %110 = vector.shape_cast %109 : vector<1x16xf32> to vector<16xf32>
      %111 = vector.shape_cast %108 : vector<16xf32> to vector<1x16xf32>
      tpu.vector_store %arg8[%c11_73, %c3_74], %111 {strides = array<i32>} : memref<22x22xf32, #tpu.memory_space<vmem>>, vector<1x16xf32>,
      %c0_75 = arith.constant 0 : index
      %c144 = arith.constant 144 : index
      %112 = vector.load %arg5[%c0_75, %c144] : memref<1x256xf32, #tpu.memory_space<vmem>>, vector<1x16xf32>
      %113 = vector.shape_cast %112 : vector<1x16xf32> to vector<16xf32>
      %c12 = arith.constant 12 : index
      %c3_76 = arith.constant 3 : index
      %114 = vector.load %arg7[%c12, %c3_76] : memref<22x22xf32, #tpu.memory_space<vmem>>, vector<1x16xf32>
      %115 = vector.shape_cast %114 : vector<1x16xf32> to vector<16xf32>
      %116 = vector.shape_cast %113 : vector<16xf32> to vector<1x16xf32>
      tpu.vector_store %arg7[%c12, %c3_76], %116 {strides = array<i32>} : memref<22x22xf32, #tpu.memory_space<vmem>>, vector<1x16xf32>,
      %c0_77 = arith.constant 0 : index
      %c144_78 = arith.constant 144 : index
      %117 = vector.load %arg6[%c0_77, %c144_78] : memref<1x256xf32, #tpu.memory_space<vmem>>, vector<1x16xf32>
      %118 = vector.shape_cast %117 : vector<1x16xf32> to vector<16xf32>
      %c12_79 = arith.constant 12 : index
      %c3_80 = arith.constant 3 : index
      %119 = vector.load %arg8[%c12_79, %c3_80] : memref<22x22xf32, #tpu.memory_space<vmem>>, vector<1x16xf32>
      %120 = vector.shape_cast %119 : vector<1x16xf32> to vector<16xf32>
      %121 = vector.shape_cast %118 : vector<16xf32> to vector<1x16xf32>
      tpu.vector_store %arg8[%c12_79, %c3_80], %121 {strides = array<i32>} : memref<22x22xf32, #tpu.memory_space<vmem>>, vector<1x16xf32>,
      %c0_81 = arith.constant 0 : index
      %c160 = arith.constant 160 : index
      %122 = vector.load %arg5[%c0_81, %c160] : memref<1x256xf32, #tpu.memory_space<vmem>>, vector<1x16xf32>
      %123 = vector.shape_cast %122 : vector<1x16xf32> to vector<16xf32>
      %c13 = arith.constant 13 : index
      %c3_82 = arith.constant 3 : index
      %124 = vector.load %arg7[%c13, %c3_82] : memref<22x22xf32, #tpu.memory_space<vmem>>, vector<1x16xf32>
      %125 = vector.shape_cast %124 : vector<1x16xf32> to vector<16xf32>
      %126 = vector.shape_cast %123 : vector<16xf32> to vector<1x16xf32>
      tpu.vector_store %arg7[%c13, %c3_82], %126 {strides = array<i32>} : memref<22x22xf32, #tpu.memory_space<vmem>>, vector<1x16xf32>,
      %c0_83 = arith.constant 0 : index
      %c160_84 = arith.constant 160 : index
      %127 = vector.load %arg6[%c0_83, %c160_84] : memref<1x256xf32, #tpu.memory_space<vmem>>, vector<1x16xf32>
      %128 = vector.shape_cast %127 : vector<1x16xf32> to vector<16xf32>
      %c13_85 = arith.constant 13 : index
      %c3_86 = arith.constant 3 : index
      %129 = vector.load %arg8[%c13_85, %c3_86] : memref<22x22xf32, #tpu.memory_space<vmem>>, vector<1x16xf32>
      %130 = vector.shape_cast %129 : vector<1x16xf32> to vector<16xf32>
      %131 = vector.shape_cast %128 : vector<16xf32> to vector<1x16xf32>
      tpu.vector_store %arg8[%c13_85, %c3_86], %131 {strides = array<i32>} : memref<22x22xf32, #tpu.memory_space<vmem>>, vector<1x16xf32>,
      %c0_87 = arith.constant 0 : index
      %c176 = arith.constant 176 : index
      %132 = vector.load %arg5[%c0_87, %c176] : memref<1x256xf32, #tpu.memory_space<vmem>>, vector<1x16xf32>
      %133 = vector.shape_cast %132 : vector<1x16xf32> to vector<16xf32>
      %c14 = arith.constant 14 : index
      %c3_88 = arith.constant 3 : index
      %134 = vector.load %arg7[%c14, %c3_88] : memref<22x22xf32, #tpu.memory_space<vmem>>, vector<1x16xf32>
      %135 = vector.shape_cast %134 : vector<1x16xf32> to vector<16xf32>
      %136 = vector.shape_cast %133 : vector<16xf32> to vector<1x16xf32>
      tpu.vector_store %arg7[%c14, %c3_88], %136 {strides = array<i32>} : memref<22x22xf32, #tpu.memory_space<vmem>>, vector<1x16xf32>,
      %c0_89 = arith.constant 0 : index
      %c176_90 = arith.constant 176 : index
      %137 = vector.load %arg6[%c0_89, %c176_90] : memref<1x256xf32, #tpu.memory_space<vmem>>, vector<1x16xf32>
      %138 = vector.shape_cast %137 : vector<1x16xf32> to vector<16xf32>
      %c14_91 = arith.constant 14 : index
      %c3_92 = arith.constant 3 : index
      %139 = vector.load %arg8[%c14_91, %c3_92] : memref<22x22xf32, #tpu.memory_space<vmem>>, vector<1x16xf32>
      %140 = vector.shape_cast %139 : vector<1x16xf32> to vector<16xf32>
      %141 = vector.shape_cast %138 : vector<16xf32> to vector<1x16xf32>
      tpu.vector_store %arg8[%c14_91, %c3_92], %141 {strides = array<i32>} : memref<22x22xf32, #tpu.memory_space<vmem>>, vector<1x16xf32>,
      %c0_93 = arith.constant 0 : index
      %c192 = arith.constant 192 : index
      %142 = vector.load %arg5[%c0_93, %c192] : memref<1x256xf32, #tpu.memory_space<vmem>>, vector<1x16xf32>
      %143 = vector.shape_cast %142 : vector<1x16xf32> to vector<16xf32>
      %c15 = arith.constant 15 : index
      %c3_94 = arith.constant 3 : index
      %144 = vector.load %arg7[%c15, %c3_94] : memref<22x22xf32, #tpu.memory_space<vmem>>, vector<1x16xf32>
      %145 = vector.shape_cast %144 : vector<1x16xf32> to vector<16xf32>
      %146 = vector.shape_cast %143 : vector<16xf32> to vector<1x16xf32>
      tpu.vector_store %arg7[%c15, %c3_94], %146 {strides = array<i32>} : memref<22x22xf32, #tpu.memory_space<vmem>>, vector<1x16xf32>,
      %c0_95 = arith.constant 0 : index
      %c192_96 = arith.constant 192 : index
      %147 = vector.load %arg6[%c0_95, %c192_96] : memref<1x256xf32, #tpu.memory_space<vmem>>, vector<1x16xf32>
      %148 = vector.shape_cast %147 : vector<1x16xf32> to vector<16xf32>
      %c15_97 = arith.constant 15 : index
      %c3_98 = arith.constant 3 : index
      %149 = vector.load %arg8[%c15_97, %c3_98] : memref<22x22xf32, #tpu.memory_space<vmem>>, vector<1x16xf32>
      %150 = vector.shape_cast %149 : vector<1x16xf32> to vector<16xf32>
      %151 = vector.shape_cast %148 : vector<16xf32> to vector<1x16xf32>
      tpu.vector_store %arg8[%c15_97, %c3_98], %151 {strides = array<i32>} : memref<22x22xf32, #tpu.memory_space<vmem>>, vector<1x16xf32>,
      %c0_99 = arith.constant 0 : index
      %c208 = arith.constant 208 : index
      %152 = vector.load %arg5[%c0_99, %c208] : memref<1x256xf32, #tpu.memory_space<vmem>>, vector<1x16xf32>
      %153 = vector.shape_cast %152 : vector<1x16xf32> to vector<16xf32>
      %c16_100 = arith.constant 16 : index
      %c3_101 = arith.constant 3 : index
      %154 = vector.load %arg7[%c16_100, %c3_101] : memref<22x22xf32, #tpu.memory_space<vmem>>, vector<1x16xf32>
      %155 = vector.shape_cast %154 : vector<1x16xf32> to vector<16xf32>
      %156 = vector.shape_cast %153 : vector<16xf32> to vector<1x16xf32>
      tpu.vector_store %arg7[%c16_100, %c3_101], %156 {strides = array<i32>} : memref<22x22xf32, #tpu.memory_space<vmem>>, vector<1x16xf32>,
      %c0_102 = arith.constant 0 : index
      %c208_103 = arith.constant 208 : index
      %157 = vector.load %arg6[%c0_102, %c208_103] : memref<1x256xf32, #tpu.memory_space<vmem>>, vector<1x16xf32>
      %158 = vector.shape_cast %157 : vector<1x16xf32> to vector<16xf32>
      %c16_104 = arith.constant 16 : index
      %c3_105 = arith.constant 3 : index
      %159 = vector.load %arg8[%c16_104, %c3_105] : memref<22x22xf32, #tpu.memory_space<vmem>>, vector<1x16xf32>
      %160 = vector.shape_cast %159 : vector<1x16xf32> to vector<16xf32>
      %161 = vector.shape_cast %158 : vector<16xf32> to vector<1x16xf32>
      tpu.vector_store %arg8[%c16_104, %c3_105], %161 {strides = array<i32>} : memref<22x22xf32, #tpu.memory_space<vmem>>, vector<1x16xf32>,
      %c0_106 = arith.constant 0 : index
      %c224 = arith.constant 224 : index
      %162 = vector.load %arg5[%c0_106, %c224] : memref<1x256xf32, #tpu.memory_space<vmem>>, vector<1x16xf32>
      %163 = vector.shape_cast %162 : vector<1x16xf32> to vector<16xf32>
      %c17 = arith.constant 17 : index
      %c3_107 = arith.constant 3 : index
      %164 = vector.load %arg7[%c17, %c3_107] : memref<22x22xf32, #tpu.memory_space<vmem>>, vector<1x16xf32>
      %165 = vector.shape_cast %164 : vector<1x16xf32> to vector<16xf32>
      %166 = vector.shape_cast %163 : vector<16xf32> to vector<1x16xf32>
      tpu.vector_store %arg7[%c17, %c3_107], %166 {strides = array<i32>} : memref<22x22xf32, #tpu.memory_space<vmem>>, vector<1x16xf32>,
      %c0_108 = arith.constant 0 : index
      %c224_109 = arith.constant 224 : index
      %167 = vector.load %arg6[%c0_108, %c224_109] : memref<1x256xf32, #tpu.memory_space<vmem>>, vector<1x16xf32>
      %168 = vector.shape_cast %167 : vector<1x16xf32> to vector<16xf32>
      %c17_110 = arith.constant 17 : index
      %c3_111 = arith.constant 3 : index
      %169 = vector.load %arg8[%c17_110, %c3_111] : memref<22x22xf32, #tpu.memory_space<vmem>>, vector<1x16xf32>
      %170 = vector.shape_cast %169 : vector<1x16xf32> to vector<16xf32>
      %171 = vector.shape_cast %168 : vector<16xf32> to vector<1x16xf32>
      tpu.vector_store %arg8[%c17_110, %c3_111], %171 {strides = array<i32>} : memref<22x22xf32, #tpu.memory_space<vmem>>, vector<1x16xf32>,
      %c0_112 = arith.constant 0 : index
      %c240 = arith.constant 240 : index
      %172 = vector.load %arg5[%c0_112, %c240] : memref<1x256xf32, #tpu.memory_space<vmem>>, vector<1x16xf32>
      %173 = vector.shape_cast %172 : vector<1x16xf32> to vector<16xf32>
      %c18 = arith.constant 18 : index
      %c3_113 = arith.constant 3 : index
      %174 = vector.load %arg7[%c18, %c3_113] : memref<22x22xf32, #tpu.memory_space<vmem>>, vector<1x16xf32>
      %175 = vector.shape_cast %174 : vector<1x16xf32> to vector<16xf32>
      %176 = vector.shape_cast %173 : vector<16xf32> to vector<1x16xf32>
      tpu.vector_store %arg7[%c18, %c3_113], %176 {strides = array<i32>} : memref<22x22xf32, #tpu.memory_space<vmem>>, vector<1x16xf32>,
      %c0_114 = arith.constant 0 : index
      %c240_115 = arith.constant 240 : index
      %177 = vector.load %arg6[%c0_114, %c240_115] : memref<1x256xf32, #tpu.memory_space<vmem>>, vector<1x16xf32>
      %178 = vector.shape_cast %177 : vector<1x16xf32> to vector<16xf32>
      %c18_116 = arith.constant 18 : index
      %c3_117 = arith.constant 3 : index
      %179 = vector.load %arg8[%c18_116, %c3_117] : memref<22x22xf32, #tpu.memory_space<vmem>>, vector<1x16xf32>
      %180 = vector.shape_cast %179 : vector<1x16xf32> to vector<16xf32>
      %181 = vector.shape_cast %178 : vector<16xf32> to vector<1x16xf32>
      tpu.vector_store %arg8[%c18_116, %c3_117], %181 {strides = array<i32>} : memref<22x22xf32, #tpu.memory_space<vmem>>, vector<1x16xf32>,
      %cst_118 = arith.constant 0.000000e+00 : f32
      %182 = vector.broadcast %cst_118 : f32 to vector<16x16xf32>
      %cst_119 = arith.constant 0.000000e+00 : f32
      %183 = vector.broadcast %cst_119 : f32 to vector<16x16xf32>
      %c0_120 = arith.constant 0 : index
      %c0_121 = arith.constant 0 : index
      %184 = vector.load %arg7[%c0_120, %c0_121] : memref<22x22xf32, #tpu.memory_space<vmem>>, vector<16x22xf32>
      %c0_122 = arith.constant 0 : index
      %c0_123 = arith.constant 0 : index
      %185 = vector.load %arg8[%c0_122, %c0_123] : memref<22x22xf32, #tpu.memory_space<vmem>>, vector<16x22xf32>
      %c0_124 = arith.constant 0 : index
      %186 = memref.load %arg3[%c0_124] : memref<98xf32, #tpu.memory_space<smem>>
      %187 = vector.extract_strided_slice %184 {offsets = [0, 0], sizes = [16, 16], strides = [1, 1]} : vector<16x22xf32> to vector<16x16xf32>
      %188 = vector.broadcast %186 : f32 to vector<16x16xf32>
      %189 = arith.mulf %188, %187 : vector<16x16xf32>
      %190 = arith.addf %182, %189 : vector<16x16xf32>
      %c49 = arith.constant 49 : index
      %191 = memref.load %arg3[%c49] : memref<98xf32, #tpu.memory_space<smem>>
      %192 = vector.extract_strided_slice %185 {offsets = [0, 0], sizes = [16, 16], strides = [1, 1]} : vector<16x22xf32> to vector<16x16xf32>
      %193 = vector.broadcast %191 : f32 to vector<16x16xf32>
      %194 = arith.mulf %193, %192 : vector<16x16xf32>
      %195 = arith.addf %183, %194 : vector<16x16xf32>
      %c1 = arith.constant 1 : index
      %196 = memref.load %arg3[%c1] : memref<98xf32, #tpu.memory_space<smem>>
      %197 = vector.extract_strided_slice %184 {offsets = [0, 1], sizes = [16, 16], strides = [1, 1]} : vector<16x22xf32> to vector<16x16xf32>
      %198 = vector.broadcast %196 : f32 to vector<16x16xf32>
      %199 = arith.mulf %198, %197 : vector<16x16xf32>
      %200 = arith.addf %190, %199 : vector<16x16xf32>
      %c50 = arith.constant 50 : index
      %201 = memref.load %arg3[%c50] : memref<98xf32, #tpu.memory_space<smem>>
      %202 = vector.extract_strided_slice %185 {offsets = [0, 1], sizes = [16, 16], strides = [1, 1]} : vector<16x22xf32> to vector<16x16xf32>
      %203 = vector.broadcast %201 : f32 to vector<16x16xf32>
      %204 = arith.mulf %203, %202 : vector<16x16xf32>
      %205 = arith.addf %195, %204 : vector<16x16xf32>
      %c2 = arith.constant 2 : index
      %206 = memref.load %arg3[%c2] : memref<98xf32, #tpu.memory_space<smem>>
      %207 = vector.extract_strided_slice %184 {offsets = [0, 2], sizes = [16, 16], strides = [1, 1]} : vector<16x22xf32> to vector<16x16xf32>
      %208 = vector.broadcast %206 : f32 to vector<16x16xf32>
      %209 = arith.mulf %208, %207 : vector<16x16xf32>
      %210 = arith.addf %200, %209 : vector<16x16xf32>
      %c51 = arith.constant 51 : index
      %211 = memref.load %arg3[%c51] : memref<98xf32, #tpu.memory_space<smem>>
      %212 = vector.extract_strided_slice %185 {offsets = [0, 2], sizes = [16, 16], strides = [1, 1]} : vector<16x22xf32> to vector<16x16xf32>
      %213 = vector.broadcast %211 : f32 to vector<16x16xf32>
      %214 = arith.mulf %213, %212 : vector<16x16xf32>
      %215 = arith.addf %205, %214 : vector<16x16xf32>
      %c3_125 = arith.constant 3 : index
      %216 = memref.load %arg3[%c3_125] : memref<98xf32, #tpu.memory_space<smem>>
      %217 = vector.extract_strided_slice %184 {offsets = [0, 3], sizes = [16, 16], strides = [1, 1]} : vector<16x22xf32> to vector<16x16xf32>
      %218 = vector.broadcast %216 : f32 to vector<16x16xf32>
      %219 = arith.mulf %218, %217 : vector<16x16xf32>
      %220 = arith.addf %210, %219 : vector<16x16xf32>
      %c52 = arith.constant 52 : index
      %221 = memref.load %arg3[%c52] : memref<98xf32, #tpu.memory_space<smem>>
      %222 = vector.extract_strided_slice %185 {offsets = [0, 3], sizes = [16, 16], strides = [1, 1]} : vector<16x22xf32> to vector<16x16xf32>
      %223 = vector.broadcast %221 : f32 to vector<16x16xf32>
      %224 = arith.mulf %223, %222 : vector<16x16xf32>
      %225 = arith.addf %215, %224 : vector<16x16xf32>
      %c4_126 = arith.constant 4 : index
      %226 = memref.load %arg3[%c4_126] : memref<98xf32, #tpu.memory_space<smem>>
      %227 = vector.extract_strided_slice %184 {offsets = [0, 4], sizes = [16, 16], strides = [1, 1]} : vector<16x22xf32> to vector<16x16xf32>
      %228 = vector.broadcast %226 : f32 to vector<16x16xf32>
      %229 = arith.mulf %228, %227 : vector<16x16xf32>
      %230 = arith.addf %220, %229 : vector<16x16xf32>
      %c53 = arith.constant 53 : index
      %231 = memref.load %arg3[%c53] : memref<98xf32, #tpu.memory_space<smem>>
      %232 = vector.extract_strided_slice %185 {offsets = [0, 4], sizes = [16, 16], strides = [1, 1]} : vector<16x22xf32> to vector<16x16xf32>
      %233 = vector.broadcast %231 : f32 to vector<16x16xf32>
      %234 = arith.mulf %233, %232 : vector<16x16xf32>
      %235 = arith.addf %225, %234 : vector<16x16xf32>
      %c5_127 = arith.constant 5 : index
      %236 = memref.load %arg3[%c5_127] : memref<98xf32, #tpu.memory_space<smem>>
      %237 = vector.extract_strided_slice %184 {offsets = [0, 5], sizes = [16, 16], strides = [1, 1]} : vector<16x22xf32> to vector<16x16xf32>
      %238 = vector.broadcast %236 : f32 to vector<16x16xf32>
      %239 = arith.mulf %238, %237 : vector<16x16xf32>
      %240 = arith.addf %230, %239 : vector<16x16xf32>
      %c54 = arith.constant 54 : index
      %241 = memref.load %arg3[%c54] : memref<98xf32, #tpu.memory_space<smem>>
      %242 = vector.extract_strided_slice %185 {offsets = [0, 5], sizes = [16, 16], strides = [1, 1]} : vector<16x22xf32> to vector<16x16xf32>
      %243 = vector.broadcast %241 : f32 to vector<16x16xf32>
      %244 = arith.mulf %243, %242 : vector<16x16xf32>
      %245 = arith.addf %235, %244 : vector<16x16xf32>
      %c6_128 = arith.constant 6 : index
      %246 = memref.load %arg3[%c6_128] : memref<98xf32, #tpu.memory_space<smem>>
      %247 = vector.extract_strided_slice %184 {offsets = [0, 6], sizes = [16, 16], strides = [1, 1]} : vector<16x22xf32> to vector<16x16xf32>
      %248 = vector.broadcast %246 : f32 to vector<16x16xf32>
      %249 = arith.mulf %248, %247 : vector<16x16xf32>
      %250 = arith.addf %240, %249 : vector<16x16xf32>
      %c55 = arith.constant 55 : index
      %251 = memref.load %arg3[%c55] : memref<98xf32, #tpu.memory_space<smem>>
      %252 = vector.extract_strided_slice %185 {offsets = [0, 6], sizes = [16, 16], strides = [1, 1]} : vector<16x22xf32> to vector<16x16xf32>
      %253 = vector.broadcast %251 : f32 to vector<16x16xf32>
      %254 = arith.mulf %253, %252 : vector<16x16xf32>
      %255 = arith.addf %245, %254 : vector<16x16xf32>
      %c1_129 = arith.constant 1 : index
      %c0_130 = arith.constant 0 : index
      %256 = vector.load %arg7[%c1_129, %c0_130] : memref<22x22xf32, #tpu.memory_space<vmem>>, vector<16x22xf32>
      %c1_131 = arith.constant 1 : index
      %c0_132 = arith.constant 0 : index
      %257 = vector.load %arg8[%c1_131, %c0_132] : memref<22x22xf32, #tpu.memory_space<vmem>>, vector<16x22xf32>
      %c7_133 = arith.constant 7 : index
      %258 = memref.load %arg3[%c7_133] : memref<98xf32, #tpu.memory_space<smem>>
      %259 = vector.extract_strided_slice %256 {offsets = [0, 0], sizes = [16, 16], strides = [1, 1]} : vector<16x22xf32> to vector<16x16xf32>
      %260 = vector.broadcast %258 : f32 to vector<16x16xf32>
      %261 = arith.mulf %260, %259 : vector<16x16xf32>
      %262 = arith.addf %250, %261 : vector<16x16xf32>
      %c56 = arith.constant 56 : index
      %263 = memref.load %arg3[%c56] : memref<98xf32, #tpu.memory_space<smem>>
      %264 = vector.extract_strided_slice %257 {offsets = [0, 0], sizes = [16, 16], strides = [1, 1]} : vector<16x22xf32> to vector<16x16xf32>
      %265 = vector.broadcast %263 : f32 to vector<16x16xf32>
      %266 = arith.mulf %265, %264 : vector<16x16xf32>
      %267 = arith.addf %255, %266 : vector<16x16xf32>
      %c8_134 = arith.constant 8 : index
      %268 = memref.load %arg3[%c8_134] : memref<98xf32, #tpu.memory_space<smem>>
      %269 = vector.extract_strided_slice %256 {offsets = [0, 1], sizes = [16, 16], strides = [1, 1]} : vector<16x22xf32> to vector<16x16xf32>
      %270 = vector.broadcast %268 : f32 to vector<16x16xf32>
      %271 = arith.mulf %270, %269 : vector<16x16xf32>
      %272 = arith.addf %262, %271 : vector<16x16xf32>
      %c57 = arith.constant 57 : index
      %273 = memref.load %arg3[%c57] : memref<98xf32, #tpu.memory_space<smem>>
      %274 = vector.extract_strided_slice %257 {offsets = [0, 1], sizes = [16, 16], strides = [1, 1]} : vector<16x22xf32> to vector<16x16xf32>
      %275 = vector.broadcast %273 : f32 to vector<16x16xf32>
      %276 = arith.mulf %275, %274 : vector<16x16xf32>
      %277 = arith.addf %267, %276 : vector<16x16xf32>
      %c9_135 = arith.constant 9 : index
      %278 = memref.load %arg3[%c9_135] : memref<98xf32, #tpu.memory_space<smem>>
      %279 = vector.extract_strided_slice %256 {offsets = [0, 2], sizes = [16, 16], strides = [1, 1]} : vector<16x22xf32> to vector<16x16xf32>
      %280 = vector.broadcast %278 : f32 to vector<16x16xf32>
      %281 = arith.mulf %280, %279 : vector<16x16xf32>
      %282 = arith.addf %272, %281 : vector<16x16xf32>
      %c58 = arith.constant 58 : index
      %283 = memref.load %arg3[%c58] : memref<98xf32, #tpu.memory_space<smem>>
      %284 = vector.extract_strided_slice %257 {offsets = [0, 2], sizes = [16, 16], strides = [1, 1]} : vector<16x22xf32> to vector<16x16xf32>
      %285 = vector.broadcast %283 : f32 to vector<16x16xf32>
      %286 = arith.mulf %285, %284 : vector<16x16xf32>
      %287 = arith.addf %277, %286 : vector<16x16xf32>
      %c10_136 = arith.constant 10 : index
      %288 = memref.load %arg3[%c10_136] : memref<98xf32, #tpu.memory_space<smem>>
      %289 = vector.extract_strided_slice %256 {offsets = [0, 3], sizes = [16, 16], strides = [1, 1]} : vector<16x22xf32> to vector<16x16xf32>
      %290 = vector.broadcast %288 : f32 to vector<16x16xf32>
      %291 = arith.mulf %290, %289 : vector<16x16xf32>
      %292 = arith.addf %282, %291 : vector<16x16xf32>
      %c59 = arith.constant 59 : index
      %293 = memref.load %arg3[%c59] : memref<98xf32, #tpu.memory_space<smem>>
      %294 = vector.extract_strided_slice %257 {offsets = [0, 3], sizes = [16, 16], strides = [1, 1]} : vector<16x22xf32> to vector<16x16xf32>
      %295 = vector.broadcast %293 : f32 to vector<16x16xf32>
      %296 = arith.mulf %295, %294 : vector<16x16xf32>
      %297 = arith.addf %287, %296 : vector<16x16xf32>
      %c11_137 = arith.constant 11 : index
      %298 = memref.load %arg3[%c11_137] : memref<98xf32, #tpu.memory_space<smem>>
      %299 = vector.extract_strided_slice %256 {offsets = [0, 4], sizes = [16, 16], strides = [1, 1]} : vector<16x22xf32> to vector<16x16xf32>
      %300 = vector.broadcast %298 : f32 to vector<16x16xf32>
      %301 = arith.mulf %300, %299 : vector<16x16xf32>
      %302 = arith.addf %292, %301 : vector<16x16xf32>
      %c60 = arith.constant 60 : index
      %303 = memref.load %arg3[%c60] : memref<98xf32, #tpu.memory_space<smem>>
      %304 = vector.extract_strided_slice %257 {offsets = [0, 4], sizes = [16, 16], strides = [1, 1]} : vector<16x22xf32> to vector<16x16xf32>
      %305 = vector.broadcast %303 : f32 to vector<16x16xf32>
      %306 = arith.mulf %305, %304 : vector<16x16xf32>
      %307 = arith.addf %297, %306 : vector<16x16xf32>
      %c12_138 = arith.constant 12 : index
      %308 = memref.load %arg3[%c12_138] : memref<98xf32, #tpu.memory_space<smem>>
      %309 = vector.extract_strided_slice %256 {offsets = [0, 5], sizes = [16, 16], strides = [1, 1]} : vector<16x22xf32> to vector<16x16xf32>
      %310 = vector.broadcast %308 : f32 to vector<16x16xf32>
      %311 = arith.mulf %310, %309 : vector<16x16xf32>
      %312 = arith.addf %302, %311 : vector<16x16xf32>
      %c61 = arith.constant 61 : index
      %313 = memref.load %arg3[%c61] : memref<98xf32, #tpu.memory_space<smem>>
      %314 = vector.extract_strided_slice %257 {offsets = [0, 5], sizes = [16, 16], strides = [1, 1]} : vector<16x22xf32> to vector<16x16xf32>
      %315 = vector.broadcast %313 : f32 to vector<16x16xf32>
      %316 = arith.mulf %315, %314 : vector<16x16xf32>
      %317 = arith.addf %307, %316 : vector<16x16xf32>
      %c13_139 = arith.constant 13 : index
      %318 = memref.load %arg3[%c13_139] : memref<98xf32, #tpu.memory_space<smem>>
      %319 = vector.extract_strided_slice %256 {offsets = [0, 6], sizes = [16, 16], strides = [1, 1]} : vector<16x22xf32> to vector<16x16xf32>
      %320 = vector.broadcast %318 : f32 to vector<16x16xf32>
      %321 = arith.mulf %320, %319 : vector<16x16xf32>
      %322 = arith.addf %312, %321 : vector<16x16xf32>
      %c62 = arith.constant 62 : index
      %323 = memref.load %arg3[%c62] : memref<98xf32, #tpu.memory_space<smem>>
      %324 = vector.extract_strided_slice %257 {offsets = [0, 6], sizes = [16, 16], strides = [1, 1]} : vector<16x22xf32> to vector<16x16xf32>
      %325 = vector.broadcast %323 : f32 to vector<16x16xf32>
      %326 = arith.mulf %325, %324 : vector<16x16xf32>
      %327 = arith.addf %317, %326 : vector<16x16xf32>
      %c2_140 = arith.constant 2 : index
      %c0_141 = arith.constant 0 : index
      %328 = vector.load %arg7[%c2_140, %c0_141] : memref<22x22xf32, #tpu.memory_space<vmem>>, vector<16x22xf32>
      %c2_142 = arith.constant 2 : index
      %c0_143 = arith.constant 0 : index
      %329 = vector.load %arg8[%c2_142, %c0_143] : memref<22x22xf32, #tpu.memory_space<vmem>>, vector<16x22xf32>
      %c14_144 = arith.constant 14 : index
      %330 = memref.load %arg3[%c14_144] : memref<98xf32, #tpu.memory_space<smem>>
      %331 = vector.extract_strided_slice %328 {offsets = [0, 0], sizes = [16, 16], strides = [1, 1]} : vector<16x22xf32> to vector<16x16xf32>
      %332 = vector.broadcast %330 : f32 to vector<16x16xf32>
      %333 = arith.mulf %332, %331 : vector<16x16xf32>
      %334 = arith.addf %322, %333 : vector<16x16xf32>
      %c63 = arith.constant 63 : index
      %335 = memref.load %arg3[%c63] : memref<98xf32, #tpu.memory_space<smem>>
      %336 = vector.extract_strided_slice %329 {offsets = [0, 0], sizes = [16, 16], strides = [1, 1]} : vector<16x22xf32> to vector<16x16xf32>
      %337 = vector.broadcast %335 : f32 to vector<16x16xf32>
      %338 = arith.mulf %337, %336 : vector<16x16xf32>
      %339 = arith.addf %327, %338 : vector<16x16xf32>
      %c15_145 = arith.constant 15 : index
      %340 = memref.load %arg3[%c15_145] : memref<98xf32, #tpu.memory_space<smem>>
      %341 = vector.extract_strided_slice %328 {offsets = [0, 1], sizes = [16, 16], strides = [1, 1]} : vector<16x22xf32> to vector<16x16xf32>
      %342 = vector.broadcast %340 : f32 to vector<16x16xf32>
      %343 = arith.mulf %342, %341 : vector<16x16xf32>
      %344 = arith.addf %334, %343 : vector<16x16xf32>
      %c64_146 = arith.constant 64 : index
      %345 = memref.load %arg3[%c64_146] : memref<98xf32, #tpu.memory_space<smem>>
      %346 = vector.extract_strided_slice %329 {offsets = [0, 1], sizes = [16, 16], strides = [1, 1]} : vector<16x22xf32> to vector<16x16xf32>
      %347 = vector.broadcast %345 : f32 to vector<16x16xf32>
      %348 = arith.mulf %347, %346 : vector<16x16xf32>
      %349 = arith.addf %339, %348 : vector<16x16xf32>
      %c16_147 = arith.constant 16 : index
      %350 = memref.load %arg3[%c16_147] : memref<98xf32, #tpu.memory_space<smem>>
      %351 = vector.extract_strided_slice %328 {offsets = [0, 2], sizes = [16, 16], strides = [1, 1]} : vector<16x22xf32> to vector<16x16xf32>
      %352 = vector.broadcast %350 : f32 to vector<16x16xf32>
      %353 = arith.mulf %352, %351 : vector<16x16xf32>
      %354 = arith.addf %344, %353 : vector<16x16xf32>
      %c65 = arith.constant 65 : index
      %355 = memref.load %arg3[%c65] : memref<98xf32, #tpu.memory_space<smem>>
      %356 = vector.extract_strided_slice %329 {offsets = [0, 2], sizes = [16, 16], strides = [1, 1]} : vector<16x22xf32> to vector<16x16xf32>
      %357 = vector.broadcast %355 : f32 to vector<16x16xf32>
      %358 = arith.mulf %357, %356 : vector<16x16xf32>
      %359 = arith.addf %349, %358 : vector<16x16xf32>
      %c17_148 = arith.constant 17 : index
      %360 = memref.load %arg3[%c17_148] : memref<98xf32, #tpu.memory_space<smem>>
      %361 = vector.extract_strided_slice %328 {offsets = [0, 3], sizes = [16, 16], strides = [1, 1]} : vector<16x22xf32> to vector<16x16xf32>
      %362 = vector.broadcast %360 : f32 to vector<16x16xf32>
      %363 = arith.mulf %362, %361 : vector<16x16xf32>
      %364 = arith.addf %354, %363 : vector<16x16xf32>
      %c66 = arith.constant 66 : index
      %365 = memref.load %arg3[%c66] : memref<98xf32, #tpu.memory_space<smem>>
      %366 = vector.extract_strided_slice %329 {offsets = [0, 3], sizes = [16, 16], strides = [1, 1]} : vector<16x22xf32> to vector<16x16xf32>
      %367 = vector.broadcast %365 : f32 to vector<16x16xf32>
      %368 = arith.mulf %367, %366 : vector<16x16xf32>
      %369 = arith.addf %359, %368 : vector<16x16xf32>
      %c18_149 = arith.constant 18 : index
      %370 = memref.load %arg3[%c18_149] : memref<98xf32, #tpu.memory_space<smem>>
      %371 = vector.extract_strided_slice %328 {offsets = [0, 4], sizes = [16, 16], strides = [1, 1]} : vector<16x22xf32> to vector<16x16xf32>
      %372 = vector.broadcast %370 : f32 to vector<16x16xf32>
      %373 = arith.mulf %372, %371 : vector<16x16xf32>
      %374 = arith.addf %364, %373 : vector<16x16xf32>
      %c67 = arith.constant 67 : index
      %375 = memref.load %arg3[%c67] : memref<98xf32, #tpu.memory_space<smem>>
      %376 = vector.extract_strided_slice %329 {offsets = [0, 4], sizes = [16, 16], strides = [1, 1]} : vector<16x22xf32> to vector<16x16xf32>
      %377 = vector.broadcast %375 : f32 to vector<16x16xf32>
      %378 = arith.mulf %377, %376 : vector<16x16xf32>
      %379 = arith.addf %369, %378 : vector<16x16xf32>
      %c19 = arith.constant 19 : index
      %380 = memref.load %arg3[%c19] : memref<98xf32, #tpu.memory_space<smem>>
      %381 = vector.extract_strided_slice %328 {offsets = [0, 5], sizes = [16, 16], strides = [1, 1]} : vector<16x22xf32> to vector<16x16xf32>
      %382 = vector.broadcast %380 : f32 to vector<16x16xf32>
      %383 = arith.mulf %382, %381 : vector<16x16xf32>
      %384 = arith.addf %374, %383 : vector<16x16xf32>
      %c68 = arith.constant 68 : index
      %385 = memref.load %arg3[%c68] : memref<98xf32, #tpu.memory_space<smem>>
      %386 = vector.extract_strided_slice %329 {offsets = [0, 5], sizes = [16, 16], strides = [1, 1]} : vector<16x22xf32> to vector<16x16xf32>
      %387 = vector.broadcast %385 : f32 to vector<16x16xf32>
      %388 = arith.mulf %387, %386 : vector<16x16xf32>
      %389 = arith.addf %379, %388 : vector<16x16xf32>
      %c20 = arith.constant 20 : index
      %390 = memref.load %arg3[%c20] : memref<98xf32, #tpu.memory_space<smem>>
      %391 = vector.extract_strided_slice %328 {offsets = [0, 6], sizes = [16, 16], strides = [1, 1]} : vector<16x22xf32> to vector<16x16xf32>
      %392 = vector.broadcast %390 : f32 to vector<16x16xf32>
      %393 = arith.mulf %392, %391 : vector<16x16xf32>
      %394 = arith.addf %384, %393 : vector<16x16xf32>
      %c69 = arith.constant 69 : index
      %395 = memref.load %arg3[%c69] : memref<98xf32, #tpu.memory_space<smem>>
      %396 = vector.extract_strided_slice %329 {offsets = [0, 6], sizes = [16, 16], strides = [1, 1]} : vector<16x22xf32> to vector<16x16xf32>
      %397 = vector.broadcast %395 : f32 to vector<16x16xf32>
      %398 = arith.mulf %397, %396 : vector<16x16xf32>
      %399 = arith.addf %389, %398 : vector<16x16xf32>
      %c3_150 = arith.constant 3 : index
      %c0_151 = arith.constant 0 : index
      %400 = vector.load %arg7[%c3_150, %c0_151] : memref<22x22xf32, #tpu.memory_space<vmem>>, vector<16x22xf32>
      %c3_152 = arith.constant 3 : index
      %c0_153 = arith.constant 0 : index
      %401 = vector.load %arg8[%c3_152, %c0_153] : memref<22x22xf32, #tpu.memory_space<vmem>>, vector<16x22xf32>
      %c21 = arith.constant 21 : index
      %402 = memref.load %arg3[%c21] : memref<98xf32, #tpu.memory_space<smem>>
      %403 = vector.extract_strided_slice %400 {offsets = [0, 0], sizes = [16, 16], strides = [1, 1]} : vector<16x22xf32> to vector<16x16xf32>
      %404 = vector.broadcast %402 : f32 to vector<16x16xf32>
      %405 = arith.mulf %404, %403 : vector<16x16xf32>
      %406 = arith.addf %394, %405 : vector<16x16xf32>
      %c70 = arith.constant 70 : index
      %407 = memref.load %arg3[%c70] : memref<98xf32, #tpu.memory_space<smem>>
      %408 = vector.extract_strided_slice %401 {offsets = [0, 0], sizes = [16, 16], strides = [1, 1]} : vector<16x22xf32> to vector<16x16xf32>
      %409 = vector.broadcast %407 : f32 to vector<16x16xf32>
      %410 = arith.mulf %409, %408 : vector<16x16xf32>
      %411 = arith.addf %399, %410 : vector<16x16xf32>
      %c22 = arith.constant 22 : index
      %412 = memref.load %arg3[%c22] : memref<98xf32, #tpu.memory_space<smem>>
      %413 = vector.extract_strided_slice %400 {offsets = [0, 1], sizes = [16, 16], strides = [1, 1]} : vector<16x22xf32> to vector<16x16xf32>
      %414 = vector.broadcast %412 : f32 to vector<16x16xf32>
      %415 = arith.mulf %414, %413 : vector<16x16xf32>
      %416 = arith.addf %406, %415 : vector<16x16xf32>
      %c71 = arith.constant 71 : index
      %417 = memref.load %arg3[%c71] : memref<98xf32, #tpu.memory_space<smem>>
      %418 = vector.extract_strided_slice %401 {offsets = [0, 1], sizes = [16, 16], strides = [1, 1]} : vector<16x22xf32> to vector<16x16xf32>
      %419 = vector.broadcast %417 : f32 to vector<16x16xf32>
      %420 = arith.mulf %419, %418 : vector<16x16xf32>
      %421 = arith.addf %411, %420 : vector<16x16xf32>
      %c23 = arith.constant 23 : index
      %422 = memref.load %arg3[%c23] : memref<98xf32, #tpu.memory_space<smem>>
      %423 = vector.extract_strided_slice %400 {offsets = [0, 2], sizes = [16, 16], strides = [1, 1]} : vector<16x22xf32> to vector<16x16xf32>
      %424 = vector.broadcast %422 : f32 to vector<16x16xf32>
      %425 = arith.mulf %424, %423 : vector<16x16xf32>
      %426 = arith.addf %416, %425 : vector<16x16xf32>
      %c72 = arith.constant 72 : index
      %427 = memref.load %arg3[%c72] : memref<98xf32, #tpu.memory_space<smem>>
      %428 = vector.extract_strided_slice %401 {offsets = [0, 2], sizes = [16, 16], strides = [1, 1]} : vector<16x22xf32> to vector<16x16xf32>
      %429 = vector.broadcast %427 : f32 to vector<16x16xf32>
      %430 = arith.mulf %429, %428 : vector<16x16xf32>
      %431 = arith.addf %421, %430 : vector<16x16xf32>
      %c24 = arith.constant 24 : index
      %432 = memref.load %arg3[%c24] : memref<98xf32, #tpu.memory_space<smem>>
      %433 = vector.extract_strided_slice %400 {offsets = [0, 3], sizes = [16, 16], strides = [1, 1]} : vector<16x22xf32> to vector<16x16xf32>
      %434 = vector.broadcast %432 : f32 to vector<16x16xf32>
      %435 = arith.mulf %434, %433 : vector<16x16xf32>
      %436 = arith.addf %426, %435 : vector<16x16xf32>
      %c73 = arith.constant 73 : index
      %437 = memref.load %arg3[%c73] : memref<98xf32, #tpu.memory_space<smem>>
      %438 = vector.extract_strided_slice %401 {offsets = [0, 3], sizes = [16, 16], strides = [1, 1]} : vector<16x22xf32> to vector<16x16xf32>
      %439 = vector.broadcast %437 : f32 to vector<16x16xf32>
      %440 = arith.mulf %439, %438 : vector<16x16xf32>
      %441 = arith.addf %431, %440 : vector<16x16xf32>
      %c25 = arith.constant 25 : index
      %442 = memref.load %arg3[%c25] : memref<98xf32, #tpu.memory_space<smem>>
      %443 = vector.extract_strided_slice %400 {offsets = [0, 4], sizes = [16, 16], strides = [1, 1]} : vector<16x22xf32> to vector<16x16xf32>
      %444 = vector.broadcast %442 : f32 to vector<16x16xf32>
      %445 = arith.mulf %444, %443 : vector<16x16xf32>
      %446 = arith.addf %436, %445 : vector<16x16xf32>
      %c74 = arith.constant 74 : index
      %447 = memref.load %arg3[%c74] : memref<98xf32, #tpu.memory_space<smem>>
      %448 = vector.extract_strided_slice %401 {offsets = [0, 4], sizes = [16, 16], strides = [1, 1]} : vector<16x22xf32> to vector<16x16xf32>
      %449 = vector.broadcast %447 : f32 to vector<16x16xf32>
      %450 = arith.mulf %449, %448 : vector<16x16xf32>
      %451 = arith.addf %441, %450 : vector<16x16xf32>
      %c26 = arith.constant 26 : index
      %452 = memref.load %arg3[%c26] : memref<98xf32, #tpu.memory_space<smem>>
      %453 = vector.extract_strided_slice %400 {offsets = [0, 5], sizes = [16, 16], strides = [1, 1]} : vector<16x22xf32> to vector<16x16xf32>
      %454 = vector.broadcast %452 : f32 to vector<16x16xf32>
      %455 = arith.mulf %454, %453 : vector<16x16xf32>
      %456 = arith.addf %446, %455 : vector<16x16xf32>
      %c75 = arith.constant 75 : index
      %457 = memref.load %arg3[%c75] : memref<98xf32, #tpu.memory_space<smem>>
      %458 = vector.extract_strided_slice %401 {offsets = [0, 5], sizes = [16, 16], strides = [1, 1]} : vector<16x22xf32> to vector<16x16xf32>
      %459 = vector.broadcast %457 : f32 to vector<16x16xf32>
      %460 = arith.mulf %459, %458 : vector<16x16xf32>
      %461 = arith.addf %451, %460 : vector<16x16xf32>
      %c27 = arith.constant 27 : index
      %462 = memref.load %arg3[%c27] : memref<98xf32, #tpu.memory_space<smem>>
      %463 = vector.extract_strided_slice %400 {offsets = [0, 6], sizes = [16, 16], strides = [1, 1]} : vector<16x22xf32> to vector<16x16xf32>
      %464 = vector.broadcast %462 : f32 to vector<16x16xf32>
      %465 = arith.mulf %464, %463 : vector<16x16xf32>
      %466 = arith.addf %456, %465 : vector<16x16xf32>
      %c76 = arith.constant 76 : index
      %467 = memref.load %arg3[%c76] : memref<98xf32, #tpu.memory_space<smem>>
      %468 = vector.extract_strided_slice %401 {offsets = [0, 6], sizes = [16, 16], strides = [1, 1]} : vector<16x22xf32> to vector<16x16xf32>
      %469 = vector.broadcast %467 : f32 to vector<16x16xf32>
      %470 = arith.mulf %469, %468 : vector<16x16xf32>
      %471 = arith.addf %461, %470 : vector<16x16xf32>
      %c4_154 = arith.constant 4 : index
      %c0_155 = arith.constant 0 : index
      %472 = vector.load %arg7[%c4_154, %c0_155] : memref<22x22xf32, #tpu.memory_space<vmem>>, vector<16x22xf32>
      %c4_156 = arith.constant 4 : index
      %c0_157 = arith.constant 0 : index
      %473 = vector.load %arg8[%c4_156, %c0_157] : memref<22x22xf32, #tpu.memory_space<vmem>>, vector<16x22xf32>
      %c28 = arith.constant 28 : index
      %474 = memref.load %arg3[%c28] : memref<98xf32, #tpu.memory_space<smem>>
      %475 = vector.extract_strided_slice %472 {offsets = [0, 0], sizes = [16, 16], strides = [1, 1]} : vector<16x22xf32> to vector<16x16xf32>
      %476 = vector.broadcast %474 : f32 to vector<16x16xf32>
      %477 = arith.mulf %476, %475 : vector<16x16xf32>
      %478 = arith.addf %466, %477 : vector<16x16xf32>
      %c77 = arith.constant 77 : index
      %479 = memref.load %arg3[%c77] : memref<98xf32, #tpu.memory_space<smem>>
      %480 = vector.extract_strided_slice %473 {offsets = [0, 0], sizes = [16, 16], strides = [1, 1]} : vector<16x22xf32> to vector<16x16xf32>
      %481 = vector.broadcast %479 : f32 to vector<16x16xf32>
      %482 = arith.mulf %481, %480 : vector<16x16xf32>
      %483 = arith.addf %471, %482 : vector<16x16xf32>
      %c29 = arith.constant 29 : index
      %484 = memref.load %arg3[%c29] : memref<98xf32, #tpu.memory_space<smem>>
      %485 = vector.extract_strided_slice %472 {offsets = [0, 1], sizes = [16, 16], strides = [1, 1]} : vector<16x22xf32> to vector<16x16xf32>
      %486 = vector.broadcast %484 : f32 to vector<16x16xf32>
      %487 = arith.mulf %486, %485 : vector<16x16xf32>
      %488 = arith.addf %478, %487 : vector<16x16xf32>
      %c78 = arith.constant 78 : index
      %489 = memref.load %arg3[%c78] : memref<98xf32, #tpu.memory_space<smem>>
      %490 = vector.extract_strided_slice %473 {offsets = [0, 1], sizes = [16, 16], strides = [1, 1]} : vector<16x22xf32> to vector<16x16xf32>
      %491 = vector.broadcast %489 : f32 to vector<16x16xf32>
      %492 = arith.mulf %491, %490 : vector<16x16xf32>
      %493 = arith.addf %483, %492 : vector<16x16xf32>
      %c30 = arith.constant 30 : index
      %494 = memref.load %arg3[%c30] : memref<98xf32, #tpu.memory_space<smem>>
      %495 = vector.extract_strided_slice %472 {offsets = [0, 2], sizes = [16, 16], strides = [1, 1]} : vector<16x22xf32> to vector<16x16xf32>
      %496 = vector.broadcast %494 : f32 to vector<16x16xf32>
      %497 = arith.mulf %496, %495 : vector<16x16xf32>
      %498 = arith.addf %488, %497 : vector<16x16xf32>
      %c79 = arith.constant 79 : index
      %499 = memref.load %arg3[%c79] : memref<98xf32, #tpu.memory_space<smem>>
      %500 = vector.extract_strided_slice %473 {offsets = [0, 2], sizes = [16, 16], strides = [1, 1]} : vector<16x22xf32> to vector<16x16xf32>
      %501 = vector.broadcast %499 : f32 to vector<16x16xf32>
      %502 = arith.mulf %501, %500 : vector<16x16xf32>
      %503 = arith.addf %493, %502 : vector<16x16xf32>
      %c31 = arith.constant 31 : index
      %504 = memref.load %arg3[%c31] : memref<98xf32, #tpu.memory_space<smem>>
      %505 = vector.extract_strided_slice %472 {offsets = [0, 3], sizes = [16, 16], strides = [1, 1]} : vector<16x22xf32> to vector<16x16xf32>
      %506 = vector.broadcast %504 : f32 to vector<16x16xf32>
      %507 = arith.mulf %506, %505 : vector<16x16xf32>
      %508 = arith.addf %498, %507 : vector<16x16xf32>
      %c80_158 = arith.constant 80 : index
      %509 = memref.load %arg3[%c80_158] : memref<98xf32, #tpu.memory_space<smem>>
      %510 = vector.extract_strided_slice %473 {offsets = [0, 3], sizes = [16, 16], strides = [1, 1]} : vector<16x22xf32> to vector<16x16xf32>
      %511 = vector.broadcast %509 : f32 to vector<16x16xf32>
      %512 = arith.mulf %511, %510 : vector<16x16xf32>
      %513 = arith.addf %503, %512 : vector<16x16xf32>
      %c32_159 = arith.constant 32 : index
      %514 = memref.load %arg3[%c32_159] : memref<98xf32, #tpu.memory_space<smem>>
      %515 = vector.extract_strided_slice %472 {offsets = [0, 4], sizes = [16, 16], strides = [1, 1]} : vector<16x22xf32> to vector<16x16xf32>
      %516 = vector.broadcast %514 : f32 to vector<16x16xf32>
      %517 = arith.mulf %516, %515 : vector<16x16xf32>
      %518 = arith.addf %508, %517 : vector<16x16xf32>
      %c81 = arith.constant 81 : index
      %519 = memref.load %arg3[%c81] : memref<98xf32, #tpu.memory_space<smem>>
      %520 = vector.extract_strided_slice %473 {offsets = [0, 4], sizes = [16, 16], strides = [1, 1]} : vector<16x22xf32> to vector<16x16xf32>
      %521 = vector.broadcast %519 : f32 to vector<16x16xf32>
      %522 = arith.mulf %521, %520 : vector<16x16xf32>
      %523 = arith.addf %513, %522 : vector<16x16xf32>
      %c33 = arith.constant 33 : index
      %524 = memref.load %arg3[%c33] : memref<98xf32, #tpu.memory_space<smem>>
      %525 = vector.extract_strided_slice %472 {offsets = [0, 5], sizes = [16, 16], strides = [1, 1]} : vector<16x22xf32> to vector<16x16xf32>
      %526 = vector.broadcast %524 : f32 to vector<16x16xf32>
      %527 = arith.mulf %526, %525 : vector<16x16xf32>
      %528 = arith.addf %518, %527 : vector<16x16xf32>
      %c82 = arith.constant 82 : index
      %529 = memref.load %arg3[%c82] : memref<98xf32, #tpu.memory_space<smem>>
      %530 = vector.extract_strided_slice %473 {offsets = [0, 5], sizes = [16, 16], strides = [1, 1]} : vector<16x22xf32> to vector<16x16xf32>
      %531 = vector.broadcast %529 : f32 to vector<16x16xf32>
      %532 = arith.mulf %531, %530 : vector<16x16xf32>
      %533 = arith.addf %523, %532 : vector<16x16xf32>
      %c34 = arith.constant 34 : index
      %534 = memref.load %arg3[%c34] : memref<98xf32, #tpu.memory_space<smem>>
      %535 = vector.extract_strided_slice %472 {offsets = [0, 6], sizes = [16, 16], strides = [1, 1]} : vector<16x22xf32> to vector<16x16xf32>
      %536 = vector.broadcast %534 : f32 to vector<16x16xf32>
      %537 = arith.mulf %536, %535 : vector<16x16xf32>
      %538 = arith.addf %528, %537 : vector<16x16xf32>
      %c83 = arith.constant 83 : index
      %539 = memref.load %arg3[%c83] : memref<98xf32, #tpu.memory_space<smem>>
      %540 = vector.extract_strided_slice %473 {offsets = [0, 6], sizes = [16, 16], strides = [1, 1]} : vector<16x22xf32> to vector<16x16xf32>
      %541 = vector.broadcast %539 : f32 to vector<16x16xf32>
      %542 = arith.mulf %541, %540 : vector<16x16xf32>
      %543 = arith.addf %533, %542 : vector<16x16xf32>
      %c5_160 = arith.constant 5 : index
      %c0_161 = arith.constant 0 : index
      %544 = vector.load %arg7[%c5_160, %c0_161] : memref<22x22xf32, #tpu.memory_space<vmem>>, vector<16x22xf32>
      %c5_162 = arith.constant 5 : index
      %c0_163 = arith.constant 0 : index
      %545 = vector.load %arg8[%c5_162, %c0_163] : memref<22x22xf32, #tpu.memory_space<vmem>>, vector<16x22xf32>
      %c35 = arith.constant 35 : index
      %546 = memref.load %arg3[%c35] : memref<98xf32, #tpu.memory_space<smem>>
      %547 = vector.extract_strided_slice %544 {offsets = [0, 0], sizes = [16, 16], strides = [1, 1]} : vector<16x22xf32> to vector<16x16xf32>
      %548 = vector.broadcast %546 : f32 to vector<16x16xf32>
      %549 = arith.mulf %548, %547 : vector<16x16xf32>
      %550 = arith.addf %538, %549 : vector<16x16xf32>
      %c84 = arith.constant 84 : index
      %551 = memref.load %arg3[%c84] : memref<98xf32, #tpu.memory_space<smem>>
      %552 = vector.extract_strided_slice %545 {offsets = [0, 0], sizes = [16, 16], strides = [1, 1]} : vector<16x22xf32> to vector<16x16xf32>
      %553 = vector.broadcast %551 : f32 to vector<16x16xf32>
      %554 = arith.mulf %553, %552 : vector<16x16xf32>
      %555 = arith.addf %543, %554 : vector<16x16xf32>
      %c36 = arith.constant 36 : index
      %556 = memref.load %arg3[%c36] : memref<98xf32, #tpu.memory_space<smem>>
      %557 = vector.extract_strided_slice %544 {offsets = [0, 1], sizes = [16, 16], strides = [1, 1]} : vector<16x22xf32> to vector<16x16xf32>
      %558 = vector.broadcast %556 : f32 to vector<16x16xf32>
      %559 = arith.mulf %558, %557 : vector<16x16xf32>
      %560 = arith.addf %550, %559 : vector<16x16xf32>
      %c85 = arith.constant 85 : index
      %561 = memref.load %arg3[%c85] : memref<98xf32, #tpu.memory_space<smem>>
      %562 = vector.extract_strided_slice %545 {offsets = [0, 1], sizes = [16, 16], strides = [1, 1]} : vector<16x22xf32> to vector<16x16xf32>
      %563 = vector.broadcast %561 : f32 to vector<16x16xf32>
      %564 = arith.mulf %563, %562 : vector<16x16xf32>
      %565 = arith.addf %555, %564 : vector<16x16xf32>
      %c37 = arith.constant 37 : index
      %566 = memref.load %arg3[%c37] : memref<98xf32, #tpu.memory_space<smem>>
      %567 = vector.extract_strided_slice %544 {offsets = [0, 2], sizes = [16, 16], strides = [1, 1]} : vector<16x22xf32> to vector<16x16xf32>
      %568 = vector.broadcast %566 : f32 to vector<16x16xf32>
      %569 = arith.mulf %568, %567 : vector<16x16xf32>
      %570 = arith.addf %560, %569 : vector<16x16xf32>
      %c86 = arith.constant 86 : index
      %571 = memref.load %arg3[%c86] : memref<98xf32, #tpu.memory_space<smem>>
      %572 = vector.extract_strided_slice %545 {offsets = [0, 2], sizes = [16, 16], strides = [1, 1]} : vector<16x22xf32> to vector<16x16xf32>
      %573 = vector.broadcast %571 : f32 to vector<16x16xf32>
      %574 = arith.mulf %573, %572 : vector<16x16xf32>
      %575 = arith.addf %565, %574 : vector<16x16xf32>
      %c38 = arith.constant 38 : index
      %576 = memref.load %arg3[%c38] : memref<98xf32, #tpu.memory_space<smem>>
      %577 = vector.extract_strided_slice %544 {offsets = [0, 3], sizes = [16, 16], strides = [1, 1]} : vector<16x22xf32> to vector<16x16xf32>
      %578 = vector.broadcast %576 : f32 to vector<16x16xf32>
      %579 = arith.mulf %578, %577 : vector<16x16xf32>
      %580 = arith.addf %570, %579 : vector<16x16xf32>
      %c87 = arith.constant 87 : index
      %581 = memref.load %arg3[%c87] : memref<98xf32, #tpu.memory_space<smem>>
      %582 = vector.extract_strided_slice %545 {offsets = [0, 3], sizes = [16, 16], strides = [1, 1]} : vector<16x22xf32> to vector<16x16xf32>
      %583 = vector.broadcast %581 : f32 to vector<16x16xf32>
      %584 = arith.mulf %583, %582 : vector<16x16xf32>
      %585 = arith.addf %575, %584 : vector<16x16xf32>
      %c39 = arith.constant 39 : index
      %586 = memref.load %arg3[%c39] : memref<98xf32, #tpu.memory_space<smem>>
      %587 = vector.extract_strided_slice %544 {offsets = [0, 4], sizes = [16, 16], strides = [1, 1]} : vector<16x22xf32> to vector<16x16xf32>
      %588 = vector.broadcast %586 : f32 to vector<16x16xf32>
      %589 = arith.mulf %588, %587 : vector<16x16xf32>
      %590 = arith.addf %580, %589 : vector<16x16xf32>
      %c88 = arith.constant 88 : index
      %591 = memref.load %arg3[%c88] : memref<98xf32, #tpu.memory_space<smem>>
      %592 = vector.extract_strided_slice %545 {offsets = [0, 4], sizes = [16, 16], strides = [1, 1]} : vector<16x22xf32> to vector<16x16xf32>
      %593 = vector.broadcast %591 : f32 to vector<16x16xf32>
      %594 = arith.mulf %593, %592 : vector<16x16xf32>
      %595 = arith.addf %585, %594 : vector<16x16xf32>
      %c40 = arith.constant 40 : index
      %596 = memref.load %arg3[%c40] : memref<98xf32, #tpu.memory_space<smem>>
      %597 = vector.extract_strided_slice %544 {offsets = [0, 5], sizes = [16, 16], strides = [1, 1]} : vector<16x22xf32> to vector<16x16xf32>
      %598 = vector.broadcast %596 : f32 to vector<16x16xf32>
      %599 = arith.mulf %598, %597 : vector<16x16xf32>
      %600 = arith.addf %590, %599 : vector<16x16xf32>
      %c89 = arith.constant 89 : index
      %601 = memref.load %arg3[%c89] : memref<98xf32, #tpu.memory_space<smem>>
      %602 = vector.extract_strided_slice %545 {offsets = [0, 5], sizes = [16, 16], strides = [1, 1]} : vector<16x22xf32> to vector<16x16xf32>
      %603 = vector.broadcast %601 : f32 to vector<16x16xf32>
      %604 = arith.mulf %603, %602 : vector<16x16xf32>
      %605 = arith.addf %595, %604 : vector<16x16xf32>
      %c41 = arith.constant 41 : index
      %606 = memref.load %arg3[%c41] : memref<98xf32, #tpu.memory_space<smem>>
      %607 = vector.extract_strided_slice %544 {offsets = [0, 6], sizes = [16, 16], strides = [1, 1]} : vector<16x22xf32> to vector<16x16xf32>
      %608 = vector.broadcast %606 : f32 to vector<16x16xf32>
      %609 = arith.mulf %608, %607 : vector<16x16xf32>
      %610 = arith.addf %600, %609 : vector<16x16xf32>
      %c90 = arith.constant 90 : index
      %611 = memref.load %arg3[%c90] : memref<98xf32, #tpu.memory_space<smem>>
      %612 = vector.extract_strided_slice %545 {offsets = [0, 6], sizes = [16, 16], strides = [1, 1]} : vector<16x22xf32> to vector<16x16xf32>
      %613 = vector.broadcast %611 : f32 to vector<16x16xf32>
      %614 = arith.mulf %613, %612 : vector<16x16xf32>
      %615 = arith.addf %605, %614 : vector<16x16xf32>
      %c6_164 = arith.constant 6 : index
      %c0_165 = arith.constant 0 : index
      %616 = vector.load %arg7[%c6_164, %c0_165] : memref<22x22xf32, #tpu.memory_space<vmem>>, vector<16x22xf32>
      %c6_166 = arith.constant 6 : index
      %c0_167 = arith.constant 0 : index
      %617 = vector.load %arg8[%c6_166, %c0_167] : memref<22x22xf32, #tpu.memory_space<vmem>>, vector<16x22xf32>
      %c42 = arith.constant 42 : index
      %618 = memref.load %arg3[%c42] : memref<98xf32, #tpu.memory_space<smem>>
      %619 = vector.extract_strided_slice %616 {offsets = [0, 0], sizes = [16, 16], strides = [1, 1]} : vector<16x22xf32> to vector<16x16xf32>
      %620 = vector.broadcast %618 : f32 to vector<16x16xf32>
      %621 = arith.mulf %620, %619 : vector<16x16xf32>
      %622 = arith.addf %610, %621 : vector<16x16xf32>
      %c91 = arith.constant 91 : index
      %623 = memref.load %arg3[%c91] : memref<98xf32, #tpu.memory_space<smem>>
      %624 = vector.extract_strided_slice %617 {offsets = [0, 0], sizes = [16, 16], strides = [1, 1]} : vector<16x22xf32> to vector<16x16xf32>
      %625 = vector.broadcast %623 : f32 to vector<16x16xf32>
      %626 = arith.mulf %625, %624 : vector<16x16xf32>
      %627 = arith.addf %615, %626 : vector<16x16xf32>
      %c43 = arith.constant 43 : index
      %628 = memref.load %arg3[%c43] : memref<98xf32, #tpu.memory_space<smem>>
      %629 = vector.extract_strided_slice %616 {offsets = [0, 1], sizes = [16, 16], strides = [1, 1]} : vector<16x22xf32> to vector<16x16xf32>
      %630 = vector.broadcast %628 : f32 to vector<16x16xf32>
      %631 = arith.mulf %630, %629 : vector<16x16xf32>
      %632 = arith.addf %622, %631 : vector<16x16xf32>
      %c92 = arith.constant 92 : index
      %633 = memref.load %arg3[%c92] : memref<98xf32, #tpu.memory_space<smem>>
      %634 = vector.extract_strided_slice %617 {offsets = [0, 1], sizes = [16, 16], strides = [1, 1]} : vector<16x22xf32> to vector<16x16xf32>
      %635 = vector.broadcast %633 : f32 to vector<16x16xf32>
      %636 = arith.mulf %635, %634 : vector<16x16xf32>
      %637 = arith.addf %627, %636 : vector<16x16xf32>
      %c44 = arith.constant 44 : index
      %638 = memref.load %arg3[%c44] : memref<98xf32, #tpu.memory_space<smem>>
      %639 = vector.extract_strided_slice %616 {offsets = [0, 2], sizes = [16, 16], strides = [1, 1]} : vector<16x22xf32> to vector<16x16xf32>
      %640 = vector.broadcast %638 : f32 to vector<16x16xf32>
      %641 = arith.mulf %640, %639 : vector<16x16xf32>
      %642 = arith.addf %632, %641 : vector<16x16xf32>
      %c93 = arith.constant 93 : index
      %643 = memref.load %arg3[%c93] : memref<98xf32, #tpu.memory_space<smem>>
      %644 = vector.extract_strided_slice %617 {offsets = [0, 2], sizes = [16, 16], strides = [1, 1]} : vector<16x22xf32> to vector<16x16xf32>
      %645 = vector.broadcast %643 : f32 to vector<16x16xf32>
      %646 = arith.mulf %645, %644 : vector<16x16xf32>
      %647 = arith.addf %637, %646 : vector<16x16xf32>
      %c45 = arith.constant 45 : index
      %648 = memref.load %arg3[%c45] : memref<98xf32, #tpu.memory_space<smem>>
      %649 = vector.extract_strided_slice %616 {offsets = [0, 3], sizes = [16, 16], strides = [1, 1]} : vector<16x22xf32> to vector<16x16xf32>
      %650 = vector.broadcast %648 : f32 to vector<16x16xf32>
      %651 = arith.mulf %650, %649 : vector<16x16xf32>
      %652 = arith.addf %642, %651 : vector<16x16xf32>
      %c94 = arith.constant 94 : index
      %653 = memref.load %arg3[%c94] : memref<98xf32, #tpu.memory_space<smem>>
      %654 = vector.extract_strided_slice %617 {offsets = [0, 3], sizes = [16, 16], strides = [1, 1]} : vector<16x22xf32> to vector<16x16xf32>
      %655 = vector.broadcast %653 : f32 to vector<16x16xf32>
      %656 = arith.mulf %655, %654 : vector<16x16xf32>
      %657 = arith.addf %647, %656 : vector<16x16xf32>
      %c46 = arith.constant 46 : index
      %658 = memref.load %arg3[%c46] : memref<98xf32, #tpu.memory_space<smem>>
      %659 = vector.extract_strided_slice %616 {offsets = [0, 4], sizes = [16, 16], strides = [1, 1]} : vector<16x22xf32> to vector<16x16xf32>
      %660 = vector.broadcast %658 : f32 to vector<16x16xf32>
      %661 = arith.mulf %660, %659 : vector<16x16xf32>
      %662 = arith.addf %652, %661 : vector<16x16xf32>
      %c95 = arith.constant 95 : index
      %663 = memref.load %arg3[%c95] : memref<98xf32, #tpu.memory_space<smem>>
      %664 = vector.extract_strided_slice %617 {offsets = [0, 4], sizes = [16, 16], strides = [1, 1]} : vector<16x22xf32> to vector<16x16xf32>
      %665 = vector.broadcast %663 : f32 to vector<16x16xf32>
      %666 = arith.mulf %665, %664 : vector<16x16xf32>
      %667 = arith.addf %657, %666 : vector<16x16xf32>
      %c47 = arith.constant 47 : index
      %668 = memref.load %arg3[%c47] : memref<98xf32, #tpu.memory_space<smem>>
      %669 = vector.extract_strided_slice %616 {offsets = [0, 5], sizes = [16, 16], strides = [1, 1]} : vector<16x22xf32> to vector<16x16xf32>
      %670 = vector.broadcast %668 : f32 to vector<16x16xf32>
      %671 = arith.mulf %670, %669 : vector<16x16xf32>
      %672 = arith.addf %662, %671 : vector<16x16xf32>
      %c96_168 = arith.constant 96 : index
      %673 = memref.load %arg3[%c96_168] : memref<98xf32, #tpu.memory_space<smem>>
      %674 = vector.extract_strided_slice %617 {offsets = [0, 5], sizes = [16, 16], strides = [1, 1]} : vector<16x22xf32> to vector<16x16xf32>
      %675 = vector.broadcast %673 : f32 to vector<16x16xf32>
      %676 = arith.mulf %675, %674 : vector<16x16xf32>
      %677 = arith.addf %667, %676 : vector<16x16xf32>
      %c48_169 = arith.constant 48 : index
      %678 = memref.load %arg3[%c48_169] : memref<98xf32, #tpu.memory_space<smem>>
      %679 = vector.extract_strided_slice %616 {offsets = [0, 6], sizes = [16, 16], strides = [1, 1]} : vector<16x22xf32> to vector<16x16xf32>
      %680 = vector.broadcast %678 : f32 to vector<16x16xf32>
      %681 = arith.mulf %680, %679 : vector<16x16xf32>
      %682 = arith.addf %672, %681 : vector<16x16xf32>
      %c97 = arith.constant 97 : index
      %683 = memref.load %arg3[%c97] : memref<98xf32, #tpu.memory_space<smem>>
      %684 = vector.extract_strided_slice %617 {offsets = [0, 6], sizes = [16, 16], strides = [1, 1]} : vector<16x22xf32> to vector<16x16xf32>
      %685 = vector.broadcast %683 : f32 to vector<16x16xf32>
      %686 = arith.mulf %685, %684 : vector<16x16xf32>
      %687 = arith.addf %677, %686 : vector<16x16xf32>
      %688 = arith.addf %682, %687 : vector<16x16xf32>
      %cst_170 = arith.constant 0.000000e+00 : f32
      %689 = vector.broadcast %cst_170 : f32 to vector<16x16xf32>
      %690 = arith.subf %689, %688 : vector<16x16xf32>
      %691 = math.exp %690 : vector<16x16xf32>
      %cst_171 = arith.constant 1.000000e+00 : f32
      %692 = vector.broadcast %cst_171 : f32 to vector<16x16xf32>
      %693 = arith.addf %692, %691 : vector<16x16xf32>
      %cst_172 = arith.constant 1.000000e+00 : f32
      %694 = vector.broadcast %cst_172 : f32 to vector<16x16xf32>
      %695 = arith.divf %694, %693 : vector<16x16xf32>
      %c0_173 = arith.constant 0 : index
      %c0_174 = arith.constant 0 : index
      %c0_175 = arith.constant 0 : index
      %c0_176 = arith.constant 0 : index
      %696 = vector.load %arg4[%c0_173, %c0_174, %c0_175, %c0_176] : memref<1x1x16x16xf32, #tpu.memory_space<vmem>>, vector<1x1x16x16xf32>
      %697 = vector.shape_cast %696 : vector<1x1x16x16xf32> to vector<16x16xf32>
      %698 = vector.shape_cast %695 : vector<16x16xf32> to vector<1x1x16x16xf32>
      tpu.vector_store %arg4[%c0_173, %c0_174, %c0_175, %c0_176], %698 {strides = array<i32>} : memref<1x1x16x16xf32, #tpu.memory_space<vmem>>, vector<1x1x16x16xf32>,
    } else {
    }
    return
  }
  func.func @transform_0(%arg0: i32, %arg1: i32) -> (i32, i32, i32) {
    %c0_i32 = arith.constant 0 : i32
    %c0_i32_0 = arith.constant 0 : i32
    return %arg0, %arg1, %c0_i32 : i32, i32, i32
  }
  func.func @transform_1(%arg0: i32, %arg1: i32) -> i32 {
    %c0_i32 = arith.constant 0 : i32
    %c0_i32_0 = arith.constant 0 : i32
    return %c0_i32 : i32
  }
  func.func @transform_2(%arg0: i32, %arg1: i32) -> (i32, i32, i32, i32) {
    %c0_i32 = arith.constant 0 : i32
    %c0_i32_0 = arith.constant 0 : i32
    %c0_i32_1 = arith.constant 0 : i32
    %c0_i32_2 = arith.constant 0 : i32
    return %arg0, %c0_i32, %c0_i32_0, %c0_i32_1 : i32, i32, i32, i32
  }
}

</mosaic_0001>

<bundles_post_ra>
// kernel: mul.0
= control target key start
LH: loop header
LB: loop body
LE: loop exit
PB: predicated region body
PF: predicated region fallthrough
CT: control target
= control target key end

     0   :  { %s34_s0 = inlined_call_operand.vmem [shape: f32[98], index: 0, kind: input, shape index: {}]   ;;  %s35_s1 = inlined_call_operand.vmem [shape: f32[98], index: 1, kind: input, shape index: {}]   ;;  %s36_s2 = inlined_call_operand.vmem [shape: f32[98], index: 2, kind: output, shape index: {}]  }
   0x1   :  { %v3_v0 = vld [vmem:[%s34_s0] sm:$0x1] }
   0x2   :  { %v4_v1 = vld [vmem:[%s35_s1] sm:$0x1] }
   0x3   :  { %v7_v2 = vmul.f32 %v4_v1, %v3_v0 }
   0x5   :  { %9 = vst [vmem:[%s36_s2] sm:$0x1] %v7_v2 }

// kernel: spatial_attention_forward.1
= control target key start
LH: loop header
LB: loop body
LE: loop exit
PB: predicated region body
PF: predicated region fallthrough
CT: control target
= control target key end

     0   :  { %s3677_s0 = inlined_call_operand.vmem [shape: f32[2,4,256], index: 0, kind: input, shape index: {}]   ;;  %s3678_s1 = inlined_call_operand.vmem [shape: f32[98], index: 1, kind: input, shape index: {}]   ;;  %s3679_s2 = inlined_call_operand.hbm [shape: f32[2,1,16,16], index: 2, kind: output, shape index: {}]  }
   0x1   :  { %3694 = sst [smem:[#allocation14_spill]] %s3677_s0 }
   0x2   :  { %3695 = sst [smem:[#allocation15_spill]] %s3678_s1 }
   0x3   :  { %7 = vsyncpa [#allocation8], 0 }
   0x4   :  { %8 = vsyncpa [#allocation7], 0 }
   0x5   :  { %10 = vsyncpa [#allocation7 + $0x1], 0  ;;  %s2386_s9 = smov 0   ;;  %s2388_s10 = smov 0  }
   0x6   :  { %s2390_s11 = smov 0   ;;  %s2392_s12 = smov 0  }
   0x7   :  { %s2394_s13 = smov 0   ;;  %s2396_s14 = smov 0  }
   0x8 LB: > { %3696 = sst [smem:[#allocation12_spill]] %s2344_s13  ;;  %s2013_s15 = sadd.s32 4294967295, %s2348_s14   ;;  %s2348_s14 = sphi %s2396_s14, %s16_s14   ;;  %s2344_s13 = sphi %s2394_s13, %s3713_s13   ;;  %s2340_s12 = sphi %s2392_s12, %s3712_s12   ;;  %s2336_s11 = sphi %s2390_s11, %s3716_s11   ;;  %s2332_s10 = sphi %s2388_s10, %s3715_s10   ;;  %s2328_s9 = sphi %s2386_s9, %s3714_s9  }
   0x9   : > { %s2014_s16 = sadd.s32 4294967294, %s2348_s14   ;;  %s28_s17 = sadd.s32 1, %s2344_s13 }
   0xa   : > { %s84_s18 = sadd.s32 1, %s2336_s11  ;;  %p30_p0 = scmp.ge.s32.totalorder %s28_s17, 2 }
   0xb   : > { %p94_p1 = scmp.ne.s32.totalorder %s2336_s11, %s2332_s10  ;;  %p95_p2 = scmp.eq.s32.totalorder %s2013_s15, 1 }
   0xc   : > { %p100_p3 = scmp.ne.s32.totalorder %s2332_s10, %s2328_s9  ;;  %s3718_s17 = smov (%p30_p0, %s28_s17), 0 }
   0xd   : > { %3697 = sst [smem:[#allocation13_spill]] %s3718_s17  ;;  %p2426_p4 = por %p95_p2, %p94_p1 }
   0xe   : > { %p101_p5 = scmp.eq.s32.totalorder %s2014_s16, 1  ;;  %s81_s20 = ssub.s32 %s2344_s13, %s3718_s17 }
   0xf   : > { %p2015_p6 = scmp.ge.s32.totalorder %s2348_s14, 1  ;;  %p82_p7 = scmp.eq.s32.totalorder %s81_s20, 0 }
  0x10   : > { %p2433_p8 = por %p101_p5, %p100_p3  ;;  %p108_p9 = scmp.lt.s32.totalorder %s2348_s14, 3 }
  0x11   : > { %s2439_s22 = scalar_select %p82_p7, %s2336_s11, %s84_s18  }
  0x12   : > { %p2441_p10 = pnand %p2015_p6, %p108_p9  ;;  %p2445_p11 = scmp.eq.s32.totalorder %s2013_s15, 0 }
  0x13   : > { %s3702_s1 = sld [smem:[#allocation15_spill]] }
  0x14   : > { %p2165_p12 = pneg %p2441_p10 }
  0x16   : > { %p2166_p13 = pnand %p2445_p11, %p2165_p12 }
  0x18   : > { %p2255_p1 = pneg %p2166_p13 }
  0x19   : > { %s121_s27 = sshll.u32 %s3702_s1, 4  ;;  %s122_s27 = int_to_ptr.vmem [resolvable:$true] %s121_s27 }
  0x1a   : > { %s2253_s28 = scalar_lea.vmem %s122_s27, 16  ;;  %p2261_p5 = scmp.lt.s32.totalorder %s122_s27, %s122_s27 }
  0x1b   : > { %p2254_p0 = scmp.ne.s32.totalorder %s122_s27, %s2253_s28  ;;  %p2262_p6 = scmp.lt.s32.totalorder %s2253_s28, %s2253_s28 }
  0x1d   : > { %p2256_p2 = pnand %p2255_p1, %p2254_p0  ;;  %p2263_p7 = por %p2262_p6, %p2261_p5 }
  0x1f   : > { %p2257_p3 = pneg %p2256_p2 }
  0x21   : > { %p2264_p9 = pnand %p2263_p7, %p2257_p3 }
  0x23   : > { %2267 = shalt.err (!%p2264_p9)
}
  0x24   : > { %s2350_s29 = smov [#allocation6]   ;;  %146 = sbr.rel (%p2441_p10) target bundleno = 755 (0x2f3), region = 28 }
  0x25   : > { %2168 = dma.vmem_to_smem (!%p2166_p13), %s122_s27, 16, %s2350_s29, [#allocation8]  }
  0x29   : > { %2319 = dma.done.wait (%p2445_p11), [#allocation8], 16  }
  0x2a   : > { %2321 = vsyncadd (%p2445_p11), [#allocation8], 4294967280 }
  0x2b   : > { %152 = sfence }
  0x2c   : > { %p173_p12 = scmp.lt.s32.totalorder %s2340_s12, 1  ;;  %v186_v0 = vlaneseq  ;;  %vm274_vm0 = vcmask 179200   ;;  %v2351_v2 = vmov 0.0   ;;  %v2352_v3 = vmov -inf   ;;  %s3705_s0 = sld [smem:[#allocation14_spill]] }
  0x2d   : > { %275 = vst.msk [vmem:[#allocation4] sm:$0xff] %vm274_vm0, %v2351_v2  ;;  %276 = vst.msk [vmem:[#allocation4 + $0x8] sm:$0xff] %vm274_vm0, %v2351_v2  ;;  %vm197_vm2 = vcmask 1043456   ;;  %v2353_v16 = vmov 1966171168   ;;  %s2354_s7 = smov 115  }
  0x2e   : > { %s174_s30 = scalar_select %p173_p12, %s2340_s12, 1  ;;  %vm2464_vm1 = vcmp.lt.s32.totalorder %v186_v0, 256  ;;  %279 = vst.msk [vmem:[#allocation5] sm:$0xff] %vm274_vm0, %v2351_v2  ;;  %280 = vst.msk [vmem:[#allocation5 + $0x8] sm:$0xff] %vm274_vm0, %v2351_v2  ;;  %v216_v17 = vunpack.c.l.s4 %v2353_v16  ;;  %v219_v27 = vshrl.u32 %v186_v0, 7  ;;  %vm277_vm3 = vcmask 177152  }
  0x2f   : > { %190 = vst.msk [vmem:[#allocation2] sm:$0x3] %vm2464_vm1, %v2351_v2  ;;  %191 = vst.msk [vmem:[#allocation3] sm:$0x3] %vm2464_vm1, %v2352_v3  ;;  %s2355_s8 = smov 3   ;;  %s2356_s15 = smov 99  }
  0x30   : > { %s2157_s3 = sshll.u32 %s174_s30, 3  ;;  %v217_v26 = vunpack.c.0.s8 %v216_v17  ;;  %s2357_s16 = smov 83   ;;  %281 = vst.msk [vmem:[#allocation5 + $0x10] sm:$0x3f] %vm277_vm3, %v2351_v2  ;;  %278 = vst.msk [vmem:[#allocation4 + $0x10] sm:$0x3f] %vm277_vm3, %v2351_v2 }
  0x31   : > { %s2358_s18 = smov 67   ;;  %s2359_s20 = smov 51   ;;  %vm291_vm4 = vcmask 147480   ;;  %vm1905_vm5 = vcmask 130048  }
  0x32   : > { %s181_s6 = scalar_lea.vmem %s3705_s0, %s2157_s3  ;;  %v220_v37 = vsub.s32 %v217_v26, %v219_v27  ;;  %s2360_s23 = smov 35  }
  0x33   : > { %v192_v4 = vld [vmem:[%s181_s6] sm:$0xff]  ;;  %s2361_s24 = smov 19   ;;  %s2494_s25 = sld [smem:[#allocation6 + $0x1]] }
  0x34   : > { %v195_v5 = vcombine.high %v192_v4, %v192_v4  ;;  %v198_v6 = vsel %vm197_vm2, %v192_v4, 0.0  ;;  %v237_v7 = vsel %vm197_vm2, %v192_v4, -inf  ;;  %s2498_s26 = sld [smem:[#allocation6 + $0x32]]  ;;  %s3688_s29 = smov 127  }
  0x35   : > { %v199_v8 = vrot.slane %v198_v6, 4  ;;  %v238_v9 = vrot.slane %v237_v7, 4  ;;  %s2503_s27 = sld [smem:[#allocation6 + $0x2]]  ;;  %s3686_s4 = smov 126  }
  0x36   : > { %v205_v10 = vsel %vm197_vm2, %v195_v5, 0.0  ;;  %v244_v11 = vsel %vm197_vm2, %v195_v5, -inf  ;;  %v193_v43 = vld [vmem:[#allocation2] sm:$0x3]  ;;  %v236_v44 = vld [vmem:[#allocation3] sm:$0x3] }
  0x37   : > { %v200_v12 = vadd.f32 %v199_v8, %v198_v6  ;;  %v206_v13 = vrot.slane %v205_v10, 4  ;;  %v239_v14 = vmax.f32 %v237_v7, %v238_v9  ;;  %v245_v15 = vrot.slane %v244_v11, 4  ;;  %s2515_s28 = sld [smem:[#allocation6 + $0x33]]  ;;  %s3708_s0 = smov 125  }
  0x38   : > { %s2524_s30 = sld [smem:[#allocation6 + $0x3]]  ;;  %s3709_s1 = smov 123  }
  0x39   : > { %v201_v18 = vrot.slane %v200_v12, 2  ;;  %v207_v19 = vadd.f32 %v206_v13, %v205_v10  ;;  %v240_v20 = vrot.slane %v239_v14, 2  ;;  %v246_v21 = vmax.f32 %v244_v11, %v245_v15  ;;  %s2533_s3 = sld [smem:[#allocation6 + $0x34]]  ;;  %s3710_s17 = smov 122  }
  0x3a   : > { %v620_v1 = vstv %s2494_s25  ;;  %v634_v7 = vstv %s2498_s26  ;;  %s2542_s5 = sld [smem:[#allocation6 + $0x4]]  ;;  %s3684_s26 = smov 122  }
  0x3b   : > { %v202_v22 = vadd.f32 %v201_v18, %v200_v12  ;;  %v208_v23 = vrot.slane %v207_v19, 2  ;;  %v241_v24 = vmax.f32 %v239_v14, %v240_v20  ;;  %v247_v25 = vrot.slane %v246_v21, 2  ;;  %s2551_s6 = sld [smem:[#allocation6 + $0x35]]  ;;  %s3711_s13 = smov 127  }
  0x3c   : > { %v648_v11 = vstv %s2503_s27  ;;  %s2614_s25 = sld [smem:[#allocation6 + $0x39]] }
  0x3d   : > { %v203_v28 = vrot.slane %v202_v22, 1  ;;  %v209_v29 = vadd.f32 %v208_v23, %v207_v19  ;;  %v242_v30 = vrot.slane %v241_v24, 1  ;;  %v248_v31 = vmax.f32 %v246_v21, %v247_v25  ;;  %s2625_s27 = sld [smem:[#allocation6 + $0x9]] }
  0x3e   : > { %v662_v15 = vstv %s2515_s28  ;;  %v676_v19 = vstv %s2524_s30  ;;  %s2636_s28 = sld [smem:[#allocation6 + $0x3a]] }
  0x3f   : > { %v204_v32 = vadd.f32 %v203_v28, %v202_v22  ;;  %v210_v33 = vrot.slane %v209_v29, 1  ;;  %v243_v34 = vmax.f32 %v241_v24, %v242_v30  ;;  %v249_v35 = vrot.slane %v248_v31, 1  ;;  %s2654_s30 = sld [smem:[#allocation6 + $0x3b]] }
  0x40   : > { %v690_v23 = vstv %s2533_s3  ;;  %v704_v27 = vstv %s2542_s5  ;;  %s2663_s3 = sld [smem:[#allocation6 + $0xb]] }
  0x41   : > { %v211_v36 = vadd.f32 %v210_v33, %v209_v29  ;;  %v250_v38 = vmax.f32 %v248_v31, %v249_v35  ;;  %v718_v31 = vstv %s2551_s6  ;;  %s2672_s5 = sld [smem:[#allocation6 + $0x3c]] }
  0x42   : > { %s2679_s6 = sld [smem:[#allocation6 + $0xc]] }
  0x43   : > { %v214_v39 = vcombine.low %v204_v32, %v211_v36  ;;  %v253_v40 = vcombine.low %v243_v34, %v250_v38 }
  0x45   : > { %v221_v41 = vrot.slane %v214_v39, %v220_v37  ;;  %v260_v42 = vrot.slane %v253_v40, %v220_v37 }
  0x47   : > { %v228_v45 = vrot.slane %v221_v41, %v220_v37  ;;  %v267_v46 = vrot.slane %v260_v42, %v220_v37 }
  0x49   : > { %v230_v47 = vadd.f32 %v228_v45, %v193_v43  ;;  %v269_v48 = vmax.f32 %v236_v44, %v267_v46 }
  0x4b   : > { %235 = vst.msk [vmem:[#allocation2] sm:$0x3] %vm2464_vm1, %v230_v47  ;;  %270 = vst.msk [vmem:[#allocation3] sm:$0x3] %vm2464_vm1, %v269_v48 }
  0x52   : > { %v2025_v49 = vld [vmem:[#allocation2] ss:$0 sm:$0xff]  ;;  %v2026_v50 = vld [vmem:[#allocation3] ss:$0 sm:$0xff]  ;;  %v2040_v51 = vld [vmem:[#allocation3 + $0x1] ss:$0 sm:$0xff] }
  0x53   : > { %309 = vrot.lane.b32.xlu1 %v2025_v49, %s2354_s7  ;;  %288 = vrot.lane.b32.xlu0 %v2025_v49, %s2355_s8  ;;  %v2039_v52 = vld [vmem:[#allocation2 + $0x1] ss:$0 sm:$0xff] }
  0x57   : > { %319 = vrot.lane.b32.xlu1 %v2026_v50, %s2354_s7  ;;  %299 = vrot.lane.b32.xlu0 %v2026_v50, %s2355_s8 }
  0x5b   : > { %339 = vrot.lane.b32.xlu1 %v2026_v50, %s2356_s15  ;;  %329 = vrot.lane.b32.xlu0 %v2025_v49, %s2356_s15 }
  0x5f   : > { %359 = vrot.lane.b32.xlu1 %v2026_v50, %s2357_s16  ;;  %349 = vrot.lane.b32.xlu0 %v2025_v49, %s2357_s16 }
  0x63   : > { %379 = vrot.lane.b32.xlu1 %v2026_v50, %s2358_s18  ;;  %369 = vrot.lane.b32.xlu0 %v2025_v49, %s2358_s18 }
  0x67   : > { %399 = vrot.lane.b32.xlu1 %v2026_v50, %s2359_s20  ;;  %389 = vrot.lane.b32.xlu0 %v2025_v49, %s2359_s20 }
  0x6b   : > { %419 = vrot.lane.b32.xlu1 %v2026_v50, %s2360_s23  ;;  %409 = vrot.lane.b32.xlu0 %v2025_v49, %s2360_s23 }
  0x6f   : > { %439 = vrot.lane.b32.xlu1 %v2026_v50, %s2361_s24  ;;  %429 = vrot.lane.b32.xlu0 %v2025_v49, %s2361_s24 }
  0x73   : > { %459 = vrot.lane.b32.xlu1 %v2040_v51, %s2355_s8  ;;  %449 = vrot.lane.b32.xlu0 %v2039_v52, %s2355_s8  ;;  %s2560_s8 = sld [smem:[#allocation6 + $0x5]] }
  0x77   : > { %479 = vrot.lane.b32.xlu1 %v2040_v51, %s2354_s7  ;;  %469 = vrot.lane.b32.xlu0 %v2039_v52, %s2354_s7  ;;  %s3690_s7 = smov 125  }
  0x79   : > { %v732_v35 = vstv %s2560_s8  ;;  %s2686_s8 = sld [smem:[#allocation6 + $0x3d]] }
  0x7b   : > { %499 = vrot.lane.b32.xlu1 %v2040_v51, %s2356_s15  ;;  %489 = vrot.lane.b32.xlu0 %v2039_v52, %s2356_s15  ;;  %s2569_s15 = sld [smem:[#allocation6 + $0x36]] }
  0x7f   : > { %519 = vrot.lane.b32.xlu1 %v2040_v51, %s2357_s16  ;;  %509 = vrot.lane.b32.xlu0 %v2039_v52, %s2357_s16  ;;  %s3680_s16 = smov 124  }
  0x81   : > { %v746_v41 = vstv %s2569_s15  ;;  %s2645_s15 = sld [smem:[#allocation6 + $0xa]] }
  0x83   : > { %539 = vrot.lane.b32.xlu1 %v2040_v51, %s2358_s18  ;;  %529 = vrot.lane.b32.xlu0 %v2039_v52, %s2358_s18  ;;  %s2578_s18 = sld [smem:[#allocation6 + $0x6]] }
  0x87   : > { %559 = vrot.lane.b32.xlu1 %v2040_v51, %s2359_s20  ;;  %549 = vrot.lane.b32.xlu0 %v2039_v52, %s2359_s20  ;;  %s2594_s20 = sld [smem:[#allocation6 + $0x37]] }
  0x89   : > { %v760_v47 = vstv %s2578_s18  ;;  %s2695_s18 = sld [smem:[#allocation6 + $0xd]] }
  0x8b   : > { %579 = vrot.lane.b32.xlu1 %v2040_v51, %s2360_s23  ;;  %569 = vrot.lane.b32.xlu0 %v2039_v52, %s2360_s23  ;;  %s3682_s23 = smov 123  }
  0x8d   : > { %v774_v50 = vstv %s2594_s20  ;;  %s2704_s20 = sld [smem:[#allocation6 + $0x3e]] }
  0x8f   : > { %599 = vrot.lane.b32.xlu1 %v2040_v51, %s2361_s24  ;;  %589 = vrot.lane.b32.xlu0 %v2039_v52, %s2361_s24  ;;  %s2605_s24 = sld [smem:[#allocation6 + $0x8]] }
  0xc5   : > { %v310_v53 = vpop.permute.xlu1 %309  ;;  %v289_v54 = vpop.permute.xlu0 %288 }
  0xc6   : > { %312 = vst.msk [vmem:[#allocation4 + $0x4] sm:$0x1] %vm291_vm4, %v310_v53  ;;  %292 = vst.msk [vmem:[#allocation4 + $0x3] sm:$0x1] %vm291_vm4, %v289_v54  ;;  %v804_v54 = vstv %s2605_s24  ;;  %s2711_s24 = sld [smem:[#allocation6 + $0xf]] }
  0xc9   : > { %v320_v55 = vpop.permute.xlu1 %319  ;;  %v300_v56 = vpop.permute.xlu0 %299 }
  0xca   : > { %322 = vst.msk [vmem:[#allocation5 + $0x4] sm:$0x1] %vm291_vm4, %v320_v55  ;;  %302 = vst.msk [vmem:[#allocation5 + $0x3] sm:$0x1] %vm291_vm4, %v300_v56 }
  0xcd   : > { %v340_v57 = vpop.permute.xlu1 %339  ;;  %v330_v58 = vpop.permute.xlu0 %329 }
  0xce   : > { %342 = vst.msk [vmem:[#allocation5 + $0x5] sm:$0x1] %vm291_vm4, %v340_v57  ;;  %332 = vst.msk [vmem:[#allocation4 + $0x5] sm:$0x1] %vm291_vm4, %v330_v58  ;;  %v818_v58 = vstv %s2614_s25  ;;  %s2718_s25 = sld [smem:[#allocation6 + $0x40]] }
  0xd1   : > { %v360_v59 = vpop.permute.xlu1 %359  ;;  %v350_v60 = vpop.permute.xlu0 %349 }
  0xd2   : > { %362 = vst.msk [vmem:[#allocation5 + $0x6] sm:$0x1] %vm291_vm4, %v360_v59  ;;  %352 = vst.msk [vmem:[#allocation4 + $0x6] sm:$0x1] %vm291_vm4, %v350_v60 }
  0xd5   : > { %v380_v61 = vpop.permute.xlu1 %379  ;;  %v370_v62 = vpop.permute.xlu0 %369 }
  0xd6   : > { %382 = vst.msk [vmem:[#allocation5 + $0x7] sm:$0x1] %vm291_vm4, %v380_v61  ;;  %372 = vst.msk [vmem:[#allocation4 + $0x7] sm:$0x1] %vm291_vm4, %v370_v62  ;;  %v832_v61 = vstv %s2625_s27  ;;  %s2727_s27 = sld [smem:[#allocation6 + $0x10]] }
  0xd9   : > { %v400_v63 = vpop.permute.xlu1 %399  ;;  %v390_v0 = vpop.permute.xlu0 %389 }
  0xda   : > { %402 = vst.msk [vmem:[#allocation5 + $0x8] sm:$0x1] %vm291_vm4, %v400_v63  ;;  %392 = vst.msk [vmem:[#allocation4 + $0x8] sm:$0x1] %vm291_vm4, %v390_v0  ;;  %v846_v0 = vstv %s2636_s28  ;;  %s2736_s28 = sld [smem:[#allocation6 + $0x41]] }
  0xdd   : > { %v420_v2 = vpop.permute.xlu1 %419  ;;  %v410_v3 = vpop.permute.xlu0 %409  ;;  %v2505_v4 = vld [vmem:[#allocation4] sm:$0xff]  ;;  %v2512_v6 = vld [vmem:[#allocation5] sm:$0xff] }
  0xde   : > { %422 = vst.msk [vmem:[#allocation5 + $0x9] sm:$0x1] %vm291_vm4, %v420_v2  ;;  %412 = vst.msk [vmem:[#allocation4 + $0x9] sm:$0x1] %vm291_vm4, %v410_v3  ;;  %v621_v5 = vmul.f32 %v620_v1, %v2505_v4  ;;  %v635_v10 = vmul.f32 %v634_v7, %v2512_v6  ;;  %v649_v14 = vmul.f32 %v648_v11, %v2505_v4  ;;  %v860_v3 = vstv %s2645_s15  ;;  %s2743_s15 = sld [smem:[#allocation6 + $0x11]] }
  0xdf   : > { %v663_v18 = vmul.f32 %v662_v15, %v2512_v6  ;;  %v677_v22 = vmul.f32 %v676_v19, %v2505_v4  ;;  %v691_v26 = vmul.f32 %v690_v23, %v2512_v6  ;;  %v705_v30 = vmul.f32 %v704_v27, %v2505_v4 }
  0xe0   : > { %625 = vrot.lane.b32.xlu0 %v621_v5, %s3688_s29  ;;  %v719_v34 = vmul.f32 %v718_v31, %v2512_v6  ;;  %v733_v39 = vmul.f32 %v732_v35, %v2505_v4  ;;  %v747_v45 = vmul.f32 %v746_v41, %v2512_v6  ;;  %v761_v48 = vmul.f32 %v760_v47, %v2505_v4 }
  0xe1   : > { %v440_v8 = vpop.permute.xlu1 %439  ;;  %v430_v9 = vpop.permute.xlu0 %429  ;;  %v775_v51 = vmul.f32 %v774_v50, %v2512_v6  ;;  %v2622_v53 = vld [vmem:[#allocation4 + $0x1] sm:$0xff]  ;;  %v2633_v57 = vld [vmem:[#allocation5 + $0x1] sm:$0xff] }
  0xe2   : > { %442 = vst.msk [vmem:[#allocation5 + $0xa] sm:$0x1] %vm291_vm4, %v440_v8  ;;  %432 = vst.msk [vmem:[#allocation4 + $0xa] sm:$0x1] %vm291_vm4, %v430_v9  ;;  %v805_v55 = vmul.f32 %v804_v54, %v2622_v53  ;;  %v819_v59 = vmul.f32 %v818_v58, %v2633_v57  ;;  %v833_v62 = vmul.f32 %v832_v61, %v2622_v53  ;;  %v874_v8 = vstv %s2654_s30  ;;  %s2750_s30 = sld [smem:[#allocation6 + $0x42]] }
  0xe3   : > { %v861_v5 = vmul.f32 %v860_v3, %v2622_v53  ;;  %v875_v9 = vmul.f32 %v874_v8, %v2633_v57 }
  0xe4   : > { %639 = vrot.lane.b32.xlu0 %v635_v10, %s3688_s29 }
  0xe5   : > { %v460_v12 = vpop.permute.xlu1 %459  ;;  %v450_v13 = vpop.permute.xlu0 %449 }
  0xe6   : > { %462 = vst.msk [vmem:[#allocation5 + $0xb] sm:$0x1] %vm291_vm4, %v460_v12  ;;  %452 = vst.msk [vmem:[#allocation4 + $0xb] sm:$0x1] %vm291_vm4, %v450_v13 }
  0xe8   : > { %653 = vrot.lane.b32.xlu0 %v649_v14, %s3686_s4  ;;  %v902_v14 = vstv %s2672_s5  ;;  %s2768_s5 = sld [smem:[#allocation6 + $0x43]] }
  0xe9   : > { %v480_v16 = vpop.permute.xlu1 %479  ;;  %v470_v17 = vpop.permute.xlu0 %469 }
  0xea   : > { %482 = vst.msk [vmem:[#allocation5 + $0xc] sm:$0x1] %vm291_vm4, %v480_v16  ;;  %472 = vst.msk [vmem:[#allocation4 + $0xc] sm:$0x1] %vm291_vm4, %v470_v17  ;;  %v916_v17 = vstv %s2679_s6  ;;  %s2779_s6 = sld [smem:[#allocation6 + $0x13]] }
  0xec   : > { %667 = vrot.lane.b32.xlu0 %v663_v18, %s3686_s4 }
  0xed   : > { %v500_v20 = vpop.permute.xlu1 %499  ;;  %v490_v21 = vpop.permute.xlu0 %489 }
  0xee   : > { %502 = vst.msk [vmem:[#allocation5 + $0xd] sm:$0x1] %vm291_vm4, %v500_v20  ;;  %492 = vst.msk [vmem:[#allocation4 + $0xd] sm:$0x1] %vm291_vm4, %v490_v21  ;;  %v930_v21 = vstv %s2686_s8  ;;  %s2790_s8 = sld [smem:[#allocation6 + $0x44]] }
  0xf0   : > { %681 = vrot.lane.b32.xlu0 %v677_v22, %s3690_s7 }
  0xf1   : > { %v520_v24 = vpop.permute.xlu1 %519  ;;  %v510_v25 = vpop.permute.xlu0 %509 }
  0xf2   : > { %522 = vst.msk [vmem:[#allocation5 + $0xe] sm:$0x1] %vm291_vm4, %v520_v24  ;;  %512 = vst.msk [vmem:[#allocation4 + $0xe] sm:$0x1] %vm291_vm4, %v510_v25  ;;  %v944_v25 = vstv %s2695_s18  ;;  %s2801_s18 = sld [smem:[#allocation6 + $0x14]] }
  0xf4   : > { %695 = vrot.lane.b32.xlu0 %v691_v26, %s3690_s7  ;;  %v945_v26 = vmul.f32 %v944_v25, %v2622_v53 }
  0xf5   : > { %v540_v28 = vpop.permute.xlu1 %539  ;;  %v530_v29 = vpop.permute.xlu0 %529 }
  0xf6   : > { %542 = vst.msk [vmem:[#allocation5 + $0xf] sm:$0x1] %vm291_vm4, %v540_v28  ;;  %532 = vst.msk [vmem:[#allocation4 + $0xf] sm:$0x1] %vm291_vm4, %v530_v29  ;;  %v958_v28 = vstv %s2704_s20  ;;  %s2812_s20 = sld [smem:[#allocation6 + $0x45]] }
  0xf7   : > { %v959_v29 = vmul.f32 %v958_v28, %v2633_v57 }
  0xf8   : > { %709 = vrot.lane.b32.xlu0 %v705_v30, %s3680_s16 }
  0xf9   : > { %v560_v32 = vpop.permute.xlu1 %559  ;;  %v550_v33 = vpop.permute.xlu0 %549 }
  0xfa   : > { %562 = vst.msk [vmem:[#allocation5 + $0x10] sm:$0x1] %vm291_vm4, %v560_v32  ;;  %552 = vst.msk [vmem:[#allocation4 + $0x10] sm:$0x1] %vm291_vm4, %v550_v33  ;;  %v988_v32 = vstv %s2711_s24  ;;  %s2821_s24 = sld [smem:[#allocation6 + $0x16]] }
  0xfc   : > { %723 = vrot.lane.b32.xlu0 %v719_v34, %s3680_s16 }
  0xfd   : > { %v580_v36 = vpop.permute.xlu1 %579  ;;  %v570_v37 = vpop.permute.xlu0 %569  ;;  %v2581_v38 = vld [vmem:[#allocation4 + $0x8] sm:$0xff]  ;;  %v2592_v42 = vld [vmem:[#allocation5 + $0x8] sm:$0xff] }
  0xfe   : > { %582 = vst.msk [vmem:[#allocation5 + $0x11] sm:$0x1] %vm291_vm4, %v580_v36  ;;  %572 = vst.msk [vmem:[#allocation4 + $0x11] sm:$0x1] %vm291_vm4, %v570_v37  ;;  %v622_v40 = vmul.f32 %v620_v1, %v2581_v38  ;;  %v636_v46 = vmul.f32 %v634_v7, %v2592_v42  ;;  %v650_v49 = vmul.f32 %v648_v11, %v2581_v38  ;;  %v888_v11 = vstv %s2663_s3  ;;  %s2759_s3 = sld [smem:[#allocation6 + $0x12]] }
  0xff   : > { %v664_v52 = vmul.f32 %v662_v15, %v2592_v42  ;;  %v678_v56 = vmul.f32 %v676_v19, %v2581_v38  ;;  %v692_v60 = vmul.f32 %v690_v23, %v2592_v42  ;;  %v706_v63 = vmul.f32 %v704_v27, %v2581_v38 }
 0x100   : > { %737 = vrot.lane.b32.xlu0 %v733_v39, %s3682_s23  ;;  %627 = vrot.lane.b32.xlu1 %v622_v40, %s3688_s29  ;;  %v847_v1 = vmul.f32 %v846_v0, %v2633_v57  ;;  %v720_v2 = vmul.f32 %v718_v31, %v2592_v42  ;;  %v734_v7 = vmul.f32 %v732_v35, %v2581_v38  ;;  %v2724_v31 = vld [vmem:[#allocation4 + $0x2] sm:$0xff]  ;;  %v2733_v35 = vld [vmem:[#allocation5 + $0x2] sm:$0xff]  ;;  %v1002_v36 = vstv %s2718_s25  ;;  %s2823_s25 = sld [smem:[#allocation6]] }
 0x101   : > { %v600_v43 = vpop.permute.xlu1 %599  ;;  %v590_v44 = vpop.permute.xlu0 %589  ;;  %v748_v10 = vmul.f32 %v746_v41, %v2592_v42  ;;  %v889_v12 = vmul.f32 %v888_v11, %v2622_v53  ;;  %v762_v13 = vmul.f32 %v760_v47, %v2581_v38  ;;  %v903_v15 = vmul.f32 %v902_v14, %v2633_v57  ;;  %v2693_v18 = vld [vmem:[#allocation4 + $0x9] sm:$0xff]  ;;  %v2702_v22 = vld [vmem:[#allocation5 + $0x9] sm:$0xff] }
 0x102   : > { %602 = vst.msk [vmem:[#allocation5 + $0x12] sm:$0x1] %vm291_vm4, %v600_v43  ;;  %592 = vst.msk [vmem:[#allocation4 + $0x12] sm:$0x1] %vm291_vm4, %v590_v44  ;;  %v776_v16 = vmul.f32 %v774_v50, %v2592_v42  ;;  %v917_v19 = vmul.f32 %v916_v17, %v2622_v53  ;;  %v806_v20 = vmul.f32 %v804_v54, %v2693_v18  ;;  %v1016_v40 = vstv %s2727_s27  ;;  %s2832_s27 = sld [smem:[#allocation6 + $0x47]] }
 0x103   : > { %v931_v23 = vmul.f32 %v930_v21, %v2633_v57  ;;  %v820_v24 = vmul.f32 %v818_v58, %v2702_v22  ;;  %v834_v27 = vmul.f32 %v832_v61, %v2693_v18  ;;  %v848_v30 = vmul.f32 %v846_v0, %v2702_v22 }
 0x104   : > { %751 = vrot.lane.b32.xlu0 %v747_v45, %s3682_s23  ;;  %641 = vrot.lane.b32.xlu1 %v636_v46, %s3688_s29  ;;  %v989_v33 = vmul.f32 %v988_v32, %v2724_v31  ;;  %v862_v34 = vmul.f32 %v860_v3, %v2693_v18  ;;  %v1003_v37 = vmul.f32 %v1002_v36, %v2733_v35  ;;  %v1030_v44 = vstv %s2736_s28  ;;  %s2864_s28 = sld [smem:[#allocation6 + $0x48]] }
 0x105   : > { %v876_v39 = vmul.f32 %v874_v8, %v2702_v22  ;;  %v1017_v41 = vmul.f32 %v1016_v40, %v2724_v31  ;;  %v890_v43 = vmul.f32 %v888_v11, %v2693_v18  ;;  %v1031_v45 = vmul.f32 %v1030_v44, %v2733_v35  ;;  %v2810_v8 = vld [vmem:[#allocation5 + $0xa] sm:$0xff] }
 0x106   : > { %v904_v46 = vmul.f32 %v902_v14, %v2702_v22  ;;  %v1044_v47 = vstv %s2743_s15  ;;  %v1058_v50 = vstv %s2750_s30  ;;  %v932_v54 = vmul.f32 %v930_v21, %v2702_v22  ;;  %v2844_v21 = vld [vmem:[#allocation4 + $0x3] sm:$0xff]  ;;  %s2884_s15 = sld [smem:[#allocation6 + $0x18]] }
 0x107   : > { %v1100_v0 = vstv %s2779_s6  ;;  %v1004_v11 = vmul.f32 %v1002_v36, %v2810_v8  ;;  %s2900_s30 = sld [smem:[#allocation6 + $0x49]] }
 0x108   : > { %765 = vrot.lane.b32.xlu0 %v761_v48, %s3684_s26  ;;  %655 = vrot.lane.b32.xlu1 %v650_v49, %s3686_s4  ;;  %v1045_v48 = vmul.f32 %v1044_v47, %v2724_v31  ;;  %v918_v49 = vmul.f32 %v916_v17, %v2693_v18  ;;  %v1101_v3 = vmul.f32 %v1100_v0, %v2724_v31  ;;  %s2951_s6 = sld [smem:[#allocation6 + $0x1a]] }
 0x10c   : > { %779 = vrot.lane.b32.xlu0 %v775_v51, %s3684_s26  ;;  %669 = vrot.lane.b32.xlu1 %v664_v52, %s3686_s4  ;;  %v1059_v52 = vmul.f32 %v1058_v50, %v2733_v35 }
 0x110   : > { %809 = vrot.lane.b32.xlu0 %v805_v55, %s3688_s29  ;;  %683 = vrot.lane.b32.xlu1 %v678_v56, %s3690_s7  ;;  %v1072_v55 = vstv %s2759_s3  ;;  %s2917_s3 = sld [smem:[#allocation6 + $0x19]] }
 0x111   : > { %v1073_v58 = vmul.f32 %v1072_v55, %v2724_v31 }
 0x114   : > { %823 = vrot.lane.b32.xlu0 %v819_v59, %s3688_s29  ;;  %697 = vrot.lane.b32.xlu1 %v692_v60, %s3690_s7  ;;  %v946_v59 = vmul.f32 %v944_v25, %v2693_v18  ;;  %v1086_v60 = vstv %s2768_s5  ;;  %s2936_s5 = sld [smem:[#allocation6 + $0x4a]] }
 0x118   : > { %837 = vrot.lane.b32.xlu0 %v833_v62, %s3686_s4  ;;  %711 = vrot.lane.b32.xlu1 %v706_v63, %s3680_s16  ;;  %v1087_v62 = vmul.f32 %v1086_v60, %v2733_v35  ;;  %v960_v63 = vmul.f32 %v958_v28, %v2702_v22 }
 0x11c   : > { %851 = vrot.lane.b32.xlu0 %v847_v1, %s3686_s4  ;;  %725 = vrot.lane.b32.xlu1 %v720_v2, %s3680_s16  ;;  %v2799_v1 = vld [vmem:[#allocation4 + $0xa] sm:$0xff] }
 0x120   : > { %865 = vrot.lane.b32.xlu0 %v861_v5, %s3690_s7  ;;  %739 = vrot.lane.b32.xlu1 %v734_v7, %s3682_s23  ;;  %v990_v5 = vmul.f32 %v988_v32, %v2799_v1  ;;  %v1114_v7 = vstv %s2790_s8  ;;  %s2964_s8 = sld [smem:[#allocation6 + $0x4b]] }
 0x124   : > { %879 = vrot.lane.b32.xlu0 %v875_v9, %s3690_s7  ;;  %753 = vrot.lane.b32.xlu1 %v748_v10, %s3682_s23  ;;  %v1115_v10 = vmul.f32 %v1114_v7, %v2733_v35 }
 0x128   : > { %893 = vrot.lane.b32.xlu0 %v889_v12, %s3680_s16  ;;  %767 = vrot.lane.b32.xlu1 %v762_v13, %s3684_s26  ;;  %v1128_v12 = vstv %s2801_s18  ;;  %s2979_s18 = sld [smem:[#allocation6 + $0x1b]] }
 0x129   : > { %v1129_v14 = vmul.f32 %v1128_v12, %v2724_v31 }
 0x12c   : > { %907 = vrot.lane.b32.xlu0 %v903_v15, %s3680_s16  ;;  %781 = vrot.lane.b32.xlu1 %v776_v16, %s3684_s26  ;;  %v1018_v15 = vmul.f32 %v1016_v40, %v2799_v1  ;;  %v1142_v16 = vstv %s2812_s20  ;;  %s2997_s20 = sld [smem:[#allocation6 + $0x4c]] }
 0x130   : > { %921 = vrot.lane.b32.xlu0 %v917_v19, %s3682_s23  ;;  %811 = vrot.lane.b32.xlu1 %v806_v20, %s3688_s29  ;;  %v1143_v19 = vmul.f32 %v1142_v16, %v2733_v35  ;;  %v1032_v20 = vmul.f32 %v1030_v44, %v2810_v8 }
 0x134   : > { %935 = vrot.lane.b32.xlu0 %v931_v23, %s3682_s23  ;;  %825 = vrot.lane.b32.xlu1 %v820_v24, %s3688_s29  ;;  %v1172_v23 = vstv %s2821_s24  ;;  %v608_v24 = vstv %s2823_s25  ;;  %s3013_s24 = sld [smem:[#allocation6 + $0x1d]] }
 0x135   : > { %v609_v28 = vmul.f32 %v608_v24, %v2505_v4  ;;  %s3064_s25 = sld [smem:[#allocation6 + $0xe]] }
 0x138   : > { %949 = vrot.lane.b32.xlu0 %v945_v26, %s3684_s26  ;;  %839 = vrot.lane.b32.xlu1 %v834_v27, %s3686_s4  ;;  %v1173_v26 = vmul.f32 %v1172_v23, %v2844_v21  ;;  %v1046_v27 = vmul.f32 %v1044_v47, %v2799_v1  ;;  %v1074_v47 = vmul.f32 %v1072_v55, %v2799_v1 }
 0x13c   : > { %963 = vrot.lane.b32.xlu0 %v959_v29, %s3684_s26  ;;  %853 = vrot.lane.b32.xlu1 %v848_v30, %s3686_s4  ;;  %v2861_v29 = vld [vmem:[#allocation5 + $0x3] sm:$0xff]  ;;  %v1186_v30 = vstv %s2832_s27  ;;  %s3084_s27 = sld [smem:[#allocation6 + $0x3f]] }
 0x13d   : > { %v1187_v4 = vmul.f32 %v1186_v30, %v2861_v29 }
 0x140   : > { %993 = vrot.lane.b32.xlu0 %v989_v33, %s3688_s29  ;;  %867 = vrot.lane.b32.xlu1 %v862_v34, %s3690_s7 }
 0x144   : > { %1007 = vrot.lane.b32.xlu0 %v1003_v37, %s3688_s29  ;;  %881 = vrot.lane.b32.xlu1 %v876_v39, %s3690_s7  ;;  %v1060_v37 = vmul.f32 %v1058_v50, %v2810_v8  ;;  %v1214_v50 = vstv %s2864_s28  ;;  %s3098_s28 = sld [smem:[#allocation6 + $0x50]] }
 0x145   : > { %v1215_v55 = vmul.f32 %v1214_v50, %v2861_v29 }
 0x148   : > { %1021 = vrot.lane.b32.xlu0 %v1017_v41, %s3686_s4  ;;  %895 = vrot.lane.b32.xlu1 %v890_v43, %s3680_s16 }
 0x14c   : > { %1035 = vrot.lane.b32.xlu0 %v1031_v45, %s3686_s4  ;;  %909 = vrot.lane.b32.xlu1 %v904_v46, %s3680_s16 }
 0x150   : > { %1049 = vrot.lane.b32.xlu0 %v1045_v48, %s3690_s7  ;;  %923 = vrot.lane.b32.xlu1 %v918_v49, %s3682_s23 }
 0x152   : > { %v2772_v51 = vpop.permute.xlu0 %625 }
 0x153   : > { %v631_v33 = vadd.f32 %v2772_v51, %v609_v28 }
 0x154   : > { %1063 = vrot.lane.b32.xlu0 %v1059_v52, %s3690_s7  ;;  %937 = vrot.lane.b32.xlu1 %v932_v54, %s3682_s23 }
 0x156   : > { %v2783_v56 = vpop.permute.xlu0 %639 }
 0x158   : > { %1077 = vrot.lane.b32.xlu0 %v1073_v58, %s3680_s16  ;;  %951 = vrot.lane.b32.xlu1 %v946_v59, %s3684_s26  ;;  %v1088_v59 = vmul.f32 %v1086_v60, %v2810_v8 }
 0x15a   : > { %v654_v61 = vpop.permute.xlu0 %653 }
 0x15b   : > { %v659_v40 = vadd.f32 %v654_v61, %v631_v33  ;;  %v1130_v33 = vmul.f32 %v1128_v12, %v2799_v1  ;;  %v1144_v12 = vmul.f32 %v1142_v16, %v2810_v8 }
 0x15c   : > { %1091 = vrot.lane.b32.xlu0 %v1087_v62, %s3680_s16  ;;  %965 = vrot.lane.b32.xlu1 %v960_v63, %s3684_s26  ;;  %s2834_s16 = sld [smem:[#allocation6 + $0x31]] }
 0x15e   : > { %v668_v2 = vpop.permute.xlu0 %667 }
 0x160   : > { %1105 = vrot.lane.b32.xlu0 %v1101_v3, %s3682_s23  ;;  %995 = vrot.lane.b32.xlu1 %v990_v5, %s3688_s29 }
 0x162   : > { %v682_v9 = vpop.permute.xlu0 %681  ;;  %v614_v32 = vstv %s2834_s16  ;;  %s3026_s16 = sld [smem:[#allocation6 + $0x4e]] }
 0x163   : > { %v615_v39 = vmul.f32 %v614_v32, %v2512_v6  ;;  %v687_v44 = vadd.f32 %v682_v9, %v659_v40  ;;  %v2977_v40 = vld [vmem:[#allocation4 + $0xb] sm:$0xff] }
 0x164   : > { %1119 = vrot.lane.b32.xlu0 %v1115_v10, %s3682_s23  ;;  %1009 = vrot.lane.b32.xlu1 %v1004_v11, %s3688_s29  ;;  %s2847_s23 = sld [smem:[#allocation6 + $0x17]]  ;;  %v1102_v11 = vmul.f32 %v1100_v0, %v2799_v1  ;;  %v1174_v16 = vmul.f32 %v1172_v23, %v2977_v40 }
 0x165   : > { %v645_v43 = vadd.f32 %v2783_v56, %v615_v39  ;;  %v1284_v39 = vstv %s2951_s6  ;;  %s3175_s6 = sld [smem:[#allocation6 + $0x22]] }
 0x166   : > { %v696_v13 = vpop.permute.xlu0 %695 }
 0x167   : > { %v673_v48 = vadd.f32 %v668_v2, %v645_v43  ;;  %v1228_v2 = vstv %s2884_s15  ;;  %s3115_s15 = sld [smem:[#allocation6 + $0x20]] }
 0x168   : > { %1133 = vrot.lane.b32.xlu0 %v1129_v14, %s3684_s26  ;;  %1023 = vrot.lane.b32.xlu1 %v1018_v15, %s3686_s4  ;;  %v1242_v15 = vstv %s2900_s30  ;;  %s3132_s30 = sld [smem:[#allocation6 + $0x51]] }
 0x169   : > { %v701_v52 = vadd.f32 %v696_v13, %v673_v48  ;;  %v1243_v0 = vmul.f32 %v1242_v15, %v2861_v29  ;;  %v2995_v48 = vld [vmem:[#allocation5 + $0xb] sm:$0xff] }
 0x16a   : > { %v710_v17 = vpop.permute.xlu0 %709  ;;  %v1200_v41 = vstv %s2847_s23  ;;  %s3042_s23 = sld [smem:[#allocation6 + $0x1e]] }
 0x16b   : > { %v1201_v6 = vmul.f32 %v1200_v41, %v2844_v21  ;;  %v715_v49 = vadd.f32 %v710_v17, %v687_v44 }
 0x16c   : > { %1147 = vrot.lane.b32.xlu0 %v1143_v19, %s3684_s26  ;;  %1037 = vrot.lane.b32.xlu1 %v1032_v20, %s3686_s4  ;;  %s2869_s26 = sld [smem:[#allocation6 + $0x7]] }
 0x16d   : > { %s2888_s4 = sld [smem:[#allocation6 + $0x38]] }
 0x16e   : > { %v724_v25 = vpop.permute.xlu0 %723 }
 0x16f   : > { %v729_v61 = vadd.f32 %v724_v25, %v701_v52  ;;  %v1256_v25 = vstv %s2917_s3  ;;  %s3147_s3 = sld [smem:[#allocation6 + $0x21]] }
 0x170   : > { %1177 = vrot.lane.b32.xlu0 %v1173_v26, %s3688_s29  ;;  %1051 = vrot.lane.b32.xlu1 %v1046_v27, %s3690_s7  ;;  %v1257_v28 = vmul.f32 %v1256_v25, %v2844_v21 }
 0x172   : > { %v2872_v34 = vpop.permute.xlu1 %627  ;;  %v738_v36 = vpop.permute.xlu0 %737  ;;  %v792_v51 = vstv %s2869_s26  ;;  %s3060_s26 = sld [smem:[#allocation6 + $0x4f]] }
 0x173   : > { %v743_v54 = vadd.f32 %v738_v36, %v715_v49  ;;  %v793_v62 = vmul.f32 %v792_v51, %v2622_v53  ;;  %v798_v3 = vstv %s2888_s4  ;;  %v1229_v53 = vmul.f32 %v1228_v2, %v2844_v21  ;;  %s3080_s4 = sld [smem:[#allocation6 + $0x1f]] }
 0x174   : > { %1191 = vrot.lane.b32.xlu0 %v1187_v4, %s3688_s29  ;;  %1065 = vrot.lane.b32.xlu1 %v1060_v37, %s3690_s7  ;;  %s3706_s29 = smov 126   ;;  %s3707_s7 = smov 124   ;;  %v799_v13 = vmul.f32 %v798_v3, %v2633_v57  ;;  %v1116_v57 = vmul.f32 %v1114_v7, %v2810_v8  ;;  %v1270_v7 = vstv %s2936_s5 }
 0x175   : > { %v1271_v37 = vmul.f32 %v1270_v7, %v2861_v29  ;;  %s3160_s5 = sld [smem:[#allocation6 + $0x52]] }
 0x176   : > { %v2891_v45 = vpop.permute.xlu1 %641  ;;  %v752_v46 = vpop.permute.xlu0 %751 }
 0x177   : > { %v757_v5 = vadd.f32 %v752_v46, %v729_v61  ;;  %v1285_v46 = vmul.f32 %v1284_v39, %v2844_v21 }
 0x178   : > { %1205 = vrot.lane.b32.xlu0 %v1201_v6, %s3706_s29  ;;  %1079 = vrot.lane.b32.xlu1 %v1074_v47, %s3707_s7  ;;  %v610_v6 = vmul.f32 %v608_v24, %v2581_v38  ;;  %v1298_v47 = vstv %s2964_s8  ;;  %v1188_v38 = vmul.f32 %v1186_v30, %v2995_v48  ;;  %v616_v24 = vmul.f32 %v614_v32, %v2592_v42  ;;  %s3190_s8 = sld [smem:[#allocation6 + $0x53]] }
 0x179   : > { %v1299_v23 = vmul.f32 %v1298_v47, %v2861_v29  ;;  %v1202_v42 = vmul.f32 %v1200_v41, %v2977_v40 }
 0x17a   : > { %v2905_v56 = vpop.permute.xlu1 %655  ;;  %v766_v58 = vpop.permute.xlu0 %765  ;;  %v632_v49 = vadd.f32 %v2872_v34, %v610_v6  ;;  %v646_v34 = vadd.f32 %v2891_v45, %v616_v24 }
 0x17b   : > { %v771_v63 = vadd.f32 %v766_v58, %v743_v54 }
 0x17c   : > { %1219 = vrot.lane.b32.xlu0 %v1215_v55, %s3706_s29  ;;  %1093 = vrot.lane.b32.xlu1 %v1088_v59, %s3707_s7  ;;  %v660_v58 = vadd.f32 %v2905_v56, %v632_v49  ;;  %v1312_v55 = vstv %s2979_s18  ;;  %v1384_v49 = vstv %s3042_s23  ;;  %s3204_s18 = sld [smem:[#allocation6 + $0x24]] }
 0x17d   : > { %v2922_v9 = vadd.f32 %v793_v62, %v771_v63  ;;  %v1313_v30 = vmul.f32 %v1312_v55, %v2844_v21  ;;  %v1326_v63 = vstv %s2997_s20  ;;  %s3217_s20 = sld [smem:[#allocation6 + $0x55]] }
 0x17e   : > { %v2924_v60 = vpop.permute.xlu1 %669  ;;  %v780_v10 = vpop.permute.xlu0 %779  ;;  %v1327_v41 = vmul.f32 %v1326_v63, %v2861_v29  ;;  %s3255_s23 = sld [smem:[#allocation6 + $0x15]] }
 0x17f   : > { %v785_v14 = vadd.f32 %v780_v10, %v757_v5  ;;  %v674_v32 = vadd.f32 %v2924_v60, %v646_v34  ;;  %v1216_v60 = vmul.f32 %v1214_v50, %v2995_v48 }
 0x180   : > { %1233 = vrot.lane.b32.xlu0 %v1229_v53, %s3708_s0  ;;  %1107 = vrot.lane.b32.xlu1 %v1102_v11, %s3709_s1 }
 0x181   : > { %v2940_v17 = vadd.f32 %v799_v13, %v785_v14  ;;  %v794_v14 = vmul.f32 %v792_v51, %v2693_v18  ;;  %v800_v51 = vmul.f32 %v798_v3, %v2702_v22 }
 0x182   : > { %v684_v19 = vpop.permute.xlu1 %683  ;;  %v2942_v20 = vpop.permute.xlu0 %809 }
 0x183   : > { %v688_v59 = vadd.f32 %v684_v19, %v660_v58  ;;  %v3039_v19 = vld [vmem:[#allocation4 + $0x4] sm:$0xff]  ;;  %v1398_v58 = vstv %s3060_s26  ;;  %s3271_s26 = sld [smem:[#allocation6 + $0x26]] }
 0x184   : > { %1247 = vrot.lane.b32.xlu0 %v1243_v0, %s3708_s0  ;;  %1121 = vrot.lane.b32.xlu1 %v1116_v57, %s3709_s1  ;;  %v1356_v0 = vstv %s3013_s24  ;;  %s3233_s24 = sld [smem:[#allocation6 + $0x25]] }
 0x185   : > { %v1357_v18 = vmul.f32 %v1356_v0, %v3039_v19 }
 0x186   : > { %v698_v26 = vpop.permute.xlu1 %697  ;;  %v2955_v27 = vpop.permute.xlu0 %823 }
 0x187   : > { %v702_v45 = vadd.f32 %v698_v26, %v674_v32  ;;  %v982_v32 = vstv %s3084_s27  ;;  %s3306_s27 = sld [smem:[#allocation6 + $0x27]] }
 0x188   : > { %1261 = vrot.lane.b32.xlu0 %v1257_v28, %s3707_s7  ;;  %1135 = vrot.lane.b32.xlu1 %v1130_v33, %s3710_s17  ;;  %v1230_v33 = vmul.f32 %v1228_v2, %v2977_v40  ;;  %v815_v2 = vadd.f32 %v2942_v20, %v2922_v9  ;;  %v829_v9 = vadd.f32 %v2955_v27, %v2940_v17  ;;  %v976_v17 = vstv %s3064_s25  ;;  %s3275_s25 = sld [smem:[#allocation6 + $0x46]] }
 0x18a   : > { %v712_v36 = vpop.permute.xlu1 %711  ;;  %v2968_v4 = vpop.permute.xlu0 %837 }
 0x18b   : > { %v716_v56 = vadd.f32 %v712_v36, %v688_v59  ;;  %v843_v6 = vadd.f32 %v2968_v4, %v815_v2  ;;  %v1258_v4 = vmul.f32 %v1256_v25, %v2977_v40  ;;  %v1328_v2 = vmul.f32 %v1326_v63, %v2995_v48 }
 0x18c   : > { %1275 = vrot.lane.b32.xlu0 %v1271_v37, %s3707_s7  ;;  %1149 = vrot.lane.b32.xlu1 %v1144_v12, %s3710_s17  ;;  %v3057_v37 = vld [vmem:[#allocation5 + $0x4] sm:$0xff]  ;;  %v1370_v12 = vstv %s3026_s16  ;;  %s3251_s16 = sld [smem:[#allocation6 + $0x56]] }
 0x18d   : > { %v1399_v59 = vmul.f32 %v1398_v58, %v3057_v37 }
 0x18e   : > { %v726_v43 = vpop.permute.xlu1 %725  ;;  %v2983_v44 = vpop.permute.xlu0 %851 }
 0x18f   : > { %v730_v11 = vadd.f32 %v726_v43, %v702_v45 }
 0x190   : > { %1289 = vrot.lane.b32.xlu0 %v1285_v46, %s3709_s1  ;;  %1179 = vrot.lane.b32.xlu1 %v1174_v16, %s3711_s13  ;;  %v1244_v46 = vmul.f32 %v1242_v15, %v2995_v48  ;;  %v1371_v16 = vmul.f32 %v1370_v12, %v3057_v37 }
 0x192   : > { %v740_v52 = vpop.permute.xlu1 %739  ;;  %v866_v54 = vpop.permute.xlu0 %865 }
 0x193   : > { %v744_v5 = vadd.f32 %v740_v52, %v716_v56  ;;  %v871_v15 = vadd.f32 %v866_v54, %v843_v6 }
 0x194   : > { %1303 = vrot.lane.b32.xlu0 %v1299_v23, %s3709_s1  ;;  %1193 = vrot.lane.b32.xlu1 %v1188_v38, %s3711_s13  ;;  %v1385_v23 = vmul.f32 %v1384_v49, %v3039_v19  ;;  %v857_v38 = vadd.f32 %v2983_v44, %v829_v9  ;;  %v1272_v44 = vmul.f32 %v1270_v7, %v2995_v48 }
 0x196   : > { %v754_v61 = vpop.permute.xlu1 %753  ;;  %v880_v62 = vpop.permute.xlu0 %879 }
 0x197   : > { %v758_v57 = vadd.f32 %v754_v61, %v730_v11  ;;  %v885_v27 = vadd.f32 %v880_v62, %v857_v38  ;;  %v1412_v62 = vstv %s3080_s4  ;;  %s3289_s4 = sld [smem:[#allocation6 + $0x57]] }
 0x198   : > { %1317 = vrot.lane.b32.xlu0 %v1313_v30, %s3710_s17  ;;  %1207 = vrot.lane.b32.xlu1 %v1202_v42, %s3706_s29  ;;  %v977_v30 = vmul.f32 %v976_v17, %v2724_v31  ;;  %v1286_v31 = vmul.f32 %v1284_v39, %v2977_v40 }
 0x19a   : > { %v768_v10 = vpop.permute.xlu1 %767  ;;  %v894_v53 = vpop.permute.xlu0 %893 }
 0x19b   : > { %v772_v13 = vadd.f32 %v768_v10, %v744_v5  ;;  %v899_v24 = vadd.f32 %v894_v53, %v871_v15  ;;  %v1413_v10 = vmul.f32 %v1412_v62, %v3039_v19  ;;  %v983_v53 = vmul.f32 %v982_v32, %v2733_v35  ;;  %v3187_v15 = vld [vmem:[#allocation5 + $0xc] sm:$0xff] }
 0x19c   : > { %1331 = vrot.lane.b32.xlu0 %v1327_v41, %s3710_s17  ;;  %1221 = vrot.lane.b32.xlu1 %v1216_v60, %s3706_s29  ;;  %v1426_v60 = vstv %s3098_s28  ;;  %s3323_s28 = sld [smem:[#allocation6 + $0x58]] }
 0x19d   : > { %v3046_v26 = vadd.f32 %v794_v14, %v772_v13  ;;  %v1300_v14 = vmul.f32 %v1298_v47, %v2995_v48  ;;  %v1427_v35 = vmul.f32 %v1426_v60, %v3057_v37 }
 0x19e   : > { %v782_v28 = vpop.permute.xlu1 %781  ;;  %v908_v50 = vpop.permute.xlu0 %907 }
 0x19f   : > { %v786_v36 = vadd.f32 %v782_v28, %v758_v57  ;;  %v913_v61 = vadd.f32 %v908_v50, %v885_v27  ;;  %v1440_v57 = vstv %s3115_s15  ;;  %s3334_s15 = sld [smem:[#allocation6 + $0x28]] }
 0x1a0   : > { %1235 = vrot.lane.b32.xlu1 %v1230_v33, %s3708_s0  ;;  %1361 = vrot.lane.b32.xlu0 %v1357_v18, %s3711_s13  ;;  %v1314_v33 = vmul.f32 %v1312_v55, %v2977_v40  ;;  %v1441_v47 = vmul.f32 %v1440_v57, %v3039_v19  ;;  %v1454_v18 = vstv %s3132_s30  ;;  %s3345_s30 = sld [smem:[#allocation6 + $0x59]] }
 0x1a1   : > { %v3068_v43 = vadd.f32 %v800_v51, %v786_v36  ;;  %v1455_v55 = vmul.f32 %v1454_v18, %v3057_v37 }
 0x1a2   : > { %v3070_v22 = vpop.permute.xlu1 %811  ;;  %v922_v3 = vpop.permute.xlu0 %921 }
 0x1a3   : > { %v927_v54 = vadd.f32 %v922_v3, %v899_v24  ;;  %v3172_v3 = vld [vmem:[#allocation4 + $0xc] sm:$0xff] }
 0x1a4   : > { %1249 = vrot.lane.b32.xlu1 %v1244_v46, %s3708_s0  ;;  %1375 = vrot.lane.b32.xlu0 %v1371_v16, %s3711_s13  ;;  %v1468_v46 = vstv %s3147_s3  ;;  %v1358_v63 = vmul.f32 %v1356_v0, %v3172_v3  ;;  %v1372_v0 = vmul.f32 %v1370_v12, %v3187_v15  ;;  %s3358_s3 = sld [smem:[#allocation6 + $0x29]] }
 0x1a5   : > { %v1469_v9 = vmul.f32 %v1468_v46, %v3039_v19 }
 0x1a6   : > { %v3088_v20 = vpop.permute.xlu1 %825  ;;  %v936_v52 = vpop.permute.xlu0 %935 }
 0x1a7   : > { %v941_v7 = vadd.f32 %v936_v52, %v913_v61  ;;  %v1482_v52 = vstv %s3160_s5  ;;  %s3371_s5 = sld [smem:[#allocation6 + $0x5a]] }
 0x1a8   : > { %1263 = vrot.lane.b32.xlu1 %v1258_v4, %s3707_s7  ;;  %1389 = vrot.lane.b32.xlu0 %v1385_v23, %s3706_s29  ;;  %v816_v4 = vadd.f32 %v3070_v22, %v3046_v26  ;;  %v1483_v24 = vmul.f32 %v1482_v52, %v3057_v37  ;;  %v830_v26 = vadd.f32 %v3088_v20, %v3068_v43 }
 0x1aa   : > { %v3103_v25 = vpop.permute.xlu1 %839  ;;  %v950_v34 = vpop.permute.xlu0 %949 }
 0x1ab   : > { %v955_v42 = vadd.f32 %v950_v34, %v927_v54  ;;  %v844_v27 = vadd.f32 %v3103_v25, %v816_v4  ;;  %v1496_v54 = vstv %s3175_s6  ;;  %s3383_s6 = sld [smem:[#allocation6 + $0x2b]] }
 0x1ac   : > { %1277 = vrot.lane.b32.xlu1 %v1272_v44, %s3707_s7  ;;  %1403 = vrot.lane.b32.xlu0 %v1399_v59, %s3706_s29  ;;  %v1386_v44 = vmul.f32 %v1384_v49, %v3172_v3  ;;  %v1497_v25 = vmul.f32 %v1496_v54, %v3039_v19  ;;  %v1400_v49 = vmul.f32 %v1398_v58, %v3187_v15 }
 0x1ad   : > { %v3120_v56 = vadd.f32 %v977_v30, %v955_v42  ;;  %v1510_v30 = vstv %s3190_s8  ;;  %s3399_s8 = sld [smem:[#allocation6 + $0x5c]] }
 0x1ae   : > { %v854_v45 = vpop.permute.xlu1 %853  ;;  %v964_v5 = vpop.permute.xlu0 %963 }
 0x1af   : > { %v969_v41 = vadd.f32 %v964_v5, %v941_v7  ;;  %v858_v59 = vadd.f32 %v854_v45, %v830_v26  ;;  %v1511_v45 = vmul.f32 %v1510_v30, %v3057_v37 }
 0x1b0   : > { %1291 = vrot.lane.b32.xlu1 %v1286_v31, %s3709_s1  ;;  %1417 = vrot.lane.b32.xlu0 %v1413_v10, %s3708_s0  ;;  %v978_v10 = vmul.f32 %v976_v17, %v2799_v1  ;;  %v984_v17 = vmul.f32 %v982_v32, %v2810_v8 }
 0x1b1   : > { %v3136_v11 = vadd.f32 %v983_v53, %v969_v41  ;;  %v3230_v53 = vld [vmem:[#allocation4 + $0x5] sm:$0xff]  ;;  %v1540_v41 = vstv %s3204_s18  ;;  %s3415_s18 = sld [smem:[#allocation6 + $0x2c]] }
 0x1b2   : > { %v868_v39 = vpop.permute.xlu1 %867  ;;  %v3138_v13 = vpop.permute.xlu0 %993  ;;  %v1541_v1 = vmul.f32 %v1540_v41, %v3230_v53 }
 0x1b3   : > { %v872_v22 = vadd.f32 %v868_v39, %v844_v27  ;;  %v1582_v27 = vstv %s3251_s16  ;;  %s3444_s16 = sld [smem:[#allocation6 + $0x2d]] }
 0x1b4   : > { %1305 = vrot.lane.b32.xlu1 %v1300_v14, %s3709_s1  ;;  %1431 = vrot.lane.b32.xlu0 %v1427_v35, %s3708_s0 }
 0x1b6   : > { %v882_v28 = vpop.permute.xlu1 %881  ;;  %v3151_v50 = vpop.permute.xlu0 %1007 }
 0x1b7   : > { %v886_v43 = vadd.f32 %v882_v28, %v858_v59  ;;  %v1414_v28 = vmul.f32 %v1412_v62, %v3172_v3  ;;  %v999_v62 = vadd.f32 %v3138_v13, %v3120_v56  ;;  %v1013_v56 = vadd.f32 %v3151_v50, %v3136_v11 }
 0x1b8   : > { %1319 = vrot.lane.b32.xlu1 %v1314_v33, %s3710_s17  ;;  %1445 = vrot.lane.b32.xlu0 %v1441_v47, %s3707_s7  ;;  %v3248_v47 = vld [vmem:[#allocation5 + $0x5] sm:$0xff]  ;;  %v1160_v11 = vstv %s3255_s23  ;;  %v1166_v59 = vstv %s3275_s25  ;;  %s3448_s23 = sld [smem:[#allocation6 + $0x4d]] }
 0x1b9   : > { %s3472_s25 = sld [smem:[#allocation6 + $0x2e]] }
 0x1ba   : > { %v896_v51 = vpop.permute.xlu1 %895  ;;  %v3164_v36 = vpop.permute.xlu0 %1021 }
 0x1bb   : > { %v900_v61 = vadd.f32 %v896_v51, %v872_v22  ;;  %v1554_v51 = vstv %s3217_s20  ;;  %v1583_v22 = vmul.f32 %v1582_v27, %v3248_v47  ;;  %s3431_s20 = sld [smem:[#allocation6 + $0x5d]] }
 0x1bc   : > { %1333 = vrot.lane.b32.xlu1 %v1328_v2, %s3710_s17  ;;  %1459 = vrot.lane.b32.xlu0 %v1455_v55, %s3707_s7  ;;  %v1428_v55 = vmul.f32 %v1426_v60, %v3187_v15 }
 0x1be   : > { %v910_v16 = vpop.permute.xlu1 %909  ;;  %v3179_v6 = vpop.permute.xlu0 %1035 }
 0x1bf   : > { %v914_v5 = vadd.f32 %v910_v16, %v886_v43  ;;  %v1555_v16 = vmul.f32 %v1554_v51, %v3248_v47 }
 0x1c0   : > { %1363 = vrot.lane.b32.xlu1 %v1358_v63, %s3711_s13  ;;  %1473 = vrot.lane.b32.xlu0 %v1469_v9, %s3709_s1  ;;  %v1027_v63 = vadd.f32 %v3164_v36, %v999_v62  ;;  %v1568_v9 = vstv %s3233_s24  ;;  %v1442_v36 = vmul.f32 %v1440_v57, %v3172_v3  ;;  %s3435_s24 = sld [smem:[#allocation6 + $0x1c]] }
 0x1c2   : > { %v924_v23 = vpop.permute.xlu1 %923  ;;  %v1050_v38 = vpop.permute.xlu0 %1049 }
 0x1c3   : > { %v928_v20 = vadd.f32 %v924_v23, %v900_v61  ;;  %v1055_v60 = vadd.f32 %v1050_v38, %v1027_v63  ;;  %v1569_v23 = vmul.f32 %v1568_v9, %v3230_v53  ;;  %v3355_v63 = vld [vmem:[#allocation4 + $0xd] sm:$0xff] }
 0x1c4   : > { %1377 = vrot.lane.b32.xlu1 %v1372_v0, %s3711_s13  ;;  %1487 = vrot.lane.b32.xlu0 %v1483_v24, %s3709_s1  ;;  %v1041_v0 = vadd.f32 %v3179_v6, %v1013_v56  ;;  %v1456_v6 = vmul.f32 %v1454_v18, %v3187_v15  ;;  %v1652_v56 = vstv %s3334_s15  ;;  %s3522_s15 = sld [smem:[#allocation6 + $0x30]] }
 0x1c6   : > { %v938_v34 = vpop.permute.xlu1 %937  ;;  %v1064_v12 = vpop.permute.xlu0 %1063 }
 0x1c7   : > { %v942_v58 = vadd.f32 %v938_v34, %v914_v5  ;;  %v1069_v50 = vadd.f32 %v1064_v12, %v1041_v0  ;;  %v1161_v12 = vmul.f32 %v1160_v11, %v2844_v21  ;;  %v3368_v0 = vld [vmem:[#allocation5 + $0xd] sm:$0xff] }
 0x1c8   : > { %1391 = vrot.lane.b32.xlu1 %v1386_v44, %s3706_s29  ;;  %1501 = vrot.lane.b32.xlu0 %v1497_v25, %s3710_s17  ;;  %v1596_v25 = vstv %s3271_s26  ;;  %s3457_s26 = sld [smem:[#allocation6 + $0x5e]] }
 0x1c9   : > { %v1597_v21 = vmul.f32 %v1596_v25, %v3230_v53 }
 0x1ca   : > { %v952_v42 = vpop.permute.xlu1 %951  ;;  %v1078_v7 = vpop.permute.xlu0 %1077 }
 0x1cb   : > { %v956_v31 = vadd.f32 %v952_v42, %v928_v20  ;;  %v1083_v24 = vadd.f32 %v1078_v7, %v1055_v60  ;;  %v1470_v42 = vmul.f32 %v1468_v46, %v3172_v3 }
 0x1cc   : > { %1405 = vrot.lane.b32.xlu1 %v1400_v49, %s3706_s29  ;;  %1515 = vrot.lane.b32.xlu0 %v1511_v45, %s3710_s17  ;;  %v1610_v49 = vstv %s3289_s4  ;;  %v1167_v45 = vmul.f32 %v1166_v59, %v2861_v29  ;;  %v1624_v29 = vstv %s3306_s27  ;;  %s3487_s4 = sld [smem:[#allocation6 + $0x5f]] }
 0x1cd   : > { %v3237_v39 = vadd.f32 %v978_v10, %v956_v31  ;;  %v1484_v10 = vmul.f32 %v1482_v52, %v3187_v15  ;;  %v1625_v52 = vmul.f32 %v1624_v29, %v3230_v53  ;;  %s3498_s27 = sld [smem:[#allocation6 + $0x2f]] }
 0x1ce   : > { %v966_v14 = vpop.permute.xlu1 %965  ;;  %v1092_v35 = vpop.permute.xlu0 %1091 }
 0x1cf   : > { %v970_v33 = vadd.f32 %v966_v14, %v942_v58  ;;  %v1097_v34 = vadd.f32 %v1092_v35, %v1069_v50  ;;  %v1611_v58 = vmul.f32 %v1610_v49, %v3248_v47 }
 0x1d0   : > { %1419 = vrot.lane.b32.xlu1 %v1414_v28, %s3708_s0  ;;  %1545 = vrot.lane.b32.xlu0 %v1541_v1, %s3711_s13  ;;  %v1498_v1 = vmul.f32 %v1496_v54, %v3172_v3 }
 0x1d1   : > { %v3259_v2 = vadd.f32 %v984_v17, %v970_v33  ;;  %v1638_v33 = vstv %s3323_s28  ;;  %s3509_s28 = sld [smem:[#allocation6 + $0x60]] }
 0x1d2   : > { %v3261_v8 = vpop.permute.xlu1 %995  ;;  %v1106_v32 = vpop.permute.xlu0 %1105  ;;  %v1639_v54 = vmul.f32 %v1638_v33, %v3248_v47 }
 0x1d3   : > { %v1111_v38 = vadd.f32 %v1106_v32, %v1083_v24  ;;  %v1666_v24 = vstv %s3345_s30  ;;  %v1000_v50 = vadd.f32 %v3261_v8, %v3237_v39  ;;  %s3535_s30 = sld [smem:[#allocation6 + $0x61]] }
 0x1d4   : > { %1433 = vrot.lane.b32.xlu1 %v1428_v55, %s3708_s0  ;;  %1559 = vrot.lane.b32.xlu0 %v1555_v16, %s3711_s13  ;;  %v1512_v55 = vmul.f32 %v1510_v30, %v3187_v15  ;;  %v1542_v30 = vmul.f32 %v1540_v41, %v3355_v63 }
 0x1d6   : > { %v3279_v13 = vpop.permute.xlu1 %1009  ;;  %v1120_v4 = vpop.permute.xlu0 %1119 }
 0x1d7   : > { %v1125_v18 = vadd.f32 %v1120_v4, %v1097_v34  ;;  %v1014_v39 = vadd.f32 %v3279_v13, %v3259_v2 }
 0x1d8   : > { %1447 = vrot.lane.b32.xlu1 %v1442_v36, %s3707_s7  ;;  %1573 = vrot.lane.b32.xlu0 %v1569_v23, %s3706_s29  ;;  %v1653_v36 = vmul.f32 %v1652_v56, %v3230_v53 }
 0x1da   : > { %v3294_v57 = vpop.permute.xlu1 %1023  ;;  %v1134_v26 = vpop.permute.xlu0 %1133 }
 0x1db   : > { %v1139_v44 = vadd.f32 %v1134_v26, %v1111_v38  ;;  %v1556_v26 = vmul.f32 %v1554_v51, %v3368_v0 }
 0x1dc   : > { %1461 = vrot.lane.b32.xlu1 %v1456_v6, %s3707_s7  ;;  %1587 = vrot.lane.b32.xlu0 %v1583_v22, %s3706_s29  ;;  %v1667_v6 = vmul.f32 %v1666_v24, %v3248_v47  ;;  %v1028_v22 = vadd.f32 %v3294_v57, %v1000_v50 }
 0x1dd   : > { %v1163_v61 = vadd.f32 %v1161_v12, %v1139_v44  ;;  %v1680_v44 = vstv %s3358_s3 }
 0x1de   : > { %v3311_v43 = vpop.permute.xlu1 %1037  ;;  %v1148_v20 = vpop.permute.xlu0 %1147  ;;  %v1681_v57 = vmul.f32 %v1680_v44, %v3230_v53 }
 0x1df   : > { %v1153_v7 = vadd.f32 %v1148_v20, %v1125_v18  ;;  %v1570_v18 = vmul.f32 %v1568_v9, %v3355_v63  ;;  %v1584_v9 = vmul.f32 %v1582_v27, %v3368_v0 }
 0x1e0   : > { %1475 = vrot.lane.b32.xlu1 %v1470_v42, %s3709_s1  ;;  %1601 = vrot.lane.b32.xlu0 %v1597_v21, %s3708_s0  ;;  %v1694_v21 = vstv %s3371_s5  ;;  %s2158_s5 = sshll.u32 %s2340_s12, 8  ;;  %s2368_s12 = smov [#allocation9]  }
 0x1e1   : > { %v1169_v5 = vadd.f32 %v1167_v45, %v1153_v7 }
 0x1e2   : > { %v1052_v31 = vpop.permute.xlu1 %1051  ;;  %v1178_v46 = vpop.permute.xlu0 %1177 }
 0x1e3   : > { %v1183_v14 = vadd.f32 %v1178_v46, %v1163_v61  ;;  %v1056_v8 = vadd.f32 %v1052_v31, %v1028_v22  ;;  %v1042_v61 = vadd.f32 %v3311_v43, %v1014_v39  ;;  %v1695_v43 = vmul.f32 %v1694_v21, %v3248_v47 }
 0x1e4   : > { %1489 = vrot.lane.b32.xlu1 %v1484_v10, %s3709_s1  ;;  %1615 = vrot.lane.b32.xlu0 %v1611_v58, %s3708_s0  ;;  %v3410_v58 = vld [vmem:[#allocation4 + $0x6] sm:$0xff] }
 0x1e6   : > { %v1066_v35 = vpop.permute.xlu1 %1065  ;;  %v1192_v28 = vpop.permute.xlu0 %1191 }
 0x1e7   : > { %v1197_v17 = vadd.f32 %v1192_v28, %v1169_v5  ;;  %v1070_v2 = vadd.f32 %v1066_v35, %v1042_v61  ;;  %v1724_v5 = vstv %s3383_s6 }
 0x1e8   : > { %1503 = vrot.lane.b32.xlu1 %v1498_v1, %s3710_s17  ;;  %1629 = vrot.lane.b32.xlu0 %v1625_v52, %s3707_s7  ;;  %v1598_v52 = vmul.f32 %v1596_v25, %v3355_v63 }
 0x1ea   : > { %v1080_v62 = vpop.permute.xlu1 %1079  ;;  %v1206_v32 = vpop.permute.xlu0 %1205 }
 0x1eb   : > { %v1211_v16 = vadd.f32 %v1206_v32, %v1183_v14  ;;  %v1084_v20 = vadd.f32 %v1080_v62, %v1056_v8  ;;  %v1162_v14 = vmul.f32 %v1160_v11, %v2977_v40  ;;  %v3425_v11 = vld [vmem:[#allocation5 + $0x6] sm:$0xff]  ;;  %v1738_v32 = vstv %s3399_s8 }
 0x1ec   : > { %1517 = vrot.lane.b32.xlu1 %v1512_v55, %s3710_s17  ;;  %1643 = vrot.lane.b32.xlu0 %v1639_v54, %s3707_s7  ;;  %v1168_v55 = vmul.f32 %v1166_v59, %v2995_v48  ;;  %v1739_v48 = vmul.f32 %v1738_v32, %v3425_v11 }
 0x1ee   : > { %v1094_v60 = vpop.permute.xlu1 %1093  ;;  %v1220_v4 = vpop.permute.xlu0 %1219 }
 0x1ef   : > { %v1225_v23 = vadd.f32 %v1220_v4, %v1197_v17  ;;  %v1098_v31 = vadd.f32 %v1094_v60, %v1070_v2  ;;  %v1725_v17 = vmul.f32 %v1724_v5, %v3410_v58  ;;  %v1612_v60 = vmul.f32 %v1610_v49, %v3368_v0 }
 0x1f0   : > { %1547 = vrot.lane.b32.xlu1 %v1542_v30, %s3711_s13  ;;  %1657 = vrot.lane.b32.xlu0 %v1653_v36, %s3709_s1  ;;  %v1752_v30 = vstv %s3415_s18  ;;  %v1626_v49 = vmul.f32 %v1624_v29, %v3355_v63  ;;  %v1640_v29 = vmul.f32 %v1638_v33, %v3368_v0 }
 0x1f1   : > { %v1753_v50 = vmul.f32 %v1752_v30, %v3410_v58 }
 0x1f2   : > { %v1108_v41 = vpop.permute.xlu1 %1107  ;;  %v1234_v38 = vpop.permute.xlu0 %1233 }
 0x1f3   : > { %v1239_v34 = vadd.f32 %v1234_v38, %v1211_v16  ;;  %v1112_v13 = vadd.f32 %v1108_v41, %v1084_v20 }
 0x1f4   : > { %1561 = vrot.lane.b32.xlu1 %v1556_v26, %s3711_s13  ;;  %1671 = vrot.lane.b32.xlu0 %v1667_v6, %s3709_s1  ;;  %v1766_v26 = vstv %s3431_s20  ;;  %v1344_v6 = vstv %s3435_s24  ;;  %s3628_s20 = scalar_lea.hbm %s3679_s2, %s2158_s5 }
 0x1f5   : > { %v1767_v39 = vmul.f32 %v1766_v26, %v3425_v11 }
 0x1f6   : > { %v1122_v51 = vpop.permute.xlu1 %1121  ;;  %v1248_v12 = vpop.permute.xlu0 %1247 }
 0x1f7   : > { %v1253_v42 = vadd.f32 %v1248_v12, %v1225_v23  ;;  %v1126_v27 = vadd.f32 %v1122_v51, %v1098_v31  ;;  %v1780_v12 = vstv %s3444_s16  ;;  %v1668_v31 = vmul.f32 %v1666_v24, %v3368_v0 }
 0x1f8   : > { %1575 = vrot.lane.b32.xlu1 %v1570_v18, %s3706_s29  ;;  %1685 = vrot.lane.b32.xlu0 %v1681_v57, %s3710_s17  ;;  %v1345_v18 = vmul.f32 %v1344_v6, %v3039_v19  ;;  %v1350_v57 = vstv %s3448_s23  ;;  %v1781_v2 = vmul.f32 %v1780_v12, %v3410_v58  ;;  %v1682_v24 = vmul.f32 %v1680_v44, %v3355_v63  ;;  %s2272_s23 = sshll.u32 %s2368_s12, 4  ;;  %s2273_s23 = int_to_ptr.vmem [resolvable:$false] %s2272_s23 }
 0x1fa   : > { %v1136_v7 = vpop.permute.xlu1 %1135  ;;  %v1262_v45 = vpop.permute.xlu0 %1261 }
 0x1fb   : > { %v1140_v46 = vadd.f32 %v1136_v7, %v1112_v13  ;;  %v1267_v10 = vadd.f32 %v1262_v45, %v1239_v34  ;;  %v1794_v7 = vstv %s3457_s26  ;;  %v1351_v45 = vmul.f32 %v1350_v57, %v3057_v37  ;;  %s2274_s26 = scalar_lea.vmem %s2273_s23, 512 }
 0x1fc   : > { %1589 = vrot.lane.b32.xlu1 %v1584_v9, %s3706_s29  ;;  %1699 = vrot.lane.b32.xlu0 %v1695_v43, %s3710_s17 }
 0x1fd   : > { %v1164_v35 = vadd.f32 %v1162_v14, %v1140_v46  ;;  %v1795_v46 = vmul.f32 %v1794_v7, %v3425_v11  ;;  %v1808_v14 = vstv %s3472_s25 }
 0x1fe   : > { %v1150_v28 = vpop.permute.xlu1 %1149  ;;  %v1276_v1 = vpop.permute.xlu0 %1275 }
 0x1ff   : > { %v1154_v62 = vadd.f32 %v1150_v28, %v1126_v27  ;;  %v1281_v40 = vadd.f32 %v1276_v1, %v1253_v42  ;;  %v1654_v42 = vmul.f32 %v1652_v56, %v3355_v63  ;;  %v1809_v28 = vmul.f32 %v1808_v14, %v3410_v58 }
 0x200   : > { %1603 = vrot.lane.b32.xlu1 %v1598_v52, %s3708_s0  ;;  %1729 = vrot.lane.b32.xlu0 %v1725_v17, %s3711_s13  ;;  %v1822_v17 = vstv %s3487_s4 }
 0x201   : > { %v1170_v25 = vadd.f32 %v1168_v55, %v1154_v62  ;;  %v1696_v55 = vmul.f32 %v1694_v21, %v3368_v0  ;;  %v1823_v44 = vmul.f32 %v1822_v17, %v3425_v11 }
 0x202   : > { %v1180_v54 = vpop.permute.xlu1 %1179  ;;  %v1290_v16 = vpop.permute.xlu0 %1289 }
 0x203   : > { %v1184_v59 = vadd.f32 %v1180_v54, %v1164_v35  ;;  %v1295_v4 = vadd.f32 %v1290_v16, %v1267_v10  ;;  %v3519_v16 = vld [vmem:[#allocation4 + $0xe] sm:$0xff] }
 0x204   : > { %1617 = vrot.lane.b32.xlu1 %v1612_v60, %s3708_s0  ;;  %1743 = vrot.lane.b32.xlu0 %v1739_v48, %s3711_s13  ;;  %v1836_v60 = vstv %s3498_s27  ;;  %v1726_v21 = vmul.f32 %v1724_v5, %v3519_v16 }
 0x206   : > { %v1194_v36 = vpop.permute.xlu1 %1193  ;;  %v1304_v23 = vpop.permute.xlu0 %1303 }
 0x207   : > { %v1198_v41 = vadd.f32 %v1194_v36, %v1170_v25  ;;  %v1309_v38 = vadd.f32 %v1304_v23, %v1281_v40 }
 0x208   : > { %1631 = vrot.lane.b32.xlu1 %v1626_v49, %s3707_s7  ;;  %1757 = vrot.lane.b32.xlu0 %v1753_v50, %s3706_s29  ;;  %v3532_v49 = vld [vmem:[#allocation5 + $0xe] sm:$0xff]  ;;  %v1850_v50 = vstv %s3509_s28 }
 0x209   : > { %v1740_v5 = vmul.f32 %v1738_v32, %v3532_v49 }
 0x20a   : > { %v1208_v22 = vpop.permute.xlu1 %1207  ;;  %v1318_v34 = vpop.permute.xlu0 %1317 }
 0x20b   : > { %v1212_v8 = vadd.f32 %v1208_v22, %v1184_v59  ;;  %v1323_v51 = vadd.f32 %v1318_v34, %v1295_v4  ;;  %v1837_v4 = vmul.f32 %v1836_v60, %v3410_v58  ;;  %v1851_v22 = vmul.f32 %v1850_v50, %v3425_v11 }
 0x20c   : > { %1645 = vrot.lane.b32.xlu1 %v1640_v29, %s3707_s7  ;;  %1771 = vrot.lane.b32.xlu0 %v1767_v39, %s3706_s29  ;;  %v1864_v39 = vstv %s3522_s15 }
 0x20d   : > { %v1347_v33 = vadd.f32 %v1345_v18, %v1323_v51  ;;  %v1754_v18 = vmul.f32 %v1752_v30, %v3519_v16  ;;  %v1865_v32 = vmul.f32 %v1864_v39, %v3410_v58 }
 0x20e   : > { %v1222_v61 = vpop.permute.xlu1 %1221  ;;  %v1332_v20 = vpop.permute.xlu0 %1331 }
 0x20f   : > { %v1226_v19 = vadd.f32 %v1222_v61, %v1198_v41  ;;  %v1337_v13 = vadd.f32 %v1332_v20, %v1309_v38  ;;  %v1878_v20 = vstv %s3535_s30 }
 0x210   : > { %1659 = vrot.lane.b32.xlu1 %v1654_v42, %s3709_s1  ;;  %1785 = vrot.lane.b32.xlu0 %v1781_v2, %s3708_s0  ;;  %v1879_v30 = vmul.f32 %v1878_v20, %v3425_v11 }
 0x211   : > { %v1353_v9 = vadd.f32 %v1351_v45, %v1337_v13 }
 0x212   : > { %v1236_v56 = vpop.permute.xlu1 %1235  ;;  %v1362_v43 = vpop.permute.xlu0 %1361 }
 0x213   : > { %v1240_v10 = vadd.f32 %v1236_v56, %v1212_v8  ;;  %v1367_v37 = vadd.f32 %v1362_v43, %v1347_v33 }
 0x214   : > { %1673 = vrot.lane.b32.xlu1 %v1668_v31, %s3709_s1  ;;  %1799 = vrot.lane.b32.xlu0 %v1795_v46, %s3708_s0  ;;  %v1782_v46 = vmul.f32 %v1780_v12, %v3519_v16 }
 0x216   : > { %v1250_v27 = vpop.permute.xlu1 %1249  ;;  %v1376_v35 = vpop.permute.xlu0 %1375 }
 0x217   : > { %v1254_v1 = vadd.f32 %v1250_v27, %v1226_v19  ;;  %v1381_v52 = vadd.f32 %v1376_v35, %v1353_v9  ;;  %v1768_v19 = vmul.f32 %v1766_v26, %v3532_v49  ;;  %v1346_v9 = vmul.f32 %v1344_v6, %v3172_v3 }
 0x218   : > { %1687 = vrot.lane.b32.xlu1 %v1682_v24, %s3710_s17  ;;  %1813 = vrot.lane.b32.xlu0 %v1809_v28, %s3707_s7  ;;  %v1796_v35 = vmul.f32 %v1794_v7, %v3532_v49  ;;  %v1810_v28 = vmul.f32 %v1808_v14, %v3519_v16 }
 0x21a   : > { %v1264_v62 = vpop.permute.xlu1 %1263  ;;  %v1390_v40 = vpop.permute.xlu0 %1389 }
 0x21b   : > { %v1268_v25 = vadd.f32 %v1264_v62, %v1240_v10  ;;  %v1395_v54 = vadd.f32 %v1390_v40, %v1367_v37  ;;  %v1352_v37 = vmul.f32 %v1350_v57, %v3187_v15 }
 0x21c   : > { %1701 = vrot.lane.b32.xlu1 %v1696_v55, %s3710_s17  ;;  %1827 = vrot.lane.b32.xlu0 %v1823_v44, %s3707_s7  ;;  %v1824_v55 = vmul.f32 %v1822_v17, %v3532_v49 }
 0x21e   : > { %v1278_v48 = vpop.permute.xlu1 %1277  ;;  %v1404_v59 = vpop.permute.xlu0 %1403 }
 0x21f   : > { %v1282_v36 = vadd.f32 %v1278_v48, %v1254_v1  ;;  %v1409_v23 = vadd.f32 %v1404_v59, %v1381_v52 }
 0x220   : > { %1731 = vrot.lane.b32.xlu1 %v1726_v21, %s3711_s13  ;;  %1841 = vrot.lane.b32.xlu0 %v1837_v4, %s3709_s1  ;;  %v1838_v4 = vmul.f32 %v1836_v60, %v3519_v16  ;;  %v1866_v60 = vmul.f32 %v1864_v39, %v3519_v16 }
 0x222   : > { %v1292_v41 = vpop.permute.xlu1 %1291  ;;  %v1418_v38 = vpop.permute.xlu0 %1417 }
 0x223   : > { %v1296_v34 = vadd.f32 %v1292_v41, %v1268_v25  ;;  %v1423_v29 = vadd.f32 %v1418_v38, %v1395_v54 }
 0x224   : > { %1745 = vrot.lane.b32.xlu1 %v1740_v5, %s3711_s13  ;;  %1855 = vrot.lane.b32.xlu0 %v1851_v22, %s3709_s1  ;;  %s3575_s13 = sld [smem:[#allocation6 + $0x23]]  ;;  %v1852_v5 = vmul.f32 %v1850_v50, %v3532_v49 }
 0x226   : > { %v1306_v8 = vpop.permute.xlu1 %1305  ;;  %v1432_v51 = vpop.permute.xlu0 %1431 }
 0x227   : > { %v1310_v33 = vadd.f32 %v1306_v8, %v1282_v36  ;;  %v1437_v61 = vadd.f32 %v1432_v51, %v1409_v23 }
 0x228   : > { %1759 = vrot.lane.b32.xlu1 %v1754_v18, %s3706_s29  ;;  %1869 = vrot.lane.b32.xlu0 %v1865_v32, %s3710_s17 }
 0x22a   : > { %v1320_v42 = vpop.permute.xlu1 %1319  ;;  %v1446_v2 = vpop.permute.xlu0 %1445  ;;  %v1528_v62 = vstv %s3575_s13 }
 0x22b   : > { %v1324_v13 = vadd.f32 %v1320_v42, %v1296_v34  ;;  %v1451_v45 = vadd.f32 %v1446_v2, %v1423_v29  ;;  %v1529_v54 = vmul.f32 %v1528_v62, %v3230_v53 }
 0x22c   : > { %1773 = vrot.lane.b32.xlu1 %v1768_v19, %s3706_s29  ;;  %1883 = vrot.lane.b32.xlu0 %v1879_v30, %s3710_s17  ;;  %s3581_s29 = sld [smem:[#allocation6 + $0x54]] }
 0x22d   : > { %v1348_v56 = vadd.f32 %v1346_v9, %v1324_v13 }
 0x22e   : > { %v1334_v43 = vpop.permute.xlu1 %1333  ;;  %v1460_v31 = vpop.permute.xlu0 %1459 }
 0x22f   : > { %v1338_v26 = vadd.f32 %v1334_v43, %v1310_v33  ;;  %v1465_v10 = vadd.f32 %v1460_v31, %v1437_v61  ;;  %v1880_v33 = vmul.f32 %v1878_v20, %v3532_v49 }
 0x230   : > { %1787 = vrot.lane.b32.xlu1 %v1782_v46, %s3708_s0  ;;  %v1530_v46 = vmul.f32 %v1528_v62, %v3355_v63 }
 0x231   : > { %v1354_v3 = vadd.f32 %v1352_v37, %v1338_v26 }
 0x232   : > { %v1364_v6 = vpop.permute.xlu1 %1363  ;;  %v1474_v27 = vpop.permute.xlu0 %1473  ;;  %v1534_v48 = vstv %s3581_s29 }
 0x233   : > { %v1368_v24 = vadd.f32 %v1364_v6, %v1348_v56  ;;  %v1479_v12 = vadd.f32 %v1474_v27, %v1451_v45  ;;  %v1535_v41 = vmul.f32 %v1534_v48, %v3248_v47 }
 0x234   : > { %1801 = vrot.lane.b32.xlu1 %v1796_v35, %s3708_s0  ;;  %s3613_s0 = sld [smem:[#allocation6 + $0x2a]] }
 0x236   : > { %v1378_v15 = vpop.permute.xlu1 %1377  ;;  %v1488_v57 = vpop.permute.xlu0 %1487 }
 0x237   : > { %v1382_v1 = vadd.f32 %v1378_v15, %v1354_v3  ;;  %v1493_v52 = vadd.f32 %v1488_v57, %v1465_v10  ;;  %v1536_v3 = vmul.f32 %v1534_v48, %v3368_v0 }
 0x238   : > { %1815 = vrot.lane.b32.xlu1 %v1810_v28, %s3707_s7 }
 0x23a   : > { %v1392_v40 = vpop.permute.xlu1 %1391  ;;  %v1502_v7 = vpop.permute.xlu0 %1501  ;;  %v1712_v62 = vstv %s3613_s0 }
 0x23b   : > { %v1396_v44 = vadd.f32 %v1392_v40, %v1368_v24  ;;  %v1507_v25 = vadd.f32 %v1502_v7, %v1479_v12 }
 0x23c   : > { %1829 = vrot.lane.b32.xlu1 %v1824_v55, %s3707_s7 }
 0x23d   : > { %v1531_v14 = vadd.f32 %v1529_v54, %v1507_v25  ;;  %v1713_v54 = vmul.f32 %v1712_v62, %v3410_v58 }
 0x23e   : > { %v1406_v59 = vpop.permute.xlu1 %1405  ;;  %v1516_v21 = vpop.permute.xlu0 %1515 }
 0x23f   : > { %v1410_v36 = vadd.f32 %v1406_v59, %v1382_v1  ;;  %v1521_v23 = vadd.f32 %v1516_v21, %v1493_v52 }
 0x240   : > { %1843 = vrot.lane.b32.xlu1 %v1838_v4, %s3709_s1 }
 0x241   : > { %v1537_v17 = vadd.f32 %v1535_v41, %v1521_v23 }
 0x242   : > { %v1420_v38 = vpop.permute.xlu1 %1419  ;;  %v1546_v53 = vpop.permute.xlu0 %1545 }
 0x243   : > { %v1424_v22 = vadd.f32 %v1420_v38, %v1396_v44  ;;  %v1551_v34 = vadd.f32 %v1546_v53, %v1531_v14 }
 0x244   : > { %1857 = vrot.lane.b32.xlu1 %v1852_v5, %s3709_s1  ;;  %s3615_s1 = sld [smem:[#allocation6 + $0x5b]] }
 0x246   : > { %v1434_v29 = vpop.permute.xlu1 %1433  ;;  %v1560_v8 = vpop.permute.xlu0 %1559 }
 0x247   : > { %v1438_v51 = vadd.f32 %v1434_v29, %v1410_v36  ;;  %v1565_v47 = vadd.f32 %v1560_v8, %v1537_v17 }
 0x248   : > { %1871 = vrot.lane.b32.xlu1 %v1866_v60, %s3710_s17 }
 0x24a   : > { %v1448_v18 = vpop.permute.xlu1 %1447  ;;  %v1574_v32 = vpop.permute.xlu0 %1573  ;;  %v1718_v48 = vstv %s3615_s1 }
 0x24b   : > { %v1452_v61 = vadd.f32 %v1448_v18, %v1424_v22  ;;  %v1579_v24 = vadd.f32 %v1574_v32, %v1551_v34  ;;  %v1719_v23 = vmul.f32 %v1718_v48, %v3425_v11 }
 0x24c   : > { %1885 = vrot.lane.b32.xlu1 %v1880_v33, %s3710_s17  ;;  %s170_s17 = sand.u32 1, %s2332_s10  }
 0x24d   : > { %s2020_s7 = sshll.u32 %s170_s17, 4  ;;  %s3632_s24 = scalar_lea.sflag [#allocation7], %s170_s17 }
 0x24e   : > { %v1462_v50 = vpop.permute.xlu1 %1461  ;;  %v1588_v42 = vpop.permute.xlu0 %1587  ;;  %s172_s3 = scalar_lea.vmem [#allocation9], %s2020_s7 }
 0x24f   : > { %v1466_v2 = vadd.f32 %v1462_v50, %v1438_v51  ;;  %v1593_v28 = vadd.f32 %v1588_v42, %v1565_v47  ;;  %s1922_s6 = sshll.u32 %s172_s3, 4  ;;  %s3630_s6 = int_to_ptr.vmem [resolvable:$true] %s1922_s6 }
 0x250   : > { %s2268_s16 = scalar_lea.vmem %s3630_s6, 256  ;;  %p2275_p0 = scmp.lt.s32.totalorder %s3630_s6, %s2273_s23 }
 0x251   : > { %p2269_p10 = scmp.ne.s32.totalorder %s3630_s6, %s2268_s16  ;;  %p2276_p1 = scmp.lt.s32.totalorder %s2274_s26, %s2268_s16 }
 0x252   : > { %v1476_v19 = vpop.permute.xlu1 %1475  ;;  %v1602_v30 = vpop.permute.xlu0 %1601 }
 0x253   : > { %v1480_v13 = vadd.f32 %v1476_v19, %v1452_v61  ;;  %v1607_v15 = vadd.f32 %v1602_v30, %v1579_v24  ;;  %p2270_p11 = pnand %p2269_p10, %p2426_p4  ;;  %p2277_p2 = por %p2276_p1, %p2275_p0 }
 0x255   : > { %p2271_p13 = pneg %p2270_p11 }
 0x256   : > { %v1490_v45 = vpop.permute.xlu1 %1489  ;;  %v1616_v39 = vpop.permute.xlu0 %1615 }
 0x257   : > { %v1494_v9 = vadd.f32 %v1490_v45, %v1466_v2  ;;  %v1621_v40 = vadd.f32 %v1616_v39, %v1593_v28  ;;  %p2278_p3 = pnand %p2277_p2, %p2271_p13 }
 0x25a   : > { %v1504_v56 = vpop.permute.xlu1 %1503  ;;  %v1630_v43 = vpop.permute.xlu0 %1629 }
 0x25b   : > { %v1508_v31 = vadd.f32 %v1504_v56, %v1480_v13  ;;  %v1635_v1 = vadd.f32 %v1630_v43, %v1607_v15  ;;  %v1714_v13 = vmul.f32 %v1712_v62, %v3519_v16 }
 0x25d   : > { %v1532_v26 = vadd.f32 %v1530_v46, %v1508_v31  ;;  %v1720_v31 = vmul.f32 %v1718_v48, %v3532_v49 }
 0x25e   : > { %v1518_v10 = vpop.permute.xlu1 %1517  ;;  %v1644_v20 = vpop.permute.xlu0 %1643 }
 0x25f   : > { %v1522_v37 = vadd.f32 %v1518_v10, %v1494_v9  ;;  %v1649_v44 = vadd.f32 %v1644_v20, %v1621_v40 }
 0x261   : > { %v1538_v6 = vadd.f32 %v1536_v3, %v1522_v37 }
 0x262   : > { %v1548_v27 = vpop.permute.xlu1 %1547  ;;  %v1658_v35 = vpop.permute.xlu0 %1657 }
 0x263   : > { %v1552_v12 = vadd.f32 %v1548_v27, %v1532_v26  ;;  %v1663_v0 = vadd.f32 %v1658_v35, %v1635_v1 }
 0x266   : > { %v1562_v57 = vpop.permute.xlu1 %1561  ;;  %v1672_v63 = vpop.permute.xlu0 %1671 }
 0x267   : > { %v1566_v52 = vadd.f32 %v1562_v57, %v1538_v6  ;;  %v1677_v14 = vadd.f32 %v1672_v63, %v1649_v44 }
 0x26a   : > { %v1576_v7 = vpop.permute.xlu1 %1575  ;;  %v1686_v55 = vpop.permute.xlu0 %1685 }
 0x26b   : > { %v1691_v25 = vadd.f32 %v1686_v55, %v1663_v0  ;;  %v1580_v58 = vadd.f32 %v1576_v7, %v1552_v12 }
 0x26d   : > { %v1715_v59 = vadd.f32 %v1713_v54, %v1691_v25 }
 0x26e   : > { %v1590_v21 = vpop.permute.xlu1 %1589  ;;  %v1700_v4 = vpop.permute.xlu0 %1699 }
 0x26f   : > { %v1705_v36 = vadd.f32 %v1700_v4, %v1677_v14  ;;  %v1594_v33 = vadd.f32 %v1590_v21, %v1566_v52 }
 0x271   : > { %v1721_v41 = vadd.f32 %v1719_v23, %v1705_v36 }
 0x272   : > { %v1604_v17 = vpop.permute.xlu1 %1603  ;;  %v1730_v38 = vpop.permute.xlu0 %1729 }
 0x273   : > { %v1608_v47 = vadd.f32 %v1604_v17, %v1580_v58  ;;  %v1735_v20 = vadd.f32 %v1730_v38, %v1715_v59 }
 0x276   : > { %v1618_v53 = vpop.permute.xlu1 %1617  ;;  %v1744_v5 = vpop.permute.xlu0 %1743 }
 0x277   : > { %v1622_v50 = vadd.f32 %v1618_v53, %v1594_v33  ;;  %v1749_v37 = vadd.f32 %v1744_v5, %v1721_v41 }
 0x27a   : > { %v1632_v22 = vpop.permute.xlu1 %1631  ;;  %v1758_v34 = vpop.permute.xlu0 %1757 }
 0x27b   : > { %v1636_v61 = vadd.f32 %v1632_v22, %v1608_v47  ;;  %v1763_v27 = vadd.f32 %v1758_v34, %v1735_v20 }
 0x27e   : > { %v1646_v29 = vpop.permute.xlu1 %1645  ;;  %v1772_v8 = vpop.permute.xlu0 %1771 }
 0x27f   : > { %v1650_v19 = vadd.f32 %v1646_v29, %v1622_v50  ;;  %v1777_v35 = vadd.f32 %v1772_v8, %v1749_v37 }
 0x282   : > { %v1660_v60 = vpop.permute.xlu1 %1659  ;;  %v1786_v51 = vpop.permute.xlu0 %1785 }
 0x283   : > { %v1664_v42 = vadd.f32 %v1660_v60, %v1636_v61  ;;  %v1791_v24 = vadd.f32 %v1786_v51, %v1763_v27 }
 0x286   : > { %v1674_v18 = vpop.permute.xlu1 %1673  ;;  %v1800_v32 = vpop.permute.xlu0 %1799 }
 0x287   : > { %v1678_v45 = vadd.f32 %v1674_v18, %v1650_v19  ;;  %v1805_v12 = vadd.f32 %v1800_v32, %v1777_v35 }
 0x28a   : > { %v1688_v11 = vpop.permute.xlu1 %1687  ;;  %v1814_v2 = vpop.permute.xlu0 %1813 }
 0x28b   : > { %v1692_v30 = vadd.f32 %v1688_v11, %v1664_v42  ;;  %v1819_v57 = vadd.f32 %v1814_v2, %v1791_v24 }
 0x28d   : > { %v1716_v39 = vadd.f32 %v1714_v13, %v1692_v30 }
 0x28e   : > { %v1702_v9 = vpop.permute.xlu1 %1701  ;;  %v1828_v56 = vpop.permute.xlu0 %1827 }
 0x28f   : > { %v1706_v43 = vadd.f32 %v1702_v9, %v1678_v45  ;;  %v1833_v63 = vadd.f32 %v1828_v56, %v1805_v12 }
 0x291   : > { %v1722_v46 = vadd.f32 %v1720_v31, %v1706_v43 }
 0x292   : > { %v1732_v26 = vpop.permute.xlu1 %1731  ;;  %v1842_v10 = vpop.permute.xlu0 %1841 }
 0x293   : > { %v1847_v28 = vadd.f32 %v1842_v10, %v1819_v57  ;;  %v1736_v21 = vadd.f32 %v1732_v26, %v1716_v39 }
 0x296   : > { %v1746_v3 = vpop.permute.xlu1 %1745  ;;  %v1856_v6 = vpop.permute.xlu0 %1855 }
 0x297   : > { %v1861_v1 = vadd.f32 %v1856_v6, %v1833_v63  ;;  %v1750_v4 = vadd.f32 %v1746_v3, %v1722_v46 }
 0x29a   : > { %v1760_v15 = vpop.permute.xlu1 %1759  ;;  %v1870_v16 = vpop.permute.xlu0 %1869 }
 0x29b   : > { %v1875_v49 = vadd.f32 %v1870_v16, %v1847_v28  ;;  %v1764_v41 = vadd.f32 %v1760_v15, %v1736_v21 }
 0x29e   : > { %v1774_v52 = vpop.permute.xlu1 %1773  ;;  %v1884_v62 = vpop.permute.xlu0 %1883 }
 0x29f   : > { %v1889_v40 = vadd.f32 %v1884_v62, %v1861_v1  ;;  %v1778_v17 = vadd.f32 %v1774_v52, %v1750_v4 }
 0x2a1   : > { %v1891_v0 = vadd.f32 %v1889_v40, %v1875_v49 }
 0x2a2   : > { %v1788_v7 = vpop.permute.xlu1 %1787 }
 0x2a3   : > { %v1893_v55 = vsub.f32 0.0, %v1891_v0  ;;  %v1792_v38 = vadd.f32 %v1788_v7, %v1764_v41 }
 0x2a5   : > { %v1895_v44 = vmul.f32 1.442695, %v1893_v55 }
 0x2a6   : > { %v1802_v25 = vpop.permute.xlu1 %1801 }
 0x2a7   : > { %2245 = vpow2.f32 %v1895_v44  ;;  %v1806_v53 = vadd.f32 %v1802_v25, %v1778_v17 }
 0x2aa   : > { %v1816_v54 = vpop.permute.xlu1 %1815 }
 0x2ab   : > { %v1820_v22 = vadd.f32 %v1816_v54, %v1792_v38 }
 0x2ae   : > { %v1830_v48 = vpop.permute.xlu1 %1829 }
 0x2af   : > { %v1834_v34 = vadd.f32 %v1830_v48, %v1806_v53 }
 0x2b2   : > { %v1844_v14 = vpop.permute.xlu1 %1843 }
 0x2b3   : > { %v1848_v29 = vadd.f32 %v1844_v14, %v1820_v22 }
 0x2b4   : > { %v2246_v59 = vpop.eup %2245 }
 0x2b5   : > { %v1899_v36 = vadd.f32 1.0, %v2246_v59 }
 0x2b6   : > { %v1858_v23 = vpop.permute.xlu1 %1857 }
 0x2b7   : > { %2247 = vrcp.f32 %v1899_v36  ;;  %v1862_v8 = vadd.f32 %v1858_v23, %v1834_v34 }
 0x2ba   : > { %v1872_v5 = vpop.permute.xlu1 %1871 }
 0x2bb   : > { %v1876_v51 = vadd.f32 %v1872_v5, %v1848_v29 }
 0x2be   : > { %v1886_v60 = vpop.permute.xlu1 %1885 }
 0x2bf   : > { %v1890_v58 = vadd.f32 %v1886_v60, %v1862_v8 }
 0x2c1   : > { %v1892_v47 = vadd.f32 %v1890_v58, %v1876_v51 }
 0x2c3   : > { %v1894_v18 = vsub.f32 0.0, %v1892_v47 }
 0x2c4   : > { %v2248_v32 = vpop.eup %2247 }
 0x2c5   : > { %v1897_v33 = vmul.f32 1.442695, %v1894_v18  ;;  %1906 = vst.msk [vmem:[%s172_s3] sm:$0xff] %vm1905_vm5, %v2248_v32 }
 0x2c7   : > { %2249 = vpow2.f32 %v1897_v33 }
 0x2d4   : > { %v2250_v61 = vpop.eup %2249 }
 0x2d5   : > { %v1900_v50 = vadd.f32 1.0, %v2250_v61 }
 0x2d7   : > { %2251 = vrcp.f32 %v1900_v50 }
 0x2e4   : > { %v2252_v42 = vpop.eup %2251 }
 0x2e5   : > { %1907 = vst.msk [vmem:[%s172_s3 + $0x8] sm:$0xff] %vm1905_vm5, %v2252_v42 }
 0x2e6   : > { %2281 = shalt.err (!%p2278_p3)
}
 0x2e7   : > { %s2282_s25 = scalar_lea.hbm %s3628_s20, 256  ;;  %s2286_s28 = scalar_lea.hbm %s3679_s2, 512 }
 0x2e8   : > { %p2283_p5 = scmp.ne.s32.totalorder %s3628_s20, %s2282_s25  ;;  %p2287_p9 = scmp.lt.s32.totalorder %s3628_s20, %s3679_s2 }
 0x2e9   : > { %p2288_p12 = scmp.lt.s32.totalorder %s2286_s28, %s2282_s25 }
 0x2ea   : > { %p2284_p6 = pnand %p2283_p5, %p2426_p4 }
 0x2eb   : > { %p2289_p10 = por %p2288_p12, %p2287_p9 }
 0x2ec   : > { %p2285_p7 = pneg %p2284_p6 }
 0x2ee   : > { %p2290_p11 = pnand %p2289_p10, %p2285_p7 }
 0x2f0   : > { %2293 = shalt.err (!%p2290_p11)
}
 0x2f1   : > { %s2369_s13 = smov 128   ;;  %s2370_s29 = smov 8  }
 0x2f2   : > { %2163 = dma.vmem_to_hbm [thread:$0]  (%p2426_p4), %s3630_s6, 256, %s3628_s20, %s3632_s24, %s2369_s13, %s2369_s13, %s2370_s29  }
 0x2f3 PF: > { %p2175_p13 = scmp.ge.s32.totalorder %s2348_s14, 2  ;;  %s1937_s0 = sand.u32 1, %s2328_s9  }
 0x2f4   : > { %s1938_s1 = scalar_lea.sflag [#allocation7], %s1937_s0 }
 0x2f5   : > { %p2170_p0 = pnand %p2175_p13, %p2433_p8 }
 0x2f7   : > { %p2171_p1 = pneg %p2170_p0 }
 0x2f9   : > { %2323 = dma.done.wait (%p2171_p1), %s1938_s1, 256  }
 0x2fa   : > { %2325 = vsyncadd (%p2171_p1), %s1938_s1, 4294967040  ;;  %s16_s14 = sadd.s32 1, %s2348_s14   ;;  %s3712_s12 = sld [smem:[#allocation12_spill]] }
 0x2fb   : > { %p13_p2 = scmp.ge.s32.totalorder %s16_s14, 4   ;;  %s3713_s13 = sld [smem:[#allocation13_spill]] }
 0x2fc   : > { %s3714_s9 = smov %s2332_s10  ;;  %s3715_s10 = smov %s2336_s11 }
 0x2fd   : > { %s3716_s11 = smov %s2439_s22  ;;  %15 = sbr.rel (!%p13_p2) target bundleno = 8 (0x8), region = 76 }
 0x302   :  { %1943 = vsyncpa [#allocation7], 1 }
 0x303   :  { %1945 = vsyncpa [#allocation7 + $0x1], 1 }
 0x304   :  { %1946 = vsyncpa [#allocation8], 1 }
 0x305   :  { %1948 = vsyncpa [#allocation8 + $0x1], 1 }

</bundles_post_ra>
